<compile_context>
chip_gen: v6e
topology: v6e:2x2x1
jax: 0.10.0
libtpu: 0.0.40
codegen_flags: <defaults>
</compile_context>

<pallas_src>
import jax
import jax.numpy as jnp
from jax import lax
from jax.experimental import pallas as pl
from jax.experimental.pallas import tpu as pltpu


# ----------------------------------------------------------------------------
# small helpers
# ----------------------------------------------------------------------------
def _round_up(x, m):
    return (x + m - 1) // m * m


def _pick_tm(m_rows, cap=512):
    # Row-tile: multiple of 8 (sublane), capped so each tile stays small in VMEM.
    return min(cap, _round_up(m_rows, 8))


_COMPILER_PARAMS = pltpu.CompilerParams(
    dimension_semantics=("parallel",),
    vmem_limit_bytes=32 * 1024 * 1024,  # fits v5e/v6e (128 MiB) and v7x (64 MiB)
)


# ----------------------------------------------------------------------------
# Pallas kernels
# ----------------------------------------------------------------------------
def _conv_pool_kernel(x_ref, w_ref, b_ref, o_ref):
    """Fused conv-as-matmul + bias + ReLU + 2x2 max-pool.

    x_ref: (4, tm, Kp) bf16 -- slab p = dy*2+dx holds the im2col rows of the
                               conv-output pixel (2*hh+dy, 2*wh+dx)
    w_ref: (Kp, 128)   bf16 -- zero-padded (kh,kw,ci)->cout weight matrix
    b_ref: (1, 128)    f32
    o_ref: (tm, 128)   f32  -- pooled activations, lane-dense
    """
    w = w_ref[...]
    b = b_ref[...]

    def branch(i):
        acc = jnp.dot(x_ref[i], w, preferred_element_type=jnp.float32)
        return jnp.maximum(acc + b, 0.0)

    pooled = jnp.maximum(jnp.maximum(branch(0), branch(1)),
                         jnp.maximum(branch(2), branch(3)))
    o_ref[...] = pooled.astype(o_ref.dtype)


def conv_relu_pool(patches, wmat, bias, tm):
    """patches: (4, Mp, Kp) bf16, wmat: (Kp, 128) bf16, bias: (1, 128) f32."""
    _, mp, kp = patches.shape
    np_ = wmat.shape[1]
    grid = (mp // tm,)
    return pl.pallas_call(
        _conv_pool_kernel,
        out_shape=jax.ShapeDtypeStruct((mp, np_), jnp.float32),
        grid=grid,
        in_specs=[
            pl.BlockSpec((4, tm, kp), lambda i: (0, i, 0)),
            pl.BlockSpec((kp, np_), lambda i: (0, 0)),
            pl.BlockSpec((1, np_), lambda i: (0, 0)),
        ],
        out_specs=pl.BlockSpec((tm, np_), lambda i: (i, 0)),
        compiler_params=_COMPILER_PARAMS,
        cost_estimate=pl.CostEstimate(
            flops=2 * 4 * mp * kp * np_,
            transcendentals=0,
            bytes_accessed=(patches.size * 2 + wmat.size * 2
                            + bias.size * 4 + mp * np_ * 4),
        ),
    )(patches, wmat, bias)


def _fc_fused_kernel(x_ref, w1_ref, b1_ref, w2_ref, b2_ref, w3_ref, b3_ref,
                     o_ref):
    """fc1(ReLU) -> fc2(ReLU) -> fc3, all weights resident, bf16 MXU / f32 acc."""
    h = jnp.dot(x_ref[...], w1_ref[...], preferred_element_type=jnp.float32)
    h = jnp.maximum(h + b1_ref[...], 0.0)
    h = jnp.dot(h.astype(jnp.bfloat16), w2_ref[...],
                preferred_element_type=jnp.float32)
    h = jnp.maximum(h + b2_ref[...], 0.0)
    h = jnp.dot(h.astype(jnp.bfloat16), w3_ref[...],
                preferred_element_type=jnp.float32)
    o_ref[...] = (h + b3_ref[...]).astype(o_ref.dtype)


def fc_fused(x, w1, b1, w2, b2, w3, b3, tm):
    mp, k1 = x.shape
    h1, h2, no = w1.shape[1], w2.shape[1], w3.shape[1]
    grid = (mp // tm,)
    return pl.pallas_call(
        _fc_fused_kernel,
        out_shape=jax.ShapeDtypeStruct((mp, no), jnp.float32),
        grid=grid,
        in_specs=[
            pl.BlockSpec((tm, k1), lambda i: (i, 0)),
            pl.BlockSpec((k1, h1), lambda i: (0, 0)),
            pl.BlockSpec((1, h1), lambda i: (0, 0)),
            pl.BlockSpec((h1, h2), lambda i: (0, 0)),
            pl.BlockSpec((1, h2), lambda i: (0, 0)),
            pl.BlockSpec((h2, no), lambda i: (0, 0)),
            pl.BlockSpec((1, no), lambda i: (0, 0)),
        ],
        out_specs=pl.BlockSpec((tm, no), lambda i: (i, 0)),
        compiler_params=_COMPILER_PARAMS,
        cost_estimate=pl.CostEstimate(
            flops=2 * mp * (k1 * h1 + h1 * h2 + h2 * no),
            transcendentals=0,
            bytes_accessed=(x.size * 2 + (w1.size + w2.size + w3.size) * 2
                            + (b1.size + b2.size + b3.size) * 4 + mp * no * 4),
        ),
    )(x, w1, b1, w2, b2, w3, b3)


# ----------------------------------------------------------------------------
# im2col glue (NHWC, pool-position slabs, zero-padded K and M)
# TODO(synk): the patch gather itself is still XLA glue; it could be moved
# in-kernel with pl.ds over an NHWC input block to avoid the K*K expansion.
# ----------------------------------------------------------------------------
def _im2col_pool_patches(x, ksize, kpad, tm):
    """x: (B,H,W,Cin) f32 NHWC -> ((4, Mp, kpad) bf16, Mq, Hh, Wh)."""
    b, h, w, cin = x.shape
    ho, wo = h - ksize + 1, w - ksize + 1
    hh, wh = ho // 2, wo // 2
    feat = ksize * ksize * cin
    cols = [x[:, kh:kh + ho, kw:kw + wo, :]
            for kh in range(ksize) for kw in range(ksize)]
    p = jnp.concatenate(cols, axis=-1)            # (B,Ho,Wo,feat), feat=(kh,kw,ci)
    p = p.reshape(b, hh, 2, wh, 2, feat)
    p = p.transpose(2, 4, 0, 1, 3, 5).reshape(4, b * hh * wh, feat)
    mq = b * hh * wh
    mp = _round_up(mq, tm)
    p = jnp.pad(p, ((0, 0), (0, mp - mq), (0, kpad - feat)))
    return p.astype(jnp.bfloat16), mq, hh, wh


# ----------------------------------------------------------------------------
# One-time parameter preprocessing (outside the hot path)
# ----------------------------------------------------------------------------
def preprocess_params(params):
    """Transpose, zero-pad (K -> mult of 128, N -> 128) and cast weights to
    bf16; pre-permute fc1 columns so the NHWC flatten matches torch's .view."""
    def pad2(a, rows, cols):
        return jnp.pad(a, ((0, rows - a.shape[0]), (0, cols - a.shape[1])))

    def conv_wmat(w, kpad):
        cout, cin, k, _ = w.shape
        wm = jnp.transpose(w, (2, 3, 1, 0)).reshape(k * k * cin, cout)
        return pad2(wm, kpad, 128).astype(jnp.bfloat16)

    def bias128(bvec):
        return jnp.pad(bvec, (0, 128 - bvec.shape[0])).reshape(1, 128).astype(
            jnp.float32)

    # torch flatten index = c*25 + h*5 + w ; NHWC flatten index = h*80 + w*16 + c
    hh, ww, cc = jnp.meshgrid(jnp.arange(5), jnp.arange(5), jnp.arange(16),
                              indexing="ij")
    nhwc_to_nchw = (cc * 25 + hh * 5 + ww).reshape(-1)
    fc1_w = params["fc1_w"][:, nhwc_to_nchw]

    return {
        "c1_w": conv_wmat(params["conv1_w"], 128),    # K = 3*5*5 = 75  -> 128
        "c1_b": bias128(params["conv1_b"]),
        "c2_w": conv_wmat(params["conv2_w"], 256),    # K = 6*5*5 = 150 -> 256
        "c2_b": bias128(params["conv2_b"]),
        "fc1_w": pad2(fc1_w.T, 512, 128).astype(jnp.bfloat16),   # (400,120)->(512,128)
        "fc1_b": bias128(params["fc1_b"]),
        "fc2_w": pad2(params["fc2_w"].T, 128, 128).astype(jnp.bfloat16),
        "fc2_b": bias128(params["fc2_b"]),
        "fc3_w": pad2(params["fc3_w"].T, 128, 128).astype(jnp.bfloat16),
        "fc3_b": bias128(params["fc3_b"]),
    }


# ----------------------------------------------------------------------------
# Forward pass (matches Net.forward)
# ----------------------------------------------------------------------------
@jax.jit
def net_forward(x_nchw, prep):
    x = jnp.transpose(x_nchw, (0, 2, 3, 1)).astype(jnp.float32)  # NHWC once
    b = x.shape[0]

    # conv1 (3->6, 5x5) + ReLU + 2x2 maxpool, fused -> NHWC (B,14,14,6)
    tm1 = _pick_tm(b * 14 * 14)
    p1, mq1, hh1, wh1 = _im2col_pool_patches(x, 5, 128, tm1)
    y1 = conv_relu_pool(p1, prep["c1_w"], prep["c1_b"], tm1)
    y1 = y1[:mq1, :6].reshape(b, hh1, wh1, 6)

    # conv2 (6->16, 5x5) + ReLU + 2x2 maxpool, fused -> NHWC (B,5,5,16)
    tm2 = _pick_tm(b * 5 * 5)
    p2, mq2, hh2, wh2 = _im2col_pool_patches(y1, 5, 256, tm2)
    y2 = conv_relu_pool(p2, prep["c2_w"], prep["c2_b"], tm2)
    y2 = y2[:mq2, :16].reshape(b, hh2, wh2, 16)

    # flatten in NHWC order (fc1 columns pre-permuted to preserve torch .view
    # semantics) and run the single fused fc1+fc2+fc3 kernel.
    xf = y2.reshape(b, 16 * 5 * 5)
    tmb = min(256, _round_up(b, 8))
    bp = _round_up(b, tmb)
    xf = jnp.pad(xf, ((0, bp - b), (0, 512 - 400))).astype(jnp.bfloat16)
    out = fc_fused(xf, prep["fc1_w"], prep["fc1_b"],
                   prep["fc2_w"], prep["fc2_b"],
                   prep["fc3_w"], prep["fc3_b"], tmb)
    return out[:b, :10]


# ----------------------------------------------------------------------------
# Parameter init (deterministic, PyTorch-like uniform(-1/sqrt(fan_in), +))
# ----------------------------------------------------------------------------
def init_params(key):
    def uniform(k, shape, fan_in):
        bound = 1.0 / jnp.sqrt(float(fan_in))
        return jax.random.uniform(k, shape, jnp.float32, -bound, bound)

    keys = jax.random.split(key, 10)
    return {
        "conv1_w": uniform(keys[0], (6, 3, 5, 5), 3 * 5 * 5),
        "conv1_b": uniform(keys[1], (6,), 3 * 5 * 5),
        "conv2_w": uniform(keys[2], (16, 6, 5, 5), 6 * 5 * 5),
        "conv2_b": uniform(keys[3], (16,), 6 * 5 * 5),
        "fc1_w": uniform(keys[4], (120, 16 * 5 * 5), 16 * 5 * 5),
        "fc1_b": uniform(keys[5], (120,), 16 * 5 * 5),
        "fc2_w": uniform(keys[6], (84, 120), 120),
        "fc2_b": uniform(keys[7], (84,), 120),
        "fc3_w": uniform(keys[8], (10, 84), 84),
        "fc3_b": uniform(keys[9], (10,), 84),
    }


# ----------------------------------------------------------------------------
# Pure-JAX reference (same bf16-input / f32-accumulate policy) for validation
# ----------------------------------------------------------------------------
def reference_forward(x, params):
    def conv(x, w, b):
        y = lax.conv_general_dilated(
            x.astype(jnp.bfloat16), w.astype(jnp.bfloat16),
            window_strides=(1, 1), padding="VALID",
            dimension_numbers=("NCHW", "OIHW", "NCHW"),
            preferred_element_type=jnp.float32)
        return jnp.maximum(y + b.reshape(1, -1, 1, 1), 0.0)

    def pool(x):
        b, c, h, w = x.shape
        return jnp.max(x.reshape(b, c, h // 2, 2, w // 2, 2), axis=(3, 5))

    def fc(x, w, b, relu):
        y = jnp.dot(x.astype(jnp.bfloat16), w.T.astype(jnp.bfloat16),
                    preferred_element_type=jnp.float32) + b
        return jnp.maximum(y, 0.0) if relu else y

    x = pool(conv(x, params["conv1_w"], params["conv1_b"]))
    x = pool(conv(x, params["conv2_w"], params["conv2_b"]))
    x = x.reshape(x.shape[0], 16 * 5 * 5)
    x = fc(x, params["fc1_w"], params["fc1_b"], True)
    x = fc(x, params["fc2_w"], params["fc2_b"], True)
    x = fc(x, params["fc3_w"], params["fc3_b"], False)
    return x


if __name__ == "__main__":
    key = jax.random.PRNGKey(0)
    k_params, k_x = jax.random.split(key)
    params = init_params(k_params)
    prep = preprocess_params(params)   # one-time weight layout prep

    # CIFAR-sized input: the 16*5*5 flatten requires 32x32 spatial input.
    x = jax.random.normal(k_x, (2, 3, 32, 32), jnp.float32)

    out = net_forward(x, prep)
    jax.block_until_ready(out)
    assert out.shape == (2, 10), out.shape

    ref = reference_forward(x, params)
    err = float(jnp.max(jnp.abs(out - ref)))
    assert err < 1e-2, f"max abs error vs reference = {err}"

    print("KERNEL_OK")
</pallas_src>

<mosaic_0001>
module attributes {stable_mosaic.version = 11 : i64} {
  func.func @_conv_pool_kernel(%arg0: i32, %arg1: memref<4x392x128xbf16, #tpu.memory_space<vmem>>, %arg2: memref<128x128xbf16, #tpu.memory_space<vmem>>, %arg3: memref<1x128xf32, #tpu.memory_space<vmem>>, %arg4: memref<392x128xf32, #tpu.memory_space<vmem>>) attributes {dimension_semantics = [#tpu.dimension_semantics<parallel>], iteration_bounds = array<i64: 1>, scalar_prefetch = 0 : i64, scratch_operands = 0 : i64, tpu.core_type = #tpu.core_type<tc>, window_params = [{transform_indices = @transform_0, window_bounds = array<i64: 4, 392, 128>}, {pipeline_mode = #tpu.pipeline_mode<synchronous>, transform_indices = @transform_1, window_bounds = array<i64: 128, 128>}, {pipeline_mode = #tpu.pipeline_mode<synchronous>, transform_indices = @transform_2, window_bounds = array<i64: 1, 128>}, {transform_indices = @transform_3, window_bounds = array<i64: 392, 128>}]} {
    %c0 = arith.constant 0 : index
    %c0_0 = arith.constant 0 : index
    %0 = vector.load %arg2[%c0, %c0_0] : memref<128x128xbf16, #tpu.memory_space<vmem>>, vector<128x128xbf16>
    %c0_1 = arith.constant 0 : index
    %c0_2 = arith.constant 0 : index
    %1 = vector.load %arg3[%c0_1, %c0_2] : memref<1x128xf32, #tpu.memory_space<vmem>>, vector<1x128xf32>
    %c0_3 = arith.constant 0 : index
    %c0_4 = arith.constant 0 : index
    %c0_5 = arith.constant 0 : index
    %2 = vector.load %arg1[%c0_3, %c0_4, %c0_5] : memref<4x392x128xbf16, #tpu.memory_space<vmem>>, vector<1x392x128xbf16>
    %3 = vector.shape_cast %2 : vector<1x392x128xbf16> to vector<392x128xbf16>
    %cst = arith.constant dense<0.000000e+00> : vector<392x128xf32>
    %4 = tpu.matmul %3, %0, %cst {dimension_numbers = #tpu.dot_dimension_numbers<[1], [0], [0], [1], [0, 0, 1, 1], [], []>} : vector<392x128xbf16>, vector<128x128xbf16>, vector<392x128xf32> -> vector<392x128xf32>
    %5 = vector.broadcast %1 : vector<1x128xf32> to vector<392x128xf32>
    %6 = arith.addf %4, %5 : vector<392x128xf32>
    %cst_6 = arith.constant 0.000000e+00 : f32
    %7 = vector.broadcast %cst_6 : f32 to vector<392x128xf32>
    %8 = arith.maximumf %6, %7 : vector<392x128xf32>
    %c1 = arith.constant 1 : index
    %c0_7 = arith.constant 0 : index
    %c0_8 = arith.constant 0 : index
    %9 = vector.load %arg1[%c1, %c0_7, %c0_8] : memref<4x392x128xbf16, #tpu.memory_space<vmem>>, vector<1x392x128xbf16>
    %10 = vector.shape_cast %9 : vector<1x392x128xbf16> to vector<392x128xbf16>
    %cst_9 = arith.constant dense<0.000000e+00> : vector<392x128xf32>
    %11 = tpu.matmul %10, %0, %cst_9 {dimension_numbers = #tpu.dot_dimension_numbers<[1], [0], [0], [1], [0, 0, 1, 1], [], []>} : vector<392x128xbf16>, vector<128x128xbf16>, vector<392x128xf32> -> vector<392x128xf32>
    %12 = vector.broadcast %1 : vector<1x128xf32> to vector<392x128xf32>
    %13 = arith.addf %11, %12 : vector<392x128xf32>
    %cst_10 = arith.constant 0.000000e+00 : f32
    %14 = vector.broadcast %cst_10 : f32 to vector<392x128xf32>
    %15 = arith.maximumf %13, %14 : vector<392x128xf32>
    %16 = arith.maximumf %8, %15 : vector<392x128xf32>
    %c2 = arith.constant 2 : index
    %c0_11 = arith.constant 0 : index
    %c0_12 = arith.constant 0 : index
    %17 = vector.load %arg1[%c2, %c0_11, %c0_12] : memref<4x392x128xbf16, #tpu.memory_space<vmem>>, vector<1x392x128xbf16>
    %18 = vector.shape_cast %17 : vector<1x392x128xbf16> to vector<392x128xbf16>
    %cst_13 = arith.constant dense<0.000000e+00> : vector<392x128xf32>
    %19 = tpu.matmul %18, %0, %cst_13 {dimension_numbers = #tpu.dot_dimension_numbers<[1], [0], [0], [1], [0, 0, 1, 1], [], []>} : vector<392x128xbf16>, vector<128x128xbf16>, vector<392x128xf32> -> vector<392x128xf32>
    %20 = vector.broadcast %1 : vector<1x128xf32> to vector<392x128xf32>
    %21 = arith.addf %19, %20 : vector<392x128xf32>
    %cst_14 = arith.constant 0.000000e+00 : f32
    %22 = vector.broadcast %cst_14 : f32 to vector<392x128xf32>
    %23 = arith.maximumf %21, %22 : vector<392x128xf32>
    %c3 = arith.constant 3 : index
    %c0_15 = arith.constant 0 : index
    %c0_16 = arith.constant 0 : index
    %24 = vector.load %arg1[%c3, %c0_15, %c0_16] : memref<4x392x128xbf16, #tpu.memory_space<vmem>>, vector<1x392x128xbf16>
    %25 = vector.shape_cast %24 : vector<1x392x128xbf16> to vector<392x128xbf16>
    %cst_17 = arith.constant dense<0.000000e+00> : vector<392x128xf32>
    %26 = tpu.matmul %25, %0, %cst_17 {dimension_numbers = #tpu.dot_dimension_numbers<[1], [0], [0], [1], [0, 0, 1, 1], [], []>} : vector<392x128xbf16>, vector<128x128xbf16>, vector<392x128xf32> -> vector<392x128xf32>
    %27 = vector.broadcast %1 : vector<1x128xf32> to vector<392x128xf32>
    %28 = arith.addf %26, %27 : vector<392x128xf32>
    %cst_18 = arith.constant 0.000000e+00 : f32
    %29 = vector.broadcast %cst_18 : f32 to vector<392x128xf32>
    %30 = arith.maximumf %28, %29 : vector<392x128xf32>
    %31 = arith.maximumf %23, %30 : vector<392x128xf32>
    %32 = arith.maximumf %16, %31 : vector<392x128xf32>
    %c0_19 = arith.constant 0 : index
    %c0_20 = arith.constant 0 : index
    %33 = vector.load %arg4[%c0_19, %c0_20] : memref<392x128xf32, #tpu.memory_space<vmem>>, vector<392x128xf32>
    tpu.vector_store %arg4[%c0_19, %c0_20], %32 {strides = array<i32>} : memref<392x128xf32, #tpu.memory_space<vmem>>, vector<392x128xf32>,
    return
  }
  func.func @transform_0(%arg0: i32) -> (i32, i32, i32) {
    %c0_i32 = arith.constant 0 : i32
    %c0_i32_0 = arith.constant 0 : i32
    %c0_i32_1 = arith.constant 0 : i32
    return %c0_i32, %arg0, %c0_i32_0 : i32, i32, i32
  }
  func.func @transform_1(%arg0: i32) -> (i32, i32) {
    %c0_i32 = arith.constant 0 : i32
    %c0_i32_0 = arith.constant 0 : i32
    %c0_i32_1 = arith.constant 0 : i32
    return %c0_i32, %c0_i32_0 : i32, i32
  }
  func.func @transform_2(%arg0: i32) -> (i32, i32) {
    %c0_i32 = arith.constant 0 : i32
    %c0_i32_0 = arith.constant 0 : i32
    %c0_i32_1 = arith.constant 0 : i32
    return %c0_i32, %c0_i32_0 : i32, i32
  }
  func.func @transform_3(%arg0: i32) -> (i32, i32) {
    %c0_i32 = arith.constant 0 : i32
    %c0_i32_0 = arith.constant 0 : i32
    return %arg0, %c0_i32 : i32, i32
  }
}

module attributes {stable_mosaic.version = 11 : i64} {
  func.func @_conv_pool_kernel(%arg0: i32, %arg1: memref<4x56x256xbf16, #tpu.memory_space<vmem>>, %arg2: memref<256x128xbf16, #tpu.memory_space<vmem>>, %arg3: memref<1x128xf32, #tpu.memory_space<vmem>>, %arg4: memref<56x128xf32, #tpu.memory_space<vmem>>) attributes {dimension_semantics = [#tpu.dimension_semantics<parallel>], iteration_bounds = array<i64: 1>, scalar_prefetch = 0 : i64, scratch_operands = 0 : i64, tpu.core_type = #tpu.core_type<tc>, window_params = [{transform_indices = @transform_0, window_bounds = array<i64: 4, 56, 256>}, {pipeline_mode = #tpu.pipeline_mode<synchronous>, transform_indices = @transform_1, window_bounds = array<i64: 256, 128>}, {pipeline_mode = #tpu.pipeline_mode<synchronous>, transform_indices = @transform_2, window_bounds = array<i64: 1, 128>}, {transform_indices = @transform_3, window_bounds = array<i64: 56, 128>}]} {
    %c0 = arith.constant 0 : index
    %c0_0 = arith.constant 0 : index
    %0 = vector.load %arg2[%c0, %c0_0] : memref<256x128xbf16, #tpu.memory_space<vmem>>, vector<256x128xbf16>
    %c0_1 = arith.constant 0 : index
    %c0_2 = arith.constant 0 : index
    %1 = vector.load %arg3[%c0_1, %c0_2] : memref<1x128xf32, #tpu.memory_space<vmem>>, vector<1x128xf32>
    %c0_3 = arith.constant 0 : index
    %c0_4 = arith.constant 0 : index
    %c0_5 = arith.constant 0 : index
    %2 = vector.load %arg1[%c0_3, %c0_4, %c0_5] : memref<4x56x256xbf16, #tpu.memory_space<vmem>>, vector<1x56x256xbf16>
    %3 = vector.shape_cast %2 : vector<1x56x256xbf16> to vector<56x256xbf16>
    %cst = arith.constant dense<0.000000e+00> : vector<56x128xf32>
    %4 = tpu.matmul %3, %0, %cst {dimension_numbers = #tpu.dot_dimension_numbers<[1], [0], [0], [1], [0, 0, 1, 1], [], []>} : vector<56x256xbf16>, vector<256x128xbf16>, vector<56x128xf32> -> vector<56x128xf32>
    %5 = vector.broadcast %1 : vector<1x128xf32> to vector<56x128xf32>
    %6 = arith.addf %4, %5 : vector<56x128xf32>
    %cst_6 = arith.constant 0.000000e+00 : f32
    %7 = vector.broadcast %cst_6 : f32 to vector<56x128xf32>
    %8 = arith.maximumf %6, %7 : vector<56x128xf32>
    %c1 = arith.constant 1 : index
    %c0_7 = arith.constant 0 : index
    %c0_8 = arith.constant 0 : index
    %9 = vector.load %arg1[%c1, %c0_7, %c0_8] : memref<4x56x256xbf16, #tpu.memory_space<vmem>>, vector<1x56x256xbf16>
    %10 = vector.shape_cast %9 : vector<1x56x256xbf16> to vector<56x256xbf16>
    %cst_9 = arith.constant dense<0.000000e+00> : vector<56x128xf32>
    %11 = tpu.matmul %10, %0, %cst_9 {dimension_numbers = #tpu.dot_dimension_numbers<[1], [0], [0], [1], [0, 0, 1, 1], [], []>} : vector<56x256xbf16>, vector<256x128xbf16>, vector<56x128xf32> -> vector<56x128xf32>
    %12 = vector.broadcast %1 : vector<1x128xf32> to vector<56x128xf32>
    %13 = arith.addf %11, %12 : vector<56x128xf32>
    %cst_10 = arith.constant 0.000000e+00 : f32
    %14 = vector.broadcast %cst_10 : f32 to vector<56x128xf32>
    %15 = arith.maximumf %13, %14 : vector<56x128xf32>
    %16 = arith.maximumf %8, %15 : vector<56x128xf32>
    %c2 = arith.constant 2 : index
    %c0_11 = arith.constant 0 : index
    %c0_12 = arith.constant 0 : index
    %17 = vector.load %arg1[%c2, %c0_11, %c0_12] : memref<4x56x256xbf16, #tpu.memory_space<vmem>>, vector<1x56x256xbf16>
    %18 = vector.shape_cast %17 : vector<1x56x256xbf16> to vector<56x256xbf16>
    %cst_13 = arith.constant dense<0.000000e+00> : vector<56x128xf32>
    %19 = tpu.matmul %18, %0, %cst_13 {dimension_numbers = #tpu.dot_dimension_numbers<[1], [0], [0], [1], [0, 0, 1, 1], [], []>} : vector<56x256xbf16>, vector<256x128xbf16>, vector<56x128xf32> -> vector<56x128xf32>
    %20 = vector.broadcast %1 : vector<1x128xf32> to vector<56x128xf32>
    %21 = arith.addf %19, %20 : vector<56x128xf32>
    %cst_14 = arith.constant 0.000000e+00 : f32
    %22 = vector.broadcast %cst_14 : f32 to vector<56x128xf32>
    %23 = arith.maximumf %21, %22 : vector<56x128xf32>
    %c3 = arith.constant 3 : index
    %c0_15 = arith.constant 0 : index
    %c0_16 = arith.constant 0 : index
    %24 = vector.load %arg1[%c3, %c0_15, %c0_16] : memref<4x56x256xbf16, #tpu.memory_space<vmem>>, vector<1x56x256xbf16>
    %25 = vector.shape_cast %24 : vector<1x56x256xbf16> to vector<56x256xbf16>
    %cst_17 = arith.constant dense<0.000000e+00> : vector<56x128xf32>
    %26 = tpu.matmul %25, %0, %cst_17 {dimension_numbers = #tpu.dot_dimension_numbers<[1], [0], [0], [1], [0, 0, 1, 1], [], []>} : vector<56x256xbf16>, vector<256x128xbf16>, vector<56x128xf32> -> vector<56x128xf32>
    %27 = vector.broadcast %1 : vector<1x128xf32> to vector<56x128xf32>
    %28 = arith.addf %26, %27 : vector<56x128xf32>
    %cst_18 = arith.constant 0.000000e+00 : f32
    %29 = vector.broadcast %cst_18 : f32 to vector<56x128xf32>
    %30 = arith.maximumf %28, %29 : vector<56x128xf32>
    %31 = arith.maximumf %23, %30 : vector<56x128xf32>
    %32 = arith.maximumf %16, %31 : vector<56x128xf32>
    %c0_19 = arith.constant 0 : index
    %c0_20 = arith.constant 0 : index
    %33 = vector.load %arg4[%c0_19, %c0_20] : memref<56x128xf32, #tpu.memory_space<vmem>>, vector<56x128xf32>
    tpu.vector_store %arg4[%c0_19, %c0_20], %32 {strides = array<i32>} : memref<56x128xf32, #tpu.memory_space<vmem>>, vector<56x128xf32>,
    return
  }
  func.func @transform_0(%arg0: i32) -> (i32, i32, i32) {
    %c0_i32 = arith.constant 0 : i32
    %c0_i32_0 = arith.constant 0 : i32
    %c0_i32_1 = arith.constant 0 : i32
    return %c0_i32, %arg0, %c0_i32_0 : i32, i32, i32
  }
  func.func @transform_1(%arg0: i32) -> (i32, i32) {
    %c0_i32 = arith.constant 0 : i32
    %c0_i32_0 = arith.constant 0 : i32
    %c0_i32_1 = arith.constant 0 : i32
    return %c0_i32, %c0_i32_0 : i32, i32
  }
  func.func @transform_2(%arg0: i32) -> (i32, i32) {
    %c0_i32 = arith.constant 0 : i32
    %c0_i32_0 = arith.constant 0 : i32
    %c0_i32_1 = arith.constant 0 : i32
    return %c0_i32, %c0_i32_0 : i32, i32
  }
  func.func @transform_3(%arg0: i32) -> (i32, i32) {
    %c0_i32 = arith.constant 0 : i32
    %c0_i32_0 = arith.constant 0 : i32
    return %arg0, %c0_i32 : i32, i32
  }
}

module attributes {stable_mosaic.version = 11 : i64} {
  func.func @_fc_fused_kernel(%arg0: i32, %arg1: memref<8x512xbf16, #tpu.memory_space<vmem>>, %arg2: memref<512x128xbf16, #tpu.memory_space<vmem>>, %arg3: memref<1x128xf32, #tpu.memory_space<vmem>>, %arg4: memref<128x128xbf16, #tpu.memory_space<vmem>>, %arg5: memref<1x128xf32, #tpu.memory_space<vmem>>, %arg6: memref<128x128xbf16, #tpu.memory_space<vmem>>, %arg7: memref<1x128xf32, #tpu.memory_space<vmem>>, %arg8: memref<8x128xf32, #tpu.memory_space<vmem>>) attributes {dimension_semantics = [#tpu.dimension_semantics<parallel>], iteration_bounds = array<i64: 1>, scalar_prefetch = 0 : i64, scratch_operands = 0 : i64, tpu.core_type = #tpu.core_type<tc>, window_params = [{transform_indices = @transform_0, window_bounds = array<i64: 8, 512>}, {pipeline_mode = #tpu.pipeline_mode<synchronous>, transform_indices = @transform_1, window_bounds = array<i64: 512, 128>}, {pipeline_mode = #tpu.pipeline_mode<synchronous>, transform_indices = @transform_2, window_bounds = array<i64: 1, 128>}, {pipeline_mode = #tpu.pipeline_mode<synchronous>, transform_indices = @transform_3, window_bounds = array<i64: 128, 128>}, {pipeline_mode = #tpu.pipeline_mode<synchronous>, transform_indices = @transform_4, window_bounds = array<i64: 1, 128>}, {pipeline_mode = #tpu.pipeline_mode<synchronous>, transform_indices = @transform_5, window_bounds = array<i64: 128, 128>}, {pipeline_mode = #tpu.pipeline_mode<synchronous>, transform_indices = @transform_6, window_bounds = array<i64: 1, 128>}, {transform_indices = @transform_7, window_bounds = array<i64: 8, 128>}]} {
    %c0 = arith.constant 0 : index
    %c0_0 = arith.constant 0 : index
    %0 = vector.load %arg1[%c0, %c0_0] : memref<8x512xbf16, #tpu.memory_space<vmem>>, vector<8x512xbf16>
    %c0_1 = arith.constant 0 : index
    %c0_2 = arith.constant 0 : index
    %1 = vector.load %arg2[%c0_1, %c0_2] : memref<512x128xbf16, #tpu.memory_space<vmem>>, vector<512x128xbf16>
    %cst = arith.constant dense<0.000000e+00> : vector<8x128xf32>
    %2 = tpu.matmul %0, %1, %cst {dimension_numbers = #tpu.dot_dimension_numbers<[1], [0], [0], [1], [0, 0, 1, 1], [], []>} : vector<8x512xbf16>, vector<512x128xbf16>, vector<8x128xf32> -> vector<8x128xf32>
    %c0_3 = arith.constant 0 : index
    %c0_4 = arith.constant 0 : index
    %3 = vector.load %arg3[%c0_3, %c0_4] : memref<1x128xf32, #tpu.memory_space<vmem>>, vector<1x128xf32>
    %4 = vector.broadcast %3 : vector<1x128xf32> to vector<8x128xf32>
    %5 = arith.addf %2, %4 : vector<8x128xf32>
    %cst_5 = arith.constant 0.000000e+00 : f32
    %6 = vector.broadcast %cst_5 : f32 to vector<8x128xf32>
    %7 = arith.maximumf %5, %6 : vector<8x128xf32>
    %8 = arith.truncf %7 : vector<8x128xf32> to vector<8x128xbf16>
    %c0_6 = arith.constant 0 : index
    %c0_7 = arith.constant 0 : index
    %9 = vector.load %arg4[%c0_6, %c0_7] : memref<128x128xbf16, #tpu.memory_space<vmem>>, vector<128x128xbf16>
    %cst_8 = arith.constant dense<0.000000e+00> : vector<8x128xf32>
    %10 = tpu.matmul %8, %9, %cst_8 {dimension_numbers = #tpu.dot_dimension_numbers<[1], [0], [0], [1], [0, 0, 1, 1], [], []>} : vector<8x128xbf16>, vector<128x128xbf16>, vector<8x128xf32> -> vector<8x128xf32>
    %c0_9 = arith.constant 0 : index
    %c0_10 = arith.constant 0 : index
    %11 = vector.load %arg5[%c0_9, %c0_10] : memref<1x128xf32, #tpu.memory_space<vmem>>, vector<1x128xf32>
    %12 = vector.broadcast %11 : vector<1x128xf32> to vector<8x128xf32>
    %13 = arith.addf %10, %12 : vector<8x128xf32>
    %cst_11 = arith.constant 0.000000e+00 : f32
    %14 = vector.broadcast %cst_11 : f32 to vector<8x128xf32>
    %15 = arith.maximumf %13, %14 : vector<8x128xf32>
    %16 = arith.truncf %15 : vector<8x128xf32> to vector<8x128xbf16>
    %c0_12 = arith.constant 0 : index
    %c0_13 = arith.constant 0 : index
    %17 = vector.load %arg6[%c0_12, %c0_13] : memref<128x128xbf16, #tpu.memory_space<vmem>>, vector<128x128xbf16>
    %cst_14 = arith.constant dense<0.000000e+00> : vector<8x128xf32>
    %18 = tpu.matmul %16, %17, %cst_14 {dimension_numbers = #tpu.dot_dimension_numbers<[1], [0], [0], [1], [0, 0, 1, 1], [], []>} : vector<8x128xbf16>, vector<128x128xbf16>, vector<8x128xf32> -> vector<8x128xf32>
    %c0_15 = arith.constant 0 : index
    %c0_16 = arith.constant 0 : index
    %19 = vector.load %arg7[%c0_15, %c0_16] : memref<1x128xf32, #tpu.memory_space<vmem>>, vector<1x128xf32>
    %20 = vector.broadcast %19 : vector<1x128xf32> to vector<8x128xf32>
    %21 = arith.addf %18, %20 : vector<8x128xf32>
    %c0_17 = arith.constant 0 : index
    %c0_18 = arith.constant 0 : index
    %22 = vector.load %arg8[%c0_17, %c0_18] : memref<8x128xf32, #tpu.memory_space<vmem>>, vector<8x128xf32>
    tpu.vector_store %arg8[%c0_17, %c0_18], %21 {strides = array<i32>} : memref<8x128xf32, #tpu.memory_space<vmem>>, vector<8x128xf32>,
    return
  }
  func.func @transform_0(%arg0: i32) -> (i32, i32) {
    %c0_i32 = arith.constant 0 : i32
    %c0_i32_0 = arith.constant 0 : i32
    return %arg0, %c0_i32 : i32, i32
  }
  func.func @transform_1(%arg0: i32) -> (i32, i32) {
    %c0_i32 = arith.constant 0 : i32
    %c0_i32_0 = arith.constant 0 : i32
    %c0_i32_1 = arith.constant 0 : i32
    return %c0_i32, %c0_i32_0 : i32, i32
  }
  func.func @transform_2(%arg0: i32) -> (i32, i32) {
    %c0_i32 = arith.constant 0 : i32
    %c0_i32_0 = arith.constant 0 : i32
    %c0_i32_1 = arith.constant 0 : i32
    return %c0_i32, %c0_i32_0 : i32, i32
  }
  func.func @transform_3(%arg0: i32) -> (i32, i32) {
    %c0_i32 = arith.constant 0 : i32
    %c0_i32_0 = arith.constant 0 : i32
    %c0_i32_1 = arith.constant 0 : i32
    return %c0_i32, %c0_i32_0 : i32, i32
  }
  func.func @transform_4(%arg0: i32) -> (i32, i32) {
    %c0_i32 = arith.constant 0 : i32
    %c0_i32_0 = arith.constant 0 : i32
    %c0_i32_1 = arith.constant 0 : i32
    return %c0_i32, %c0_i32_0 : i32, i32
  }
  func.func @transform_5(%arg0: i32) -> (i32, i32) {
    %c0_i32 = arith.constant 0 : i32
    %c0_i32_0 = arith.constant 0 : i32
    %c0_i32_1 = arith.constant 0 : i32
    return %c0_i32, %c0_i32_0 : i32, i32
  }
  func.func @transform_6(%arg0: i32) -> (i32, i32) {
    %c0_i32 = arith.constant 0 : i32
    %c0_i32_0 = arith.constant 0 : i32
    %c0_i32_1 = arith.constant 0 : i32
    return %c0_i32, %c0_i32_0 : i32, i32
  }
  func.func @transform_7(%arg0: i32) -> (i32, i32) {
    %c0_i32 = arith.constant 0 : i32
    %c0_i32_0 = arith.constant 0 : i32
    return %arg0, %c0_i32 : i32, i32
  }
}

</mosaic_0001>

<bundles_post_ra>
// kernel: net_forward.3
= control target key start
LH: loop header
LB: loop body
LE: loop exit
PB: predicated region body
PF: predicated region fallthrough
CT: control target
= control target key end

     0   :  { %v4252_v0 = vmov 0.0   ;;  %vm3166_vm0 = vmmov 0   ;;  %s4248_s1 = inlined_call_operand.vmem [shape: bf16[128,128], index: 1, kind: input, shape index: {}]   ;;  %s4249_s0 = inlined_call_operand.vmem [shape: bf16[4,392,128], index: 0, kind: input, shape index: {}]   ;;  %s4250_s2 = inlined_call_operand.vmem [shape: f32[1,128], index: 2, kind: input, shape index: {}]   ;;  %s4251_s3 = inlined_call_operand.vmem [shape: f32[392,128], index: 3, kind: output, shape index: {}]  }
   0x1   :  { %2589 = vmatprep.subr.bf16.mxu0 %v4252_v0  ;;  %2705 = vmatprep.subr.bf16.mxu1 %v4252_v0  ;;  %v3055_v1 = vld [vmem:[%s4248_s1 + $0x38] sm:$0xff]   ;;  %v3056_v2 = vld [vmem:[%s4248_s1 + $0x30] sm:$0xff]   ;;  %v3057_v3 = vld [vmem:[%s4248_s1 + $0x28] sm:$0xff]  }
   0x2   :  { %2605 = vmatprep.mubr.msk.bf16.mxu0 %vm3166_vm0, %v4252_v0  ;;  %2721 = vmatprep.mubr.msk.bf16.mxu1 %vm3166_vm0, %v4252_v0  ;;  %v3058_v4 = vld [vmem:[%s4248_s1 + $0x20] sm:$0xff]   ;;  %v3059_v5 = vld [vmem:[%s4248_s1 + $0x18] sm:$0xff]   ;;  %v3060_v6 = vld [vmem:[%s4248_s1 + $0x10] sm:$0xff]  }
   0x3   :  { %2590 = vmatpush3.bf16.msra.mxu0 %v3055_v1  ;;  %2706 = vmatpush3.bf16.msra.mxu1 %v3055_v1  ;;  %v3061_v7 = vld [vmem:[%s4248_s1 + $0x8] sm:$0xff]   ;;  %v3062_v8 = vld [vmem:[%s4248_s1] sm:$0xff]   ;;  %v3067_v13 = vld [vmem:[%s4249_s0 + $0x10] sm:$0xff]  }
   0x4   :  { %2591 = vmatprep.subr.bf16.mxu0 %v4252_v0  ;;  %2707 = vmatprep.subr.bf16.mxu1 %v4252_v0  ;;  %v3063_v9 = vld [vmem:[%s4249_s0] sm:$0xff]   ;;  %v3065_v11 = vld [vmem:[%s4249_s0 + $0x8] sm:$0xff]   ;;  %v3068_v14 = vld [vmem:[%s4249_s0 + $0xd4] sm:$0xff]  }
   0x5   :  { %v3064_v10 = vld [vmem:[%s4249_s0 + $0xc4] sm:$0xff]   ;;  %v3066_v12 = vld [vmem:[%s4249_s0 + $0xcc] sm:$0xff]   ;;  %v3069_v15 = vld [vmem:[%s4249_s0 + $0x18] sm:$0xff]  }
   0x6   :  { %v3070_v16 = vld [vmem:[%s4249_s0 + $0xdc] sm:$0xff]   ;;  %v3072_v18 = vld [vmem:[%s4249_s0 + $0xe4] sm:$0xff]   ;;  %v3074_v20 = vld [vmem:[%s4249_s0 + $0xec] sm:$0xff]  }
   0x7   :  { %2592 = vmatpush3.bf16.msra.mxu0 %v3056_v2  ;;  %2708 = vmatpush3.bf16.msra.mxu1 %v3056_v2  ;;  %v3071_v17 = vld [vmem:[%s4249_s0 + $0x20] sm:$0xff]   ;;  %v3073_v19 = vld [vmem:[%s4249_s0 + $0x28] sm:$0xff]   ;;  %v3075_v21 = vld [vmem:[%s4249_s0 + $0x30] sm:$0xff]  }
   0x8   :  { %2593 = vmatprep.subr.bf16.mxu0 %v4252_v0  ;;  %2709 = vmatprep.subr.bf16.mxu1 %v4252_v0  ;;  %v3076_v22 = vld [vmem:[%s4249_s0 + $0xf4] sm:$0xff]   ;;  %v3078_v24 = vld [vmem:[%s4249_s0 + $0xfc] sm:$0xff]   ;;  %v3080_v26 = vld [vmem:[%s4249_s0 + $0x104] sm:$0xff]  }
   0x9   :  { %v3077_v23 = vld [vmem:[%s4249_s0 + $0x38] sm:$0xff]   ;;  %v3079_v25 = vld [vmem:[%s4249_s0 + $0x40] sm:$0xff]   ;;  %v3081_v27 = vld [vmem:[%s4249_s0 + $0x48] sm:$0xff]  }
   0xa   :  { %v3082_v28 = vld [vmem:[%s4249_s0 + $0x10c] sm:$0xff]   ;;  %v3084_v30 = vld [vmem:[%s4249_s0 + $0x114] sm:$0xff]   ;;  %v3086_v32 = vld [vmem:[%s4249_s0 + $0x11c] sm:$0xff]  }
   0xb   :  { %2594 = vmatpush3.bf16.msra.mxu0 %v3057_v3  ;;  %2710 = vmatpush3.bf16.msra.mxu1 %v3057_v3  ;;  %v3083_v29 = vld [vmem:[%s4249_s0 + $0x50] sm:$0xff]   ;;  %v3085_v31 = vld [vmem:[%s4249_s0 + $0x58] sm:$0xff]   ;;  %v3087_v33 = vld [vmem:[%s4249_s0 + $0x60] sm:$0xff]  }
   0xc   :  { %2595 = vmatprep.subr.bf16.mxu0 %v4252_v0  ;;  %2711 = vmatprep.subr.bf16.mxu1 %v4252_v0  ;;  %v3088_v34 = vld [vmem:[%s4249_s0 + $0x124] sm:$0xff]   ;;  %v3090_v36 = vld [vmem:[%s4249_s0 + $0x12c] sm:$0xff]   ;;  %v3092_v38 = vld [vmem:[%s4249_s0 + $0x134] sm:$0xff]  }
   0xd   :  { %v3089_v35 = vld [vmem:[%s4249_s0 + $0x68] sm:$0xff]   ;;  %v3091_v37 = vld [vmem:[%s4249_s0 + $0x70] sm:$0xff]   ;;  %v3093_v39 = vld [vmem:[%s4249_s0 + $0x78] sm:$0xff]  }
   0xe   :  { %v3094_v40 = vld [vmem:[%s4249_s0 + $0x13c] sm:$0xff]   ;;  %v3096_v42 = vld [vmem:[%s4249_s0 + $0x144] sm:$0xff]   ;;  %v3098_v44 = vld [vmem:[%s4249_s0 + $0x14c] sm:$0xff]  }
   0xf   :  { %2596 = vmatpush3.bf16.msra.mxu0 %v3058_v4  ;;  %2712 = vmatpush3.bf16.msra.mxu1 %v3058_v4  ;;  %v3095_v41 = vld [vmem:[%s4249_s0 + $0x80] sm:$0xff]   ;;  %v3097_v43 = vld [vmem:[%s4249_s0 + $0x88] sm:$0xff]   ;;  %v3099_v45 = vld [vmem:[%s4249_s0 + $0x90] sm:$0xff]  }
  0x10   :  { %2597 = vmatprep.subr.bf16.mxu0 %v4252_v0  ;;  %2713 = vmatprep.subr.bf16.mxu1 %v4252_v0  ;;  %v3100_v46 = vld [vmem:[%s4249_s0 + $0x154] sm:$0xff]   ;;  %v3102_v48 = vld [vmem:[%s4249_s0 + $0x15c] sm:$0xff]   ;;  %v3104_v50 = vld [vmem:[%s4249_s0 + $0x164] sm:$0xff]  }
  0x11   :  { %v3101_v47 = vld [vmem:[%s4249_s0 + $0x98] sm:$0xff]   ;;  %v3103_v49 = vld [vmem:[%s4249_s0 + $0xa0] sm:$0xff]   ;;  %v3105_v51 = vld [vmem:[%s4249_s0 + $0xa8] sm:$0xff]  }
  0x12   :  { %v3106_v52 = vld [vmem:[%s4249_s0 + $0x16c] sm:$0xff]   ;;  %v3108_v54 = vld [vmem:[%s4249_s0 + $0x174] sm:$0xff]   ;;  %v3110_v56 = vld [vmem:[%s4249_s0 + $0x17c] sm:$0xff]  }
  0x13   :  { %2598 = vmatpush3.bf16.msra.mxu0 %v3059_v5  ;;  %2714 = vmatpush3.bf16.msra.mxu1 %v3059_v5  ;;  %v3107_v53 = vld [vmem:[%s4249_s0 + $0xb0] sm:$0xff]   ;;  %v3109_v55 = vld [vmem:[%s4249_s0 + $0xb8] sm:$0xff]   ;;  %v3111_v57 = vld [vmem:[%s4249_s0 + $0xc0] ss:$0 sps:$4 sm:$0xff]  }
  0x14   :  { %2599 = vmatprep.subr.bf16.mxu0 %v4252_v0  ;;  %2715 = vmatprep.subr.bf16.mxu1 %v4252_v0  ;;  %v3112_v58 = vld [vmem:[%s4249_s0 + $0x184] ss:$0 sps:$4 sm:$0xff]   ;;  %v3496_v59 = vld [vmem:[%s4250_s2] ss:$0 sm:$0xff] }
  0x17   :  { %2600 = vmatpush3.bf16.msra.mxu0 %v3060_v6  ;;  %2716 = vmatpush3.bf16.msra.mxu1 %v3060_v6 }
  0x18   :  { %2601 = vmatprep.subr.bf16.mxu0 %v4252_v0  ;;  %2717 = vmatprep.subr.bf16.mxu1 %v4252_v0 }
  0x1b   :  { %2602 = vmatpush3.bf16.msra.mxu0 %v3061_v7  ;;  %2718 = vmatpush3.bf16.msra.mxu1 %v3061_v7 }
  0x1c   :  { %2603 = vmatprep.subr.bf16.mxu0 %v4252_v0  ;;  %2719 = vmatprep.subr.bf16.mxu1 %v4252_v0 }
  0x1f   :  { %2604 = vmatpush3.bf16.msra.mxu0 %v3062_v8  ;;  %2720 = vmatpush3.bf16.msra.mxu1 %v3062_v8 }
  0x20   :  { %2821 = vmatprep.subr.bf16.mxu0 %v4252_v0  ;;  %2937 = vmatprep.subr.bf16.mxu1 %v4252_v0 }
  0x22   :  { %2606 = vmatmul.mubr.bf16.vlgmr.msra.gmra.mxu0 %v3063_v9  ;;  %2722 = vmatmul.mubr.bf16.vlgmr.msra.gmra.mxu1 %v3064_v10 }
  0x23   :  { %2822 = vmatpush3.bf16.msra.mxu0 %v3055_v1  ;;  %2938 = vmatpush3.bf16.msra.mxu1 %v3055_v1 }
  0x24   :  { %2609 = vmatprep.mubr.msk.bf16.mxu0 %vm3166_vm0, %v4252_v0  ;;  %2725 = vmatprep.mubr.msk.bf16.mxu1 %vm3166_vm0, %v4252_v0 }
  0x25   :  { %2823 = vmatprep.subr.bf16.mxu0 %v4252_v0  ;;  %2939 = vmatprep.subr.bf16.mxu1 %v4252_v0 }
  0x27   :  { %2824 = vmatpush3.bf16.msra.mxu0 %v3056_v2  ;;  %2940 = vmatpush3.bf16.msra.mxu1 %v3056_v2 }
  0x28   :  { %2825 = vmatprep.subr.bf16.mxu0 %v4252_v0  ;;  %2941 = vmatprep.subr.bf16.mxu1 %v4252_v0 }
  0x2a   :  { %2610 = vmatmul.mubr.bf16.gmra.mxu0 %v3065_v11  ;;  %2726 = vmatmul.mubr.bf16.gmra.mxu1 %v3066_v12 }
  0x2b   :  { %2613 = vmatprep.mubr.msk.bf16.mxu0 %vm3166_vm0, %v4252_v0  ;;  %2729 = vmatprep.mubr.msk.bf16.mxu1 %vm3166_vm0, %v4252_v0 }
  0x2c   :  { %2826 = vmatpush3.bf16.msra.mxu0 %v3057_v3  ;;  %2942 = vmatpush3.bf16.msra.mxu1 %v3057_v3 }
  0x2d   :  { %2827 = vmatprep.subr.bf16.mxu0 %v4252_v0  ;;  %2943 = vmatprep.subr.bf16.mxu1 %v4252_v0 }
  0x30   :  { %2828 = vmatpush3.bf16.msra.mxu0 %v3058_v4  ;;  %2944 = vmatpush3.bf16.msra.mxu1 %v3058_v4 }
  0x31   :  { %2829 = vmatprep.subr.bf16.mxu0 %v4252_v0  ;;  %2945 = vmatprep.subr.bf16.mxu1 %v4252_v0 }
  0x32   :  { %2614 = vmatmul.mubr.bf16.gmra.mxu0 %v3067_v13  ;;  %2730 = vmatmul.mubr.bf16.gmra.mxu1 %v3068_v14 }
  0x33   :  { %2617 = vmatprep.mubr.msk.bf16.mxu0 %vm3166_vm0, %v4252_v0  ;;  %2733 = vmatprep.mubr.msk.bf16.mxu1 %vm3166_vm0, %v4252_v0 }
  0x34   :  { %2830 = vmatpush3.bf16.msra.mxu0 %v3059_v5  ;;  %2946 = vmatpush3.bf16.msra.mxu1 %v3059_v5 }
  0x35   :  { %2831 = vmatprep.subr.bf16.mxu0 %v4252_v0  ;;  %2947 = vmatprep.subr.bf16.mxu1 %v4252_v0 }
  0x38   :  { %2832 = vmatpush3.bf16.msra.mxu0 %v3060_v6  ;;  %2948 = vmatpush3.bf16.msra.mxu1 %v3060_v6 }
  0x39   :  { %2833 = vmatprep.subr.bf16.mxu0 %v4252_v0  ;;  %2949 = vmatprep.subr.bf16.mxu1 %v4252_v0 }
  0x3a   :  { %2618 = vmatmul.mubr.bf16.gmra.mxu0 %v3069_v15  ;;  %2734 = vmatmul.mubr.bf16.gmra.mxu1 %v3070_v16 }
  0x3b   :  { %2621 = vmatprep.mubr.msk.bf16.mxu0 %vm3166_vm0, %v4252_v0  ;;  %2737 = vmatprep.mubr.msk.bf16.mxu1 %vm3166_vm0, %v4252_v0 }
  0x3c   :  { %2834 = vmatpush3.bf16.msra.mxu0 %v3061_v7  ;;  %2950 = vmatpush3.bf16.msra.mxu1 %v3061_v7  ;;  %v3113_v7 = vld [vmem:[%s4249_s0 + $0x188] sm:$0xff]  }
  0x3d   :  { %2835 = vmatprep.subr.bf16.mxu0 %v4252_v0  ;;  %2951 = vmatprep.subr.bf16.mxu1 %v4252_v0 }
  0x40   :  { %2836 = vmatpush3.bf16.msra.mxu0 %v3062_v8  ;;  %2952 = vmatpush3.bf16.msra.mxu1 %v3062_v8  ;;  %v3114_v8 = vld [vmem:[%s4249_s0 + $0x24c] sm:$0xff]  }
  0x42   :  { %2622 = vmatmul.mubr.bf16.gmra.mxu0 %v3071_v17  ;;  %2738 = vmatmul.mubr.bf16.gmra.mxu1 %v3072_v18 }
  0x43   :  { %2625 = vmatprep.mubr.msk.bf16.mxu0 %vm3166_vm0, %v4252_v0  ;;  %2741 = vmatprep.mubr.msk.bf16.mxu1 %vm3166_vm0, %v4252_v0 }
  0x4a   :  { %2626 = vmatmul.mubr.bf16.gmra.mxu0 %v3073_v19  ;;  %2742 = vmatmul.mubr.bf16.gmra.mxu1 %v3074_v20 }
  0x4b   :  { %2629 = vmatprep.mubr.msk.bf16.mxu0 %vm3166_vm0, %v4252_v0  ;;  %2745 = vmatprep.mubr.msk.bf16.mxu1 %vm3166_vm0, %v4252_v0 }
  0x52   :  { %2630 = vmatmul.mubr.bf16.gmra.mxu0 %v3075_v21  ;;  %2746 = vmatmul.mubr.bf16.gmra.mxu1 %v3076_v22 }
  0x53   :  { %2633 = vmatprep.mubr.msk.bf16.mxu0 %vm3166_vm0, %v4252_v0  ;;  %2749 = vmatprep.mubr.msk.bf16.mxu1 %vm3166_vm0, %v4252_v0 }
  0x5a   :  { %2634 = vmatmul.mubr.bf16.gmra.mxu0 %v3077_v23  ;;  %2750 = vmatmul.mubr.bf16.gmra.mxu1 %v3078_v24 }
  0x5b   :  { %2637 = vmatprep.mubr.msk.bf16.mxu0 %vm3166_vm0, %v4252_v0  ;;  %2753 = vmatprep.mubr.msk.bf16.mxu1 %vm3166_vm0, %v4252_v0 }
  0x62   :  { %2638 = vmatmul.mubr.bf16.gmra.mxu0 %v3079_v25  ;;  %2754 = vmatmul.mubr.bf16.gmra.mxu1 %v3080_v26 }
  0x63   :  { %2641 = vmatprep.mubr.msk.bf16.mxu0 %vm3166_vm0, %v4252_v0  ;;  %2757 = vmatprep.mubr.msk.bf16.mxu1 %vm3166_vm0, %v4252_v0 }
  0x6a   :  { %2642 = vmatmul.mubr.bf16.gmra.mxu0 %v3081_v27  ;;  %2758 = vmatmul.mubr.bf16.gmra.mxu1 %v3082_v28  ;;  %v3115_v27 = vld [vmem:[%s4249_s0 + $0x190] sm:$0xff]  }
  0x6b   :  { %2645 = vmatprep.mubr.msk.bf16.mxu0 %vm3166_vm0, %v4252_v0  ;;  %2761 = vmatprep.mubr.msk.bf16.mxu1 %vm3166_vm0, %v4252_v0  ;;  %v3116_v28 = vld [vmem:[%s4249_s0 + $0x254] sm:$0xff]  }
  0x72   :  { %2646 = vmatmul.mubr.bf16.gmra.mxu0 %v3083_v29  ;;  %2762 = vmatmul.mubr.bf16.gmra.mxu1 %v3084_v30 }
  0x73   :  { %2649 = vmatprep.mubr.msk.bf16.mxu0 %vm3166_vm0, %v4252_v0  ;;  %2765 = vmatprep.mubr.msk.bf16.mxu1 %vm3166_vm0, %v4252_v0 }
  0x7a   :  { %2650 = vmatmul.mubr.bf16.gmra.mxu0 %v3085_v31  ;;  %2766 = vmatmul.mubr.bf16.gmra.mxu1 %v3086_v32 }
  0x7b   :  { %2653 = vmatprep.mubr.msk.bf16.mxu0 %vm3166_vm0, %v4252_v0  ;;  %2769 = vmatprep.mubr.msk.bf16.mxu1 %vm3166_vm0, %v4252_v0 }
  0x82   :  { %2654 = vmatmul.mubr.bf16.gmra.mxu0 %v3087_v33  ;;  %2770 = vmatmul.mubr.bf16.gmra.mxu1 %v3088_v34 }
  0x83   :  { %2657 = vmatprep.mubr.msk.bf16.mxu0 %vm3166_vm0, %v4252_v0  ;;  %2773 = vmatprep.mubr.msk.bf16.mxu1 %vm3166_vm0, %v4252_v0 }
  0x8a   :  { %2658 = vmatmul.mubr.bf16.gmra.mxu0 %v3089_v35  ;;  %2774 = vmatmul.mubr.bf16.gmra.mxu1 %v3090_v36 }
  0x8b   :  { %2661 = vmatprep.mubr.msk.bf16.mxu0 %vm3166_vm0, %v4252_v0  ;;  %2777 = vmatprep.mubr.msk.bf16.mxu1 %vm3166_vm0, %v4252_v0 }
  0x92   :  { %2662 = vmatmul.mubr.bf16.gmra.mxu0 %v3091_v37  ;;  %2778 = vmatmul.mubr.bf16.gmra.mxu1 %v3092_v38 }
  0x93   :  { %2665 = vmatprep.mubr.msk.bf16.mxu0 %vm3166_vm0, %v4252_v0  ;;  %2781 = vmatprep.mubr.msk.bf16.mxu1 %vm3166_vm0, %v4252_v0 }
  0x9a   :  { %2666 = vmatmul.mubr.bf16.gmra.mxu0 %v3093_v39  ;;  %2782 = vmatmul.mubr.bf16.gmra.mxu1 %v3094_v40 }
  0x9b   :  { %2669 = vmatprep.mubr.msk.bf16.mxu0 %vm3166_vm0, %v4252_v0  ;;  %2785 = vmatprep.mubr.msk.bf16.mxu1 %vm3166_vm0, %v4252_v0 }
  0xa2   :  { %2670 = vmatmul.mubr.bf16.gmra.mxu0 %v3095_v41  ;;  %2786 = vmatmul.mubr.bf16.gmra.mxu1 %v3096_v42 }
  0xa3   :  { %2673 = vmatprep.mubr.msk.bf16.mxu0 %vm3166_vm0, %v4252_v0  ;;  %2789 = vmatprep.mubr.msk.bf16.mxu1 %vm3166_vm0, %v4252_v0 }
  0xaa   :  { %2674 = vmatmul.mubr.bf16.gmra.mxu0 %v3097_v43  ;;  %2790 = vmatmul.mubr.bf16.gmra.mxu1 %v3098_v44 }
  0xab   :  { %2677 = vmatprep.mubr.msk.bf16.mxu0 %vm3166_vm0, %v4252_v0  ;;  %2793 = vmatprep.mubr.msk.bf16.mxu1 %vm3166_vm0, %v4252_v0 }
  0xb2   :  { %2678 = vmatmul.mubr.bf16.gmra.mxu0 %v3099_v45  ;;  %2794 = vmatmul.mubr.bf16.gmra.mxu1 %v3100_v46 }
  0xb3   :  { %2681 = vmatprep.mubr.msk.bf16.mxu0 %vm3166_vm0, %v4252_v0  ;;  %2797 = vmatprep.mubr.msk.bf16.mxu1 %vm3166_vm0, %v4252_v0 }
  0xba   :  { %2682 = vmatmul.mubr.bf16.gmra.mxu0 %v3101_v47  ;;  %2798 = vmatmul.mubr.bf16.gmra.mxu1 %v3102_v48  ;;  %v3117_v47 = vld [vmem:[%s4249_s0 + $0x198] sm:$0xff]  }
  0xbb   :  { %2685 = vmatprep.mubr.msk.bf16.mxu0 %vm3166_vm0, %v4252_v0  ;;  %2801 = vmatprep.mubr.msk.bf16.mxu1 %vm3166_vm0, %v4252_v0  ;;  %v3118_v48 = vld [vmem:[%s4249_s0 + $0x25c] sm:$0xff]  }
  0xc2   :  { %2686 = vmatmul.mubr.bf16.gmra.mxu0 %v3103_v49  ;;  %2802 = vmatmul.mubr.bf16.gmra.mxu1 %v3104_v50 }
  0xc3   :  { %2689 = vmatprep.mubr.msk.bf16.mxu0 %vm3166_vm0, %v4252_v0  ;;  %2805 = vmatprep.mubr.msk.bf16.mxu1 %vm3166_vm0, %v4252_v0 }
  0xca   :  { %2690 = vmatmul.mubr.bf16.gmra.mxu0 %v3105_v51  ;;  %2806 = vmatmul.mubr.bf16.gmra.mxu1 %v3106_v52 }
  0xcb   :  { %2693 = vmatprep.mubr.msk.bf16.mxu0 %vm3166_vm0, %v4252_v0  ;;  %2809 = vmatprep.mubr.msk.bf16.mxu1 %vm3166_vm0, %v4252_v0 }
  0xd2   :  { %2694 = vmatmul.mubr.bf16.gmra.mxu0 %v3107_v53  ;;  %2810 = vmatmul.mubr.bf16.gmra.mxu1 %v3108_v54 }
  0xd3   :  { %2697 = vmatprep.mubr.msk.bf16.mxu0 %vm3166_vm0, %v4252_v0  ;;  %2813 = vmatprep.mubr.msk.bf16.mxu1 %vm3166_vm0, %v4252_v0 }
  0xda   :  { %2698 = vmatmul.mubr.bf16.gmra.mxu0 %v3109_v55  ;;  %2814 = vmatmul.mubr.bf16.gmra.mxu1 %v3110_v56 }
  0xdb   :  { %2701 = vmatprep.mubr.msk.bf16.mxu0 %vm3166_vm0, %v4252_v0  ;;  %2817 = vmatprep.mubr.msk.bf16.mxu1 %vm3166_vm0, %v4252_v0 }
  0xe2   :  { %v317_v60 = vpop.f32.mrf.mxu0  ;;  %2702 = vmatmul.mubr.bf16.gmra.mxu0 %v3111_v57  ;;  %v796_v61 = vpop.f32.mrf.mxu1  ;;  %2818 = vmatmul.mubr.bf16.gmra.mxu1 %v3112_v58 }
  0xe3   :  { %v318_v62 = vadd.f32 %v3496_v59, %v317_v60  ;;  %v797_v63 = vadd.f32 %v3496_v59, %v796_v61  ;;  %2837 = vmatprep.mubr.msk.bf16.mxu0 %vm3166_vm0, %v4252_v0  ;;  %2953 = vmatprep.mubr.msk.bf16.mxu1 %vm3166_vm0, %v4252_v0 }
  0xe4   :  { %v2607_v1 = vpop.f32.mrf.mxu0  ;;  %v2723_v2 = vpop.f32.mrf.mxu1 }
  0xe5   :  { %v515_v3 = vmax.f32 %v318_v62, 0.0  ;;  %v994_v4 = vmax.f32 %v797_v63, 0.0 }
  0xe6   :  { %v320_v5 = vpop.f32.mrf.mxu0  ;;  %v799_v6 = vpop.f32.mrf.mxu1 }
  0xe7   :  { %v3510_v9 = vmax.f32 %v515_v3, %v994_v4  ;;  %v321_v10 = vadd.f32 %v3496_v59, %v320_v5  ;;  %v800_v11 = vadd.f32 %v3496_v59, %v799_v6  ;;  %v3119_v5 = vld [vmem:[%s4249_s0 + $0x1a0] sm:$0xff]  }
  0xe8   :  { %v2608_v12 = vpop.f32.mrf.mxu0  ;;  %v2724_v13 = vpop.f32.mrf.mxu1  ;;  %v3120_v6 = vld [vmem:[%s4249_s0 + $0x264] sm:$0xff]  }
  0xe9   :  { %v516_v14 = vmax.f32 %v321_v10, 0.0  ;;  %v995_v15 = vmax.f32 %v800_v11, 0.0 }
  0xea   :  { %v325_v16 = vpop.f32.mrf.mxu0  ;;  %v804_v17 = vpop.f32.mrf.mxu1  ;;  %2838 = vmatmul.mubr.bf16.vlgmr.msra.gmra.mxu0 %v3113_v7  ;;  %2954 = vmatmul.mubr.bf16.vlgmr.msra.gmra.mxu1 %v3114_v8 }
  0xeb   :  { %v3514_v18 = vmax.f32 %v516_v14, %v995_v15  ;;  %v326_v19 = vadd.f32 %v3496_v59, %v325_v16  ;;  %v805_v20 = vadd.f32 %v3496_v59, %v804_v17  ;;  %2841 = vmatprep.mubr.msk.bf16.mxu0 %vm3166_vm0, %v4252_v0  ;;  %2957 = vmatprep.mubr.msk.bf16.mxu1 %vm3166_vm0, %v4252_v0 }
  0xec   :  { %v2611_v21 = vpop.f32.mrf.mxu0  ;;  %v2727_v22 = vpop.f32.mrf.mxu1 }
  0xed   :  { %v517_v23 = vmax.f32 %v326_v19, 0.0  ;;  %v996_v24 = vmax.f32 %v805_v20, 0.0 }
  0xee   :  { %v328_v25 = vpop.f32.mrf.mxu0  ;;  %v807_v26 = vpop.f32.mrf.mxu1 }
  0xef   :  { %v3528_v29 = vmax.f32 %v517_v23, %v996_v24  ;;  %v329_v30 = vadd.f32 %v3496_v59, %v328_v25  ;;  %v808_v31 = vadd.f32 %v3496_v59, %v807_v26 }
  0xf0   :  { %v2612_v32 = vpop.f32.mrf.mxu0  ;;  %v2728_v33 = vpop.f32.mrf.mxu1 }
  0xf1   :  { %v518_v34 = vmax.f32 %v329_v30, 0.0  ;;  %v997_v35 = vmax.f32 %v808_v31, 0.0 }
  0xf2   :  { %v333_v36 = vpop.f32.mrf.mxu0  ;;  %v812_v37 = vpop.f32.mrf.mxu1  ;;  %2842 = vmatmul.mubr.bf16.gmra.mxu0 %v3115_v27  ;;  %2958 = vmatmul.mubr.bf16.gmra.mxu1 %v3116_v28  ;;  %v3121_v27 = vld [vmem:[%s4249_s0 + $0x1a8] sm:$0xff]  }
  0xf3   :  { %v3532_v38 = vmax.f32 %v518_v34, %v997_v35  ;;  %v334_v39 = vadd.f32 %v3496_v59, %v333_v36  ;;  %v813_v40 = vadd.f32 %v3496_v59, %v812_v37  ;;  %2845 = vmatprep.mubr.msk.bf16.mxu0 %vm3166_vm0, %v4252_v0  ;;  %2961 = vmatprep.mubr.msk.bf16.mxu1 %vm3166_vm0, %v4252_v0  ;;  %v3122_v28 = vld [vmem:[%s4249_s0 + $0x26c] sm:$0xff]  }
  0xf4   :  { %v2615_v41 = vpop.f32.mrf.mxu0  ;;  %v2731_v42 = vpop.f32.mrf.mxu1 }
  0xf5   :  { %v519_v43 = vmax.f32 %v334_v39, 0.0  ;;  %v998_v44 = vmax.f32 %v813_v40, 0.0 }
  0xf6   :  { %v336_v45 = vpop.f32.mrf.mxu0  ;;  %v815_v46 = vpop.f32.mrf.mxu1 }
  0xf7   :  { %v3546_v49 = vmax.f32 %v519_v43, %v998_v44  ;;  %v337_v50 = vadd.f32 %v3496_v59, %v336_v45  ;;  %v816_v51 = vadd.f32 %v3496_v59, %v815_v46 }
  0xf8   :  { %v2616_v52 = vpop.f32.mrf.mxu0  ;;  %v2732_v53 = vpop.f32.mrf.mxu1 }
  0xf9   :  { %v520_v54 = vmax.f32 %v337_v50, 0.0  ;;  %v999_v55 = vmax.f32 %v816_v51, 0.0  ;;  %v3123_v50 = vld [vmem:[%s4249_s0 + $0x1b0] sm:$0xff]  }
  0xfa   :  { %v341_v56 = vpop.f32.mrf.mxu0  ;;  %v820_v57 = vpop.f32.mrf.mxu1  ;;  %2846 = vmatmul.mubr.bf16.gmra.mxu0 %v3117_v47  ;;  %2962 = vmatmul.mubr.bf16.gmra.mxu1 %v3118_v48  ;;  %v3124_v51 = vld [vmem:[%s4249_s0 + $0x274] sm:$0xff]  }
  0xfb   :  { %v3550_v58 = vmax.f32 %v520_v54, %v999_v55  ;;  %v342_v60 = vadd.f32 %v3496_v59, %v341_v56  ;;  %v821_v61 = vadd.f32 %v3496_v59, %v820_v57  ;;  %2849 = vmatprep.mubr.msk.bf16.mxu0 %vm3166_vm0, %v4252_v0  ;;  %2965 = vmatprep.mubr.msk.bf16.mxu1 %vm3166_vm0, %v4252_v0 }
  0xfc   :  { %v2619_v62 = vpop.f32.mrf.mxu0  ;;  %v2735_v63 = vpop.f32.mrf.mxu1 }
  0xfd   :  { %v521_v1 = vmax.f32 %v342_v60, 0.0  ;;  %v1000_v2 = vmax.f32 %v821_v61, 0.0 }
  0xfe   :  { %v344_v3 = vpop.f32.mrf.mxu0  ;;  %v823_v4 = vpop.f32.mrf.mxu1 }
  0xff   :  { %v3564_v7 = vmax.f32 %v521_v1, %v1000_v2  ;;  %v345_v8 = vadd.f32 %v3496_v59, %v344_v3  ;;  %v824_v10 = vadd.f32 %v3496_v59, %v823_v4 }
 0x100   :  { %v2620_v11 = vpop.f32.mrf.mxu0  ;;  %v2736_v12 = vpop.f32.mrf.mxu1 }
 0x101   :  { %v522_v13 = vmax.f32 %v345_v8, 0.0  ;;  %v1001_v14 = vmax.f32 %v824_v10, 0.0  ;;  %v3125_v11 = vld [vmem:[%s4249_s0 + $0x1b8] sm:$0xff]  }
 0x102   :  { %v349_v15 = vpop.f32.mrf.mxu0  ;;  %v828_v16 = vpop.f32.mrf.mxu1  ;;  %2850 = vmatmul.mubr.bf16.gmra.mxu0 %v3119_v5  ;;  %2966 = vmatmul.mubr.bf16.gmra.mxu1 %v3120_v6  ;;  %v3126_v12 = vld [vmem:[%s4249_s0 + $0x27c] sm:$0xff]  }
 0x103   :  { %v3568_v17 = vmax.f32 %v522_v13, %v1001_v14  ;;  %v350_v19 = vadd.f32 %v3496_v59, %v349_v15  ;;  %v829_v20 = vadd.f32 %v3496_v59, %v828_v16  ;;  %2853 = vmatprep.mubr.msk.bf16.mxu0 %vm3166_vm0, %v4252_v0  ;;  %2969 = vmatprep.mubr.msk.bf16.mxu1 %vm3166_vm0, %v4252_v0 }
 0x104   :  { %v2623_v21 = vpop.f32.mrf.mxu0  ;;  %v2739_v22 = vpop.f32.mrf.mxu1 }
 0x105   :  { %v523_v23 = vmax.f32 %v350_v19, 0.0  ;;  %v1002_v24 = vmax.f32 %v829_v20, 0.0 }
 0x106   :  { %v352_v25 = vpop.f32.mrf.mxu0  ;;  %v831_v26 = vpop.f32.mrf.mxu1 }
 0x107   :  { %v3582_v30 = vmax.f32 %v523_v23, %v1002_v24  ;;  %v353_v31 = vadd.f32 %v3496_v59, %v352_v25  ;;  %v832_v32 = vadd.f32 %v3496_v59, %v831_v26 }
 0x108   :  { %v2624_v33 = vpop.f32.mrf.mxu0  ;;  %v2740_v34 = vpop.f32.mrf.mxu1 }
 0x109   :  { %v524_v35 = vmax.f32 %v353_v31, 0.0  ;;  %v1003_v36 = vmax.f32 %v832_v32, 0.0 }
 0x10a   :  { %v357_v37 = vpop.f32.mrf.mxu0  ;;  %v836_v39 = vpop.f32.mrf.mxu1  ;;  %2854 = vmatmul.mubr.bf16.gmra.mxu0 %v3121_v27  ;;  %2970 = vmatmul.mubr.bf16.gmra.mxu1 %v3122_v28 }
 0x10b   :  { %v3586_v40 = vmax.f32 %v524_v35, %v1003_v36  ;;  %v358_v41 = vadd.f32 %v3496_v59, %v357_v37  ;;  %v837_v42 = vadd.f32 %v3496_v59, %v836_v39  ;;  %2857 = vmatprep.mubr.msk.bf16.mxu0 %vm3166_vm0, %v4252_v0  ;;  %2973 = vmatprep.mubr.msk.bf16.mxu1 %vm3166_vm0, %v4252_v0  ;;  %v3127_v35 = vld [vmem:[%s4249_s0 + $0x1c0] sm:$0xff]  }
 0x10c   :  { %v2627_v43 = vpop.f32.mrf.mxu0  ;;  %v2743_v44 = vpop.f32.mrf.mxu1  ;;  %v3128_v36 = vld [vmem:[%s4249_s0 + $0x284] sm:$0xff]  }
 0x10d   :  { %v525_v45 = vmax.f32 %v358_v41, 0.0  ;;  %v1004_v46 = vmax.f32 %v837_v42, 0.0 }
 0x10e   :  { %v360_v47 = vpop.f32.mrf.mxu0  ;;  %v839_v48 = vpop.f32.mrf.mxu1 }
 0x10f   :  { %v3600_v52 = vmax.f32 %v525_v45, %v1004_v46  ;;  %v361_v53 = vadd.f32 %v3496_v59, %v360_v47  ;;  %v840_v54 = vadd.f32 %v3496_v59, %v839_v48 }
 0x110   :  { %v2628_v55 = vpop.f32.mrf.mxu0  ;;  %v2744_v56 = vpop.f32.mrf.mxu1 }
 0x111   :  { %v526_v57 = vmax.f32 %v361_v53, 0.0  ;;  %v1005_v60 = vmax.f32 %v840_v54, 0.0 }
 0x112   :  { %v365_v61 = vpop.f32.mrf.mxu0  ;;  %v844_v62 = vpop.f32.mrf.mxu1  ;;  %2858 = vmatmul.mubr.bf16.gmra.mxu0 %v3123_v50  ;;  %2974 = vmatmul.mubr.bf16.gmra.mxu1 %v3124_v51 }
 0x113   :  { %v3604_v63 = vmax.f32 %v526_v57, %v1005_v60  ;;  %v366_v1 = vadd.f32 %v3496_v59, %v365_v61  ;;  %v845_v2 = vadd.f32 %v3496_v59, %v844_v62  ;;  %2861 = vmatprep.mubr.msk.bf16.mxu0 %vm3166_vm0, %v4252_v0  ;;  %2977 = vmatprep.mubr.msk.bf16.mxu1 %vm3166_vm0, %v4252_v0  ;;  %v3129_v61 = vld [vmem:[%s4249_s0 + $0x1c8] sm:$0xff]  }
 0x114   :  { %v2631_v3 = vpop.f32.mrf.mxu0  ;;  %v2747_v4 = vpop.f32.mrf.mxu1  ;;  %v3130_v62 = vld [vmem:[%s4249_s0 + $0x28c] sm:$0xff]  }
 0x115   :  { %v527_v5 = vmax.f32 %v366_v1, 0.0  ;;  %v1006_v6 = vmax.f32 %v845_v2, 0.0 }
 0x116   :  { %v368_v8 = vpop.f32.mrf.mxu0  ;;  %v847_v10 = vpop.f32.mrf.mxu1 }
 0x117   :  { %v3618_v13 = vmax.f32 %v527_v5, %v1006_v6  ;;  %v369_v14 = vadd.f32 %v3496_v59, %v368_v8  ;;  %v848_v15 = vadd.f32 %v3496_v59, %v847_v10 }
 0x118   :  { %v2632_v16 = vpop.f32.mrf.mxu0  ;;  %v2748_v19 = vpop.f32.mrf.mxu1 }
 0x119   :  { %v528_v20 = vmax.f32 %v369_v14, 0.0  ;;  %v1007_v21 = vmax.f32 %v848_v15, 0.0 }
 0x11a   :  { %v373_v22 = vpop.f32.mrf.mxu0  ;;  %v852_v23 = vpop.f32.mrf.mxu1  ;;  %2862 = vmatmul.mubr.bf16.gmra.mxu0 %v3125_v11  ;;  %2978 = vmatmul.mubr.bf16.gmra.mxu1 %v3126_v12 }
 0x11b   :  { %v3622_v24 = vmax.f32 %v528_v20, %v1007_v21  ;;  %v374_v25 = vadd.f32 %v3496_v59, %v373_v22  ;;  %v853_v26 = vadd.f32 %v3496_v59, %v852_v23  ;;  %2865 = vmatprep.mubr.msk.bf16.mxu0 %vm3166_vm0, %v4252_v0  ;;  %2981 = vmatprep.mubr.msk.bf16.mxu1 %vm3166_vm0, %v4252_v0 }
 0x11c   :  { %v2635_v27 = vpop.f32.mrf.mxu0  ;;  %v2751_v28 = vpop.f32.mrf.mxu1 }
 0x11d   :  { %v529_v31 = vmax.f32 %v374_v25, 0.0  ;;  %v1008_v32 = vmax.f32 %v853_v26, 0.0  ;;  %v3131_v25 = vld [vmem:[%s4249_s0 + $0x1d0] sm:$0xff]  }
 0x11e   :  { %v376_v33 = vpop.f32.mrf.mxu0  ;;  %v855_v34 = vpop.f32.mrf.mxu1  ;;  %v3132_v26 = vld [vmem:[%s4249_s0 + $0x294] sm:$0xff]  }
 0x11f   :  { %v3636_v37 = vmax.f32 %v529_v31, %v1008_v32  ;;  %v377_v39 = vadd.f32 %v3496_v59, %v376_v33  ;;  %v856_v41 = vadd.f32 %v3496_v59, %v855_v34 }
 0x120   :  { %v2636_v42 = vpop.f32.mrf.mxu0  ;;  %v2752_v43 = vpop.f32.mrf.mxu1 }
 0x121   :  { %v530_v44 = vmax.f32 %v377_v39, 0.0  ;;  %v1009_v45 = vmax.f32 %v856_v41, 0.0 }
 0x122   :  { %v381_v46 = vpop.f32.mrf.mxu0  ;;  %v860_v47 = vpop.f32.mrf.mxu1  ;;  %2866 = vmatmul.mubr.bf16.gmra.mxu0 %v3127_v35  ;;  %2982 = vmatmul.mubr.bf16.gmra.mxu1 %v3128_v36 }
 0x123   :  { %v3640_v48 = vmax.f32 %v530_v44, %v1009_v45  ;;  %v382_v50 = vadd.f32 %v3496_v59, %v381_v46  ;;  %v861_v51 = vadd.f32 %v3496_v59, %v860_v47  ;;  %2869 = vmatprep.mubr.msk.bf16.mxu0 %vm3166_vm0, %v4252_v0  ;;  %2985 = vmatprep.mubr.msk.bf16.mxu1 %vm3166_vm0, %v4252_v0 }
 0x124   :  { %v2639_v53 = vpop.f32.mrf.mxu0  ;;  %v2755_v54 = vpop.f32.mrf.mxu1 }
 0x125   :  { %v531_v55 = vmax.f32 %v382_v50, 0.0  ;;  %v1010_v56 = vmax.f32 %v861_v51, 0.0  ;;  %v3133_v53 = vld [vmem:[%s4249_s0 + $0x1d8] sm:$0xff]  }
 0x126   :  { %v384_v57 = vpop.f32.mrf.mxu0  ;;  %v863_v60 = vpop.f32.mrf.mxu1  ;;  %v3134_v54 = vld [vmem:[%s4249_s0 + $0x29c] sm:$0xff]  }
 0x127   :  { %v3654_v1 = vmax.f32 %v531_v55, %v1010_v56  ;;  %v385_v2 = vadd.f32 %v3496_v59, %v384_v57  ;;  %v864_v3 = vadd.f32 %v3496_v59, %v863_v60 }
 0x128   :  { %v2640_v4 = vpop.f32.mrf.mxu0  ;;  %v2756_v5 = vpop.f32.mrf.mxu1 }
 0x129   :  { %v532_v6 = vmax.f32 %v385_v2, 0.0  ;;  %v1011_v8 = vmax.f32 %v864_v3, 0.0 }
 0x12a   :  { %v389_v10 = vpop.f32.mrf.mxu0  ;;  %v868_v11 = vpop.f32.mrf.mxu1  ;;  %2870 = vmatmul.mubr.bf16.gmra.mxu0 %v3129_v61  ;;  %2986 = vmatmul.mubr.bf16.gmra.mxu1 %v3130_v62 }
 0x12b   :  { %v3658_v12 = vmax.f32 %v532_v6, %v1011_v8  ;;  %v390_v14 = vadd.f32 %v3496_v59, %v389_v10  ;;  %v869_v15 = vadd.f32 %v3496_v59, %v868_v11  ;;  %2873 = vmatprep.mubr.msk.bf16.mxu0 %vm3166_vm0, %v4252_v0  ;;  %2989 = vmatprep.mubr.msk.bf16.mxu1 %vm3166_vm0, %v4252_v0 }
 0x12c   :  { %v2643_v16 = vpop.f32.mrf.mxu0  ;;  %v2759_v19 = vpop.f32.mrf.mxu1 }
 0x12d   :  { %v533_v20 = vmax.f32 %v390_v14, 0.0  ;;  %v1012_v21 = vmax.f32 %v869_v15, 0.0 }
 0x12e   :  { %v392_v22 = vpop.f32.mrf.mxu0  ;;  %v871_v23 = vpop.f32.mrf.mxu1 }
 0x12f   :  { %v3672_v27 = vmax.f32 %v533_v20, %v1012_v21  ;;  %v393_v28 = vadd.f32 %v3496_v59, %v392_v22  ;;  %v872_v31 = vadd.f32 %v3496_v59, %v871_v23  ;;  %v3135_v20 = vld [vmem:[%s4249_s0 + $0x1e0] sm:$0xff]  }
 0x130   :  { %v2644_v32 = vpop.f32.mrf.mxu0  ;;  %v2760_v33 = vpop.f32.mrf.mxu1  ;;  %v3136_v21 = vld [vmem:[%s4249_s0 + $0x2a4] sm:$0xff]  }
 0x131   :  { %v534_v34 = vmax.f32 %v393_v28, 0.0  ;;  %v1013_v35 = vmax.f32 %v872_v31, 0.0 }
 0x132   :  { %v397_v36 = vpop.f32.mrf.mxu0  ;;  %v876_v39 = vpop.f32.mrf.mxu1  ;;  %2874 = vmatmul.mubr.bf16.gmra.mxu0 %v3131_v25  ;;  %2990 = vmatmul.mubr.bf16.gmra.mxu1 %v3132_v26 }
 0x133   :  { %v3676_v41 = vmax.f32 %v534_v34, %v1013_v35  ;;  %v398_v42 = vadd.f32 %v3496_v59, %v397_v36  ;;  %v877_v43 = vadd.f32 %v3496_v59, %v876_v39  ;;  %2877 = vmatprep.mubr.msk.bf16.mxu0 %vm3166_vm0, %v4252_v0  ;;  %2993 = vmatprep.mubr.msk.bf16.mxu1 %vm3166_vm0, %v4252_v0 }
 0x134   :  { %v2647_v44 = vpop.f32.mrf.mxu0  ;;  %v2763_v45 = vpop.f32.mrf.mxu1 }
 0x135   :  { %v535_v46 = vmax.f32 %v398_v42, 0.0  ;;  %v1014_v47 = vmax.f32 %v877_v43, 0.0 }
 0x136   :  { %v400_v50 = vpop.f32.mrf.mxu0  ;;  %v879_v51 = vpop.f32.mrf.mxu1 }
 0x137   :  { %v3690_v55 = vmax.f32 %v535_v46, %v1014_v47  ;;  %v401_v56 = vadd.f32 %v3496_v59, %v400_v50  ;;  %v880_v57 = vadd.f32 %v3496_v59, %v879_v51  ;;  %v3137_v50 = vld [vmem:[%s4249_s0 + $0x1e8] sm:$0xff]  }
 0x138   :  { %v2648_v60 = vpop.f32.mrf.mxu0  ;;  %v2764_v61 = vpop.f32.mrf.mxu1  ;;  %v3138_v51 = vld [vmem:[%s4249_s0 + $0x2ac] sm:$0xff]  }
 0x139   :  { %v536_v62 = vmax.f32 %v401_v56, 0.0  ;;  %v1015_v2 = vmax.f32 %v880_v57, 0.0 }
 0x13a   :  { %v405_v3 = vpop.f32.mrf.mxu0  ;;  %v884_v4 = vpop.f32.mrf.mxu1  ;;  %2878 = vmatmul.mubr.bf16.gmra.mxu0 %v3133_v53  ;;  %2994 = vmatmul.mubr.bf16.gmra.mxu1 %v3134_v54 }
 0x13b   :  { %v3694_v5 = vmax.f32 %v536_v62, %v1015_v2  ;;  %v406_v6 = vadd.f32 %v3496_v59, %v405_v3  ;;  %v885_v8 = vadd.f32 %v3496_v59, %v884_v4  ;;  %2881 = vmatprep.mubr.msk.bf16.mxu0 %vm3166_vm0, %v4252_v0  ;;  %2997 = vmatprep.mubr.msk.bf16.mxu1 %vm3166_vm0, %v4252_v0 }
 0x13c   :  { %v2651_v10 = vpop.f32.mrf.mxu0  ;;  %v2767_v11 = vpop.f32.mrf.mxu1 }
 0x13d   :  { %v537_v14 = vmax.f32 %v406_v6, 0.0  ;;  %v1016_v15 = vmax.f32 %v885_v8, 0.0 }
 0x13e   :  { %v408_v16 = vpop.f32.mrf.mxu0  ;;  %v887_v19 = vpop.f32.mrf.mxu1 }
 0x13f   :  { %v3708_v22 = vmax.f32 %v537_v14, %v1016_v15  ;;  %v409_v23 = vadd.f32 %v3496_v59, %v408_v16  ;;  %v888_v25 = vadd.f32 %v3496_v59, %v887_v19 }
 0x140   :  { %v2652_v26 = vpop.f32.mrf.mxu0  ;;  %v2768_v28 = vpop.f32.mrf.mxu1 }
 0x141   :  { %v538_v31 = vmax.f32 %v409_v23, 0.0  ;;  %v1017_v32 = vmax.f32 %v888_v25, 0.0 }
 0x142   :  { %v413_v33 = vpop.f32.mrf.mxu0  ;;  %v892_v34 = vpop.f32.mrf.mxu1  ;;  %2882 = vmatmul.mubr.bf16.gmra.mxu0 %v3135_v20  ;;  %2998 = vmatmul.mubr.bf16.gmra.mxu1 %v3136_v21  ;;  %v3139_v20 = vld [vmem:[%s4249_s0 + $0x1f0] sm:$0xff]  }
 0x143   :  { %v3712_v35 = vmax.f32 %v538_v31, %v1017_v32  ;;  %v414_v36 = vadd.f32 %v3496_v59, %v413_v33  ;;  %v893_v39 = vadd.f32 %v3496_v59, %v892_v34  ;;  %2885 = vmatprep.mubr.msk.bf16.mxu0 %vm3166_vm0, %v4252_v0  ;;  %3001 = vmatprep.mubr.msk.bf16.mxu1 %vm3166_vm0, %v4252_v0  ;;  %v3140_v21 = vld [vmem:[%s4249_s0 + $0x2b4] sm:$0xff]  }
 0x144   :  { %v2655_v42 = vpop.f32.mrf.mxu0  ;;  %v2771_v43 = vpop.f32.mrf.mxu1 }
 0x145   :  { %v539_v44 = vmax.f32 %v414_v36, 0.0  ;;  %v1018_v45 = vmax.f32 %v893_v39, 0.0 }
 0x146   :  { %v416_v46 = vpop.f32.mrf.mxu0  ;;  %v895_v47 = vpop.f32.mrf.mxu1 }
 0x147   :  { %v3726_v53 = vmax.f32 %v539_v44, %v1018_v45  ;;  %v417_v54 = vadd.f32 %v3496_v59, %v416_v46  ;;  %v896_v56 = vadd.f32 %v3496_v59, %v895_v47 }
 0x148   :  { %v2656_v57 = vpop.f32.mrf.mxu0  ;;  %v2772_v60 = vpop.f32.mrf.mxu1 }
 0x149   :  { %v540_v61 = vmax.f32 %v417_v54, 0.0  ;;  %v1019_v62 = vmax.f32 %v896_v56, 0.0  ;;  %v3141_v54 = vld [vmem:[%s4249_s0 + $0x1f8] sm:$0xff]  }
 0x14a   :  { %v421_v2 = vpop.f32.mrf.mxu0  ;;  %v900_v3 = vpop.f32.mrf.mxu1  ;;  %2886 = vmatmul.mubr.bf16.gmra.mxu0 %v3137_v50  ;;  %3002 = vmatmul.mubr.bf16.gmra.mxu1 %v3138_v51  ;;  %v3142_v56 = vld [vmem:[%s4249_s0 + $0x2bc] sm:$0xff]  }
 0x14b   :  { %v3730_v4 = vmax.f32 %v540_v61, %v1019_v62  ;;  %v422_v6 = vadd.f32 %v3496_v59, %v421_v2  ;;  %v901_v8 = vadd.f32 %v3496_v59, %v900_v3  ;;  %2889 = vmatprep.mubr.msk.bf16.mxu0 %vm3166_vm0, %v4252_v0  ;;  %3005 = vmatprep.mubr.msk.bf16.mxu1 %vm3166_vm0, %v4252_v0 }
 0x14c   :  { %v2659_v10 = vpop.f32.mrf.mxu0  ;;  %v2775_v11 = vpop.f32.mrf.mxu1 }
 0x14d   :  { %v541_v14 = vmax.f32 %v422_v6, 0.0  ;;  %v1020_v15 = vmax.f32 %v901_v8, 0.0 }
 0x14e   :  { %v424_v16 = vpop.f32.mrf.mxu0  ;;  %v903_v19 = vpop.f32.mrf.mxu1 }
 0x14f   :  { %v3744_v23 = vmax.f32 %v541_v14, %v1020_v15  ;;  %v425_v25 = vadd.f32 %v3496_v59, %v424_v16  ;;  %v904_v26 = vadd.f32 %v3496_v59, %v903_v19 }
 0x150   :  { %v2660_v28 = vpop.f32.mrf.mxu0  ;;  %v2776_v31 = vpop.f32.mrf.mxu1 }
 0x151   :  { %v542_v32 = vmax.f32 %v425_v25, 0.0  ;;  %v1021_v33 = vmax.f32 %v904_v26, 0.0  ;;  %v3143_v28 = vld [vmem:[%s4249_s0 + $0x200] sm:$0xff]  }
 0x152   :  { %v429_v34 = vpop.f32.mrf.mxu0  ;;  %v908_v36 = vpop.f32.mrf.mxu1  ;;  %2890 = vmatmul.mubr.bf16.gmra.mxu0 %v3139_v20  ;;  %3006 = vmatmul.mubr.bf16.gmra.mxu1 %v3140_v21  ;;  %v3144_v31 = vld [vmem:[%s4249_s0 + $0x2c4] sm:$0xff]  }
 0x153   :  { %v3748_v39 = vmax.f32 %v542_v32, %v1021_v33  ;;  %v430_v42 = vadd.f32 %v3496_v59, %v429_v34  ;;  %v909_v43 = vadd.f32 %v3496_v59, %v908_v36  ;;  %2893 = vmatprep.mubr.msk.bf16.mxu0 %vm3166_vm0, %v4252_v0  ;;  %3009 = vmatprep.mubr.msk.bf16.mxu1 %vm3166_vm0, %v4252_v0 }
 0x154   :  { %v2663_v44 = vpop.f32.mrf.mxu0  ;;  %v2779_v45 = vpop.f32.mrf.mxu1 }
 0x155   :  { %v543_v46 = vmax.f32 %v430_v42, 0.0  ;;  %v1022_v47 = vmax.f32 %v909_v43, 0.0 }
 0x156   :  { %v432_v50 = vpop.f32.mrf.mxu0  ;;  %v911_v51 = vpop.f32.mrf.mxu1 }
 0x157   :  { %v3762_v57 = vmax.f32 %v543_v46, %v1022_v47  ;;  %v433_v60 = vadd.f32 %v3496_v59, %v432_v50  ;;  %v912_v61 = vadd.f32 %v3496_v59, %v911_v51 }
 0x158   :  { %v2664_v62 = vpop.f32.mrf.mxu0  ;;  %v2780_v2 = vpop.f32.mrf.mxu1 }
 0x159   :  { %v544_v3 = vmax.f32 %v433_v60, 0.0  ;;  %v1023_v6 = vmax.f32 %v912_v61, 0.0 }
 0x15a   :  { %v437_v8 = vpop.f32.mrf.mxu0  ;;  %v916_v10 = vpop.f32.mrf.mxu1  ;;  %2894 = vmatmul.mubr.bf16.gmra.mxu0 %v3141_v54  ;;  %3010 = vmatmul.mubr.bf16.gmra.mxu1 %v3142_v56 }
 0x15b   :  { %v3766_v11 = vmax.f32 %v544_v3, %v1023_v6  ;;  %v438_v14 = vadd.f32 %v3496_v59, %v437_v8  ;;  %v917_v15 = vadd.f32 %v3496_v59, %v916_v10  ;;  %2897 = vmatprep.mubr.msk.bf16.mxu0 %vm3166_vm0, %v4252_v0  ;;  %3013 = vmatprep.mubr.msk.bf16.mxu1 %vm3166_vm0, %v4252_v0  ;;  %v3145_v3 = vld [vmem:[%s4249_s0 + $0x208] sm:$0xff]  }
 0x15c   :  { %v2667_v16 = vpop.f32.mrf.mxu0  ;;  %v2783_v19 = vpop.f32.mrf.mxu1  ;;  %v3146_v6 = vld [vmem:[%s4249_s0 + $0x2cc] sm:$0xff]  }
 0x15d   :  { %v545_v20 = vmax.f32 %v438_v14, 0.0  ;;  %v1024_v21 = vmax.f32 %v917_v15, 0.0 }
 0x15e   :  { %v440_v25 = vpop.f32.mrf.mxu0  ;;  %v919_v26 = vpop.f32.mrf.mxu1 }
 0x15f   :  { %v3780_v32 = vmax.f32 %v545_v20, %v1024_v21  ;;  %v441_v33 = vadd.f32 %v3496_v59, %v440_v25  ;;  %v920_v34 = vadd.f32 %v3496_v59, %v919_v26 }
 0x160   :  { %v2668_v36 = vpop.f32.mrf.mxu0  ;;  %v2784_v42 = vpop.f32.mrf.mxu1 }
 0x161   :  { %v546_v43 = vmax.f32 %v441_v33, 0.0  ;;  %v1025_v44 = vmax.f32 %v920_v34, 0.0 }
 0x162   :  { %v445_v45 = vpop.f32.mrf.mxu0  ;;  %v924_v46 = vpop.f32.mrf.mxu1  ;;  %2898 = vmatmul.mubr.bf16.gmra.mxu0 %v3143_v28  ;;  %3014 = vmatmul.mubr.bf16.gmra.mxu1 %v3144_v31 }
 0x163   :  { %v3784_v47 = vmax.f32 %v546_v43, %v1025_v44  ;;  %v446_v50 = vadd.f32 %v3496_v59, %v445_v45  ;;  %v925_v51 = vadd.f32 %v3496_v59, %v924_v46  ;;  %2901 = vmatprep.mubr.msk.bf16.mxu0 %vm3166_vm0, %v4252_v0  ;;  %3017 = vmatprep.mubr.msk.bf16.mxu1 %vm3166_vm0, %v4252_v0  ;;  %v3147_v45 = vld [vmem:[%s4249_s0 + $0x210] sm:$0xff]  }
 0x164   :  { %v2671_v54 = vpop.f32.mrf.mxu0  ;;  %v2787_v56 = vpop.f32.mrf.mxu1  ;;  %v3148_v46 = vld [vmem:[%s4249_s0 + $0x2d4] sm:$0xff]  }
 0x165   :  { %v547_v60 = vmax.f32 %v446_v50, 0.0  ;;  %v1026_v61 = vmax.f32 %v925_v51, 0.0 }
 0x166   :  { %v448_v62 = vpop.f32.mrf.mxu0  ;;  %v927_v2 = vpop.f32.mrf.mxu1 }
 0x167   :  { %v3798_v8 = vmax.f32 %v547_v60, %v1026_v61  ;;  %v449_v10 = vadd.f32 %v3496_v59, %v448_v62  ;;  %v928_v14 = vadd.f32 %v3496_v59, %v927_v2 }
 0x168   :  { %v2672_v15 = vpop.f32.mrf.mxu0  ;;  %v2788_v16 = vpop.f32.mrf.mxu1 }
 0x169   :  { %v548_v19 = vmax.f32 %v449_v10, 0.0  ;;  %v1027_v20 = vmax.f32 %v928_v14, 0.0 }
 0x16a   :  { %v453_v21 = vpop.f32.mrf.mxu0  ;;  %v932_v25 = vpop.f32.mrf.mxu1  ;;  %2902 = vmatmul.mubr.bf16.gmra.mxu0 %v3145_v3  ;;  %3018 = vmatmul.mubr.bf16.gmra.mxu1 %v3146_v6 }
 0x16b   :  { %v3802_v26 = vmax.f32 %v548_v19, %v1027_v20  ;;  %v454_v28 = vadd.f32 %v3496_v59, %v453_v21  ;;  %v933_v31 = vadd.f32 %v3496_v59, %v932_v25  ;;  %2905 = vmatprep.mubr.msk.bf16.mxu0 %vm3166_vm0, %v4252_v0  ;;  %3021 = vmatprep.mubr.msk.bf16.mxu1 %vm3166_vm0, %v4252_v0 }
 0x16c   :  { %v2675_v33 = vpop.f32.mrf.mxu0  ;;  %v2791_v34 = vpop.f32.mrf.mxu1 }
 0x16d   :  { %v549_v36 = vmax.f32 %v454_v28, 0.0  ;;  %v1028_v42 = vmax.f32 %v933_v31, 0.0  ;;  %v3149_v28 = vld [vmem:[%s4249_s0 + $0x218] sm:$0xff]  }
 0x16e   :  { %v456_v43 = vpop.f32.mrf.mxu0  ;;  %v935_v44 = vpop.f32.mrf.mxu1  ;;  %v3150_v31 = vld [vmem:[%s4249_s0 + $0x2dc] sm:$0xff]  }
 0x16f   :  { %v3816_v50 = vmax.f32 %v549_v36, %v1028_v42  ;;  %v457_v51 = vadd.f32 %v3496_v59, %v456_v43  ;;  %v936_v54 = vadd.f32 %v3496_v59, %v935_v44 }
 0x170   :  { %v2676_v56 = vpop.f32.mrf.mxu0  ;;  %v2792_v60 = vpop.f32.mrf.mxu1 }
 0x171   :  { %v550_v61 = vmax.f32 %v457_v51, 0.0  ;;  %v1029_v62 = vmax.f32 %v936_v54, 0.0 }
 0x172   :  { %v461_v2 = vpop.f32.mrf.mxu0  ;;  %v940_v3 = vpop.f32.mrf.mxu1  ;;  %2906 = vmatmul.mubr.bf16.gmra.mxu0 %v3147_v45  ;;  %3022 = vmatmul.mubr.bf16.gmra.mxu1 %v3148_v46 }
 0x173   :  { %v3820_v6 = vmax.f32 %v550_v61, %v1029_v62  ;;  %v462_v10 = vadd.f32 %v3496_v59, %v461_v2  ;;  %v941_v14 = vadd.f32 %v3496_v59, %v940_v3  ;;  %2909 = vmatprep.mubr.msk.bf16.mxu0 %vm3166_vm0, %v4252_v0  ;;  %3025 = vmatprep.mubr.msk.bf16.mxu1 %vm3166_vm0, %v4252_v0 }
 0x174   :  { %v2679_v15 = vpop.f32.mrf.mxu0  ;;  %v2795_v16 = vpop.f32.mrf.mxu1 }
 0x175   :  { %v551_v19 = vmax.f32 %v462_v10, 0.0  ;;  %v1030_v20 = vmax.f32 %v941_v14, 0.0  ;;  %v3151_v15 = vld [vmem:[%s4249_s0 + $0x220] sm:$0xff]  }
 0x176   :  { %v464_v21 = vpop.f32.mrf.mxu0  ;;  %v943_v25 = vpop.f32.mrf.mxu1  ;;  %v3152_v16 = vld [vmem:[%s4249_s0 + $0x2e4] sm:$0xff]  }
 0x177   :  { %v3834_v33 = vmax.f32 %v551_v19, %v1030_v20  ;;  %v465_v34 = vadd.f32 %v3496_v59, %v464_v21  ;;  %v944_v36 = vadd.f32 %v3496_v59, %v943_v25 }
 0x178   :  { %v2680_v42 = vpop.f32.mrf.mxu0  ;;  %v2796_v43 = vpop.f32.mrf.mxu1 }
 0x179   :  { %v552_v44 = vmax.f32 %v465_v34, 0.0  ;;  %v1031_v45 = vmax.f32 %v944_v36, 0.0 }
 0x17a   :  { %v469_v46 = vpop.f32.mrf.mxu0  ;;  %v948_v51 = vpop.f32.mrf.mxu1  ;;  %2910 = vmatmul.mubr.bf16.gmra.mxu0 %v3149_v28  ;;  %3026 = vmatmul.mubr.bf16.gmra.mxu1 %v3150_v31 }
 0x17b   :  { %v3838_v54 = vmax.f32 %v552_v44, %v1031_v45  ;;  %v470_v56 = vadd.f32 %v3496_v59, %v469_v46  ;;  %v949_v60 = vadd.f32 %v3496_v59, %v948_v51  ;;  %2913 = vmatprep.mubr.msk.bf16.mxu0 %vm3166_vm0, %v4252_v0  ;;  %3029 = vmatprep.mubr.msk.bf16.mxu1 %vm3166_vm0, %v4252_v0 }
 0x17c   :  { %v2683_v61 = vpop.f32.mrf.mxu0  ;;  %v2799_v62 = vpop.f32.mrf.mxu1 }
 0x17d   :  { %v553_v2 = vmax.f32 %v470_v56, 0.0  ;;  %v1032_v3 = vmax.f32 %v949_v60, 0.0 }
 0x17e   :  { %v472_v10 = vpop.f32.mrf.mxu0  ;;  %v951_v14 = vpop.f32.mrf.mxu1 }
 0x17f   :  { %v3852_v19 = vmax.f32 %v553_v2, %v1032_v3  ;;  %v473_v20 = vadd.f32 %v3496_v59, %v472_v10  ;;  %v952_v21 = vadd.f32 %v3496_v59, %v951_v14  ;;  %v3153_v2 = vld [vmem:[%s4249_s0 + $0x228] sm:$0xff]  }
 0x180   :  { %v2684_v25 = vpop.f32.mrf.mxu0  ;;  %v2800_v28 = vpop.f32.mrf.mxu1  ;;  %v3154_v3 = vld [vmem:[%s4249_s0 + $0x2ec] sm:$0xff]  }
 0x181   :  { %v554_v31 = vmax.f32 %v473_v20, 0.0  ;;  %v1033_v34 = vmax.f32 %v952_v21, 0.0 }
 0x182   :  { %v477_v36 = vpop.f32.mrf.mxu0  ;;  %v956_v42 = vpop.f32.mrf.mxu1  ;;  %2914 = vmatmul.mubr.bf16.gmra.mxu0 %v3151_v15  ;;  %3030 = vmatmul.mubr.bf16.gmra.mxu1 %v3152_v16 }
 0x183   :  { %v3856_v43 = vmax.f32 %v554_v31, %v1033_v34  ;;  %v478_v44 = vadd.f32 %v3496_v59, %v477_v36  ;;  %v957_v45 = vadd.f32 %v3496_v59, %v956_v42  ;;  %2917 = vmatprep.mubr.msk.bf16.mxu0 %vm3166_vm0, %v4252_v0  ;;  %3033 = vmatprep.mubr.msk.bf16.mxu1 %vm3166_vm0, %v4252_v0 }
 0x184   :  { %v2687_v46 = vpop.f32.mrf.mxu0  ;;  %v2803_v51 = vpop.f32.mrf.mxu1 }
 0x185   :  { %v555_v56 = vmax.f32 %v478_v44, 0.0  ;;  %v1034_v60 = vmax.f32 %v957_v45, 0.0 }
 0x186   :  { %v480_v61 = vpop.f32.mrf.mxu0  ;;  %v959_v62 = vpop.f32.mrf.mxu1 }
 0x187   :  { %v3870_v10 = vmax.f32 %v555_v56, %v1034_v60  ;;  %v481_v14 = vadd.f32 %v3496_v59, %v480_v61  ;;  %v960_v15 = vadd.f32 %v3496_v59, %v959_v62  ;;  %v3155_v61 = vld [vmem:[%s4249_s0 + $0x230] sm:$0xff]  }
 0x188   :  { %v2688_v16 = vpop.f32.mrf.mxu0  ;;  %v2804_v20 = vpop.f32.mrf.mxu1 }
 0x189   :  { %v556_v21 = vmax.f32 %v481_v14, 0.0  ;;  %v1035_v25 = vmax.f32 %v960_v15, 0.0 }
 0x18a   :  { %v485_v28 = vpop.f32.mrf.mxu0  ;;  %v964_v31 = vpop.f32.mrf.mxu1  ;;  %2918 = vmatmul.mubr.bf16.gmra.mxu0 %v3153_v2  ;;  %3034 = vmatmul.mubr.bf16.gmra.mxu1 %v3154_v3  ;;  %v3893_v2 = vld [vmem:[%s4250_s2] ss:$0 sm:$0xff] }
 0x18b   :  { %v3874_v34 = vmax.f32 %v556_v21, %v1035_v25  ;;  %v486_v36 = vadd.f32 %v3496_v59, %v485_v28  ;;  %v965_v42 = vadd.f32 %v3496_v59, %v964_v31  ;;  %2921 = vmatprep.mubr.msk.bf16.mxu0 %vm3166_vm0, %v4252_v0  ;;  %3037 = vmatprep.mubr.msk.bf16.mxu1 %vm3166_vm0, %v4252_v0  ;;  %v3156_v59 = vld [vmem:[%s4249_s0 + $0x2f4] sm:$0xff]  }
 0x18c   :  { %v2691_v44 = vpop.f32.mrf.mxu0  ;;  %v2807_v45 = vpop.f32.mrf.mxu1 }
 0x18d   :  { %v557_v46 = vmax.f32 %v486_v36, 0.0  ;;  %v1036_v51 = vmax.f32 %v965_v42, 0.0 }
 0x18e   :  { %v488_v56 = vpop.f32.mrf.mxu0  ;;  %v967_v60 = vpop.f32.mrf.mxu1 }
 0x18f   :  { %v3888_v62 = vmax.f32 %v557_v46, %v1036_v51  ;;  %v489_v3 = vadd.f32 %v3893_v2, %v488_v56  ;;  %v968_v14 = vadd.f32 %v3893_v2, %v967_v60 }
 0x190   :  { %v2692_v15 = vpop.f32.mrf.mxu0  ;;  %v2808_v16 = vpop.f32.mrf.mxu1 }
 0x191   :  { %v558_v20 = vmax.f32 %v489_v3, 0.0  ;;  %v1037_v21 = vmax.f32 %v968_v14, 0.0 }
 0x192   :  { %v493_v25 = vpop.f32.mrf.mxu0  ;;  %v972_v28 = vpop.f32.mrf.mxu1  ;;  %2922 = vmatmul.mubr.bf16.gmra.mxu0 %v3155_v61  ;;  %3038 = vmatmul.mubr.bf16.gmra.mxu1 %v3156_v59  ;;  %v3157_v61 = vld [vmem:[%s4249_s0 + $0x238] sm:$0xff]  }
 0x193   :  { %v3897_v31 = vmax.f32 %v558_v20, %v1037_v21  ;;  %v494_v36 = vadd.f32 %v3893_v2, %v493_v25  ;;  %v973_v42 = vadd.f32 %v3893_v2, %v972_v28  ;;  %2925 = vmatprep.mubr.msk.bf16.mxu0 %vm3166_vm0, %v4252_v0  ;;  %3041 = vmatprep.mubr.msk.bf16.mxu1 %vm3166_vm0, %v4252_v0  ;;  %v3158_v59 = vld [vmem:[%s4249_s0 + $0x2fc] sm:$0xff]  }
 0x194   :  { %v2695_v44 = vpop.f32.mrf.mxu0  ;;  %v2811_v45 = vpop.f32.mrf.mxu1 }
 0x195   :  { %v559_v46 = vmax.f32 %v494_v36, 0.0  ;;  %v1038_v51 = vmax.f32 %v973_v42, 0.0 }
 0x196   :  { %v496_v56 = vpop.f32.mrf.mxu0  ;;  %v975_v60 = vpop.f32.mrf.mxu1 }
 0x197   :  { %v3911_v3 = vmax.f32 %v559_v46, %v1038_v51  ;;  %v497_v14 = vadd.f32 %v3893_v2, %v496_v56  ;;  %v976_v15 = vadd.f32 %v3893_v2, %v975_v60 }
 0x198   :  { %v2696_v16 = vpop.f32.mrf.mxu0  ;;  %v2812_v20 = vpop.f32.mrf.mxu1 }
 0x199   :  { %4254 = vst [vmem:[#allocation2_spill] sm:$0xff] %v3911_v3  ;;  %v560_v21 = vmax.f32 %v497_v14, 0.0  ;;  %v1039_v25 = vmax.f32 %v976_v15, 0.0 }
 0x19a   :  { %v501_v28 = vpop.f32.mrf.mxu0  ;;  %v980_v36 = vpop.f32.mrf.mxu1  ;;  %2926 = vmatmul.mubr.bf16.gmra.mxu0 %v3157_v61  ;;  %3042 = vmatmul.mubr.bf16.gmra.mxu1 %v3158_v59  ;;  %v3159_v61 = vld [vmem:[%s4249_s0 + $0x240] sm:$0xff]  }
 0x19b   :  { %v3915_v42 = vmax.f32 %v560_v21, %v1039_v25  ;;  %v502_v44 = vadd.f32 %v3893_v2, %v501_v28  ;;  %v981_v45 = vadd.f32 %v3893_v2, %v980_v36  ;;  %2929 = vmatprep.mubr.msk.bf16.mxu0 %vm3166_vm0, %v4252_v0  ;;  %3045 = vmatprep.mubr.msk.bf16.mxu1 %vm3166_vm0, %v4252_v0  ;;  %v3160_v59 = vld [vmem:[%s4249_s0 + $0x304] sm:$0xff]  }
 0x19c   :  { %v2699_v46 = vpop.f32.mrf.mxu0  ;;  %v2815_v51 = vpop.f32.mrf.mxu1 }
 0x19d   :  { %4255 = vst [vmem:[#allocation3_spill] sm:$0xff] %v3915_v42  ;;  %v561_v56 = vmax.f32 %v502_v44, 0.0  ;;  %v1040_v60 = vmax.f32 %v981_v45, 0.0 }
 0x19e   :  { %v504_v14 = vpop.f32.mrf.mxu0  ;;  %v983_v15 = vpop.f32.mrf.mxu1 }
 0x19f   :  { %v3929_v16 = vmax.f32 %v561_v56, %v1040_v60  ;;  %v505_v20 = vadd.f32 %v3893_v2, %v504_v14  ;;  %v984_v21 = vadd.f32 %v3893_v2, %v983_v15  ;;  %v4258_v56 = vmov 0.0  }
 0x1a0   :  { %v2700_v25 = vpop.f32.mrf.mxu0  ;;  %v2816_v28 = vpop.f32.mrf.mxu1 }
 0x1a1   :  { %4256 = vst [vmem:[#allocation4_spill] sm:$0xff] %v3929_v16  ;;  %v562_v36 = vmax.f32 %v505_v20, 0.0  ;;  %v1041_v44 = vmax.f32 %v984_v21, 0.0 }
 0x1a2   :  { %v509_v45 = vpop.f32.mrf.mxu0  ;;  %v988_v46 = vpop.f32.mrf.mxu1  ;;  %2930 = vmatmul.mubr.bf16.gmra.mxu0 %v3159_v61  ;;  %3046 = vmatmul.mubr.bf16.gmra.mxu1 %v3160_v59  ;;  %v3161_v61 = vld [vmem:[%s4249_s0 + $0x248] ss:$0 sps:$4 sm:$0xff]   ;;  %v3162_v59 = vld [vmem:[%s4249_s0 + $0x30c] ss:$0 sps:$4 sm:$0xff]  }
 0x1a3   :  { %v3933_v51 = vmax.f32 %v562_v36, %v1041_v44  ;;  %v510_v0 = vadd.f32 %v3893_v2, %v509_v45  ;;  %v989_v42 = vadd.f32 %v3893_v2, %v988_v46  ;;  %2933 = vmatprep.mubr.msk.bf16.mxu0 %vm3166_vm0, %v4258_v56  ;;  %3049 = vmatprep.mubr.msk.bf16.mxu1 %vm3166_vm0, %v4258_v56 }
 0x1a4   :  { %v2703_v60 = vpop.f32.mrf.mxu0  ;;  %v2819_v14 = vpop.f32.mrf.mxu1 }
 0x1a5   :  { %4257 = vst [vmem:[#allocation5_spill] sm:$0xff] %v3933_v51  ;;  %v563_v15 = vmax.f32 %v510_v0, 0.0  ;;  %v1042_v20 = vmax.f32 %v989_v42, 0.0 }
 0x1a6   :  { %v512_v21 = vpop.f32.mrf.mxu0  ;;  %v991_v25 = vpop.f32.mrf.mxu1 }
 0x1a7   :  { %v3947_v28 = vmax.f32 %v563_v15, %v1042_v20 }
 0x1a8   :  { %v2704_v36 = vpop.f32.mrf.mxu0  ;;  %v2820_v44 = vpop.f32.mrf.mxu1 }
 0x1a9   :  { %4259 = vst [vmem:[#allocation6_spill] sm:$0xff] %v3947_v28 }
 0x1aa   :  { %v1324_v45 = vpop.f32.mrf.mxu0  ;;  %2934 = vmatmul.mubr.bf16.gmra.mxu0 %v3161_v61  ;;  %v1803_v46 = vpop.f32.mrf.mxu1  ;;  %3050 = vmatmul.mubr.bf16.gmra.mxu1 %v3162_v59 }
 0x1ab   :  { %v1325_v0 = vadd.f32 %v3893_v2, %v1324_v45  ;;  %v1804_v42 = vadd.f32 %v3893_v2, %v1803_v46 }
 0x1ac   :  { %v2839_v56 = vpop.f32.mrf.mxu0  ;;  %v2955_v60 = vpop.f32.mrf.mxu1 }
 0x1ad   :  { %v1522_v14 = vmax.f32 %v1325_v0, 0.0  ;;  %v2001_v21 = vmax.f32 %v1804_v42, 0.0 }
 0x1ae   :  { %v1327_v25 = vpop.f32.mrf.mxu0  ;;  %v1806_v51 = vpop.f32.mrf.mxu1 }
 0x1af   :  { %v2050_v16 = vmax.f32 %v1522_v14, %v2001_v21  ;;  %v1328_v15 = vadd.f32 %v3893_v2, %v1327_v25  ;;  %v1807_v20 = vadd.f32 %v3893_v2, %v1806_v51 }
 0x1b0   :  { %v2840_v36 = vpop.f32.mrf.mxu0  ;;  %v2956_v44 = vpop.f32.mrf.mxu1 }
 0x1b1   :  { %v2099_v61 = vmax.f32 %v3510_v9, %v2050_v16  ;;  %v1523_v59 = vmax.f32 %v1328_v15, 0.0  ;;  %v2002_v28 = vmax.f32 %v1807_v20, 0.0 }
 0x1b2   :  { %v1332_v45 = vpop.f32.mrf.mxu0  ;;  %v1811_v3 = vpop.f32.mrf.mxu1 }
 0x1b3   :  { %2148 = vst [vmem:[%s4251_s3] sm:$0xff] %v2099_v61  ;;  %v2051_v46 = vmax.f32 %v1523_v59, %v2002_v28  ;;  %v1333_v0 = vadd.f32 %v3893_v2, %v1332_v45  ;;  %v1812_v42 = vadd.f32 %v3893_v2, %v1811_v3 }
 0x1b4   :  { %v2843_v56 = vpop.f32.mrf.mxu0  ;;  %v2959_v60 = vpop.f32.mrf.mxu1 }
 0x1b5   :  { %v2100_v51 = vmax.f32 %v3514_v18, %v2051_v46  ;;  %v1524_v14 = vmax.f32 %v1333_v0, 0.0  ;;  %v2003_v21 = vmax.f32 %v1812_v42, 0.0 }
 0x1b6   :  { %v1335_v9 = vpop.f32.mrf.mxu0  ;;  %v1814_v16 = vpop.f32.mrf.mxu1 }
 0x1b7   :  { %2149 = vst [vmem:[%s4251_s3 + $0x8] sm:$0xff] %v2100_v51  ;;  %v2052_v25 = vmax.f32 %v1524_v14, %v2003_v21  ;;  %v1336_v15 = vadd.f32 %v3893_v2, %v1335_v9  ;;  %v1815_v28 = vadd.f32 %v3893_v2, %v1814_v16 }
 0x1b8   :  { %v2844_v20 = vpop.f32.mrf.mxu0  ;;  %v2960_v36 = vpop.f32.mrf.mxu1 }
 0x1b9   :  { %v2101_v3 = vmax.f32 %v3528_v29, %v2052_v25  ;;  %v1525_v44 = vmax.f32 %v1336_v15, 0.0  ;;  %v2004_v61 = vmax.f32 %v1815_v28, 0.0 }
 0x1ba   :  { %v1340_v18 = vpop.f32.mrf.mxu0  ;;  %v1819_v59 = vpop.f32.mrf.mxu1 }
 0x1bb   :  { %2150 = vst [vmem:[%s4251_s3 + $0x10] sm:$0xff] %v2101_v3  ;;  %v2053_v45 = vmax.f32 %v1525_v44, %v2004_v61  ;;  %v1341_v46 = vadd.f32 %v3893_v2, %v1340_v18  ;;  %v1820_v0 = vadd.f32 %v3893_v2, %v1819_v59 }
 0x1bc   :  { %v2847_v42 = vpop.f32.mrf.mxu0  ;;  %v2963_v56 = vpop.f32.mrf.mxu1 }
 0x1bd   :  { %v2102_v60 = vmax.f32 %v3532_v38, %v2053_v45  ;;  %v1526_v51 = vmax.f32 %v1341_v46, 0.0  ;;  %v2005_v14 = vmax.f32 %v1820_v0, 0.0 }
 0x1be   :  { %v1343_v29 = vpop.f32.mrf.mxu0  ;;  %v1822_v21 = vpop.f32.mrf.mxu1 }
 0x1bf   :  { %2151 = vst [vmem:[%s4251_s3 + $0x18] sm:$0xff] %v2102_v60  ;;  %v2054_v9 = vmax.f32 %v1526_v51, %v2005_v14  ;;  %v1344_v16 = vadd.f32 %v3893_v2, %v1343_v29  ;;  %v1823_v25 = vadd.f32 %v3893_v2, %v1822_v21 }
 0x1c0   :  { %v2848_v15 = vpop.f32.mrf.mxu0  ;;  %v2964_v28 = vpop.f32.mrf.mxu1 }
 0x1c1   :  { %v2103_v20 = vmax.f32 %v3546_v49, %v2054_v9  ;;  %v1527_v36 = vmax.f32 %v1344_v16, 0.0  ;;  %v2006_v3 = vmax.f32 %v1823_v25, 0.0 }
 0x1c2   :  { %v1348_v38 = vpop.f32.mrf.mxu0  ;;  %v1827_v44 = vpop.f32.mrf.mxu1 }
 0x1c3   :  { %2152 = vst [vmem:[%s4251_s3 + $0x20] sm:$0xff] %v2103_v20  ;;  %v2055_v61 = vmax.f32 %v1527_v36, %v2006_v3  ;;  %v1349_v18 = vadd.f32 %v3893_v2, %v1348_v38  ;;  %v1828_v59 = vadd.f32 %v3893_v2, %v1827_v44 }
 0x1c4   :  { %v2851_v45 = vpop.f32.mrf.mxu0  ;;  %v2967_v46 = vpop.f32.mrf.mxu1 }
 0x1c5   :  { %v2104_v0 = vmax.f32 %v3550_v58, %v2055_v61  ;;  %v1528_v42 = vmax.f32 %v1349_v18, 0.0  ;;  %v2007_v56 = vmax.f32 %v1828_v59, 0.0 }
 0x1c6   :  { %v1351_v49 = vpop.f32.mrf.mxu0  ;;  %v1830_v60 = vpop.f32.mrf.mxu1 }
 0x1c7   :  { %2153 = vst [vmem:[%s4251_s3 + $0x28] sm:$0xff] %v2104_v0  ;;  %v2056_v51 = vmax.f32 %v1528_v42, %v2007_v56  ;;  %v1352_v14 = vadd.f32 %v3893_v2, %v1351_v49  ;;  %v1831_v29 = vadd.f32 %v3893_v2, %v1830_v60 }
 0x1c8   :  { %v2852_v21 = vpop.f32.mrf.mxu0  ;;  %v2968_v9 = vpop.f32.mrf.mxu1 }
 0x1c9   :  { %v2105_v16 = vmax.f32 %v3564_v7, %v2056_v51  ;;  %v1529_v25 = vmax.f32 %v1352_v14, 0.0  ;;  %v2008_v15 = vmax.f32 %v1831_v29, 0.0 }
 0x1ca   :  { %v1356_v58 = vpop.f32.mrf.mxu0  ;;  %v1835_v28 = vpop.f32.mrf.mxu1 }
 0x1cb   :  { %2154 = vst [vmem:[%s4251_s3 + $0x30] sm:$0xff] %v2105_v16  ;;  %v2057_v20 = vmax.f32 %v1529_v25, %v2008_v15  ;;  %v1357_v36 = vadd.f32 %v3893_v2, %v1356_v58  ;;  %v1836_v3 = vadd.f32 %v3893_v2, %v1835_v28 }
 0x1cc   :  { %v2855_v38 = vpop.f32.mrf.mxu0  ;;  %v2971_v44 = vpop.f32.mrf.mxu1 }
 0x1cd   :  { %v2106_v61 = vmax.f32 %v3568_v17, %v2057_v20  ;;  %v1530_v18 = vmax.f32 %v1357_v36, 0.0  ;;  %v2009_v59 = vmax.f32 %v1836_v3, 0.0 }
 0x1ce   :  { %v1359_v7 = vpop.f32.mrf.mxu0  ;;  %v1838_v45 = vpop.f32.mrf.mxu1 }
 0x1cf   :  { %2155 = vst [vmem:[%s4251_s3 + $0x38] sm:$0xff] %v2106_v61  ;;  %v2058_v46 = vmax.f32 %v1530_v18, %v2009_v59  ;;  %v1360_v0 = vadd.f32 %v3893_v2, %v1359_v7  ;;  %v1839_v42 = vadd.f32 %v3893_v2, %v1838_v45 }
 0x1d0   :  { %v2856_v56 = vpop.f32.mrf.mxu0  ;;  %v2972_v49 = vpop.f32.mrf.mxu1 }
 0x1d1   :  { %v2107_v60 = vmax.f32 %v3582_v30, %v2058_v46  ;;  %v1531_v51 = vmax.f32 %v1360_v0, 0.0  ;;  %v2010_v14 = vmax.f32 %v1839_v42, 0.0 }
 0x1d2   :  { %v1364_v17 = vpop.f32.mrf.mxu0  ;;  %v1843_v29 = vpop.f32.mrf.mxu1 }
 0x1d3   :  { %2156 = vst [vmem:[%s4251_s3 + $0x40] sm:$0xff] %v2107_v60  ;;  %v2059_v21 = vmax.f32 %v1531_v51, %v2010_v14  ;;  %v1365_v9 = vadd.f32 %v3893_v2, %v1364_v17  ;;  %v1844_v16 = vadd.f32 %v3893_v2, %v1843_v29 }
 0x1d4   :  { %v2859_v25 = vpop.f32.mrf.mxu0  ;;  %v2975_v15 = vpop.f32.mrf.mxu1 }
 0x1d5   :  { %v2108_v58 = vmax.f32 %v3586_v40, %v2059_v21  ;;  %v1532_v28 = vmax.f32 %v1365_v9, 0.0  ;;  %v2011_v20 = vmax.f32 %v1844_v16, 0.0 }
 0x1d6   :  { %v1367_v30 = vpop.f32.mrf.mxu0  ;;  %v1846_v36 = vpop.f32.mrf.mxu1 }
 0x1d7   :  { %2157 = vst [vmem:[%s4251_s3 + $0x48] sm:$0xff] %v2108_v58  ;;  %v2060_v3 = vmax.f32 %v1532_v28, %v2011_v20  ;;  %v1368_v38 = vadd.f32 %v3893_v2, %v1367_v30  ;;  %v1847_v44 = vadd.f32 %v3893_v2, %v1846_v36 }
 0x1d8   :  { %v2860_v61 = vpop.f32.mrf.mxu0  ;;  %v2976_v18 = vpop.f32.mrf.mxu1 }
 0x1d9   :  { %v2109_v59 = vmax.f32 %v3600_v52, %v2060_v3  ;;  %v1533_v7 = vmax.f32 %v1368_v38, 0.0  ;;  %v2012_v45 = vmax.f32 %v1847_v44, 0.0 }
 0x1da   :  { %v1372_v40 = vpop.f32.mrf.mxu0  ;;  %v1851_v46 = vpop.f32.mrf.mxu1 }
 0x1db   :  { %2158 = vst [vmem:[%s4251_s3 + $0x50] sm:$0xff] %v2109_v59  ;;  %v2061_v0 = vmax.f32 %v1533_v7, %v2012_v45  ;;  %v1373_v42 = vadd.f32 %v3893_v2, %v1372_v40  ;;  %v1852_v56 = vadd.f32 %v3893_v2, %v1851_v46 }
 0x1dc   :  { %v2863_v49 = vpop.f32.mrf.mxu0  ;;  %v2979_v60 = vpop.f32.mrf.mxu1 }
 0x1dd   :  { %v2110_v51 = vmax.f32 %v3604_v63, %v2061_v0  ;;  %v1534_v14 = vmax.f32 %v1373_v42, 0.0  ;;  %v2013_v17 = vmax.f32 %v1852_v56, 0.0 }
 0x1de   :  { %v1375_v52 = vpop.f32.mrf.mxu0  ;;  %v1854_v29 = vpop.f32.mrf.mxu1 }
 0x1df   :  { %2159 = vst [vmem:[%s4251_s3 + $0x58] sm:$0xff] %v2110_v51  ;;  %v2062_v21 = vmax.f32 %v1534_v14, %v2013_v17  ;;  %v1376_v9 = vadd.f32 %v3893_v2, %v1375_v52  ;;  %v1855_v16 = vadd.f32 %v3893_v2, %v1854_v29 }
 0x1e0   :  { %v2864_v25 = vpop.f32.mrf.mxu0  ;;  %v2980_v15 = vpop.f32.mrf.mxu1 }
 0x1e1   :  { %v2111_v58 = vmax.f32 %v3618_v13, %v2062_v21  ;;  %v1535_v28 = vmax.f32 %v1376_v9, 0.0  ;;  %v2014_v20 = vmax.f32 %v1855_v16, 0.0 }
 0x1e2   :  { %v1380_v63 = vpop.f32.mrf.mxu0  ;;  %v1859_v30 = vpop.f32.mrf.mxu1 }
 0x1e3   :  { %2160 = vst [vmem:[%s4251_s3 + $0x60] sm:$0xff] %v2111_v58  ;;  %v2063_v36 = vmax.f32 %v1535_v28, %v2014_v20  ;;  %v1381_v3 = vadd.f32 %v3893_v2, %v1380_v63  ;;  %v1860_v38 = vadd.f32 %v3893_v2, %v1859_v30 }
 0x1e4   :  { %v2867_v44 = vpop.f32.mrf.mxu0  ;;  %v2983_v61 = vpop.f32.mrf.mxu1 }
 0x1e5   :  { %v2112_v18 = vmax.f32 %v3622_v24, %v2063_v36  ;;  %v1536_v59 = vmax.f32 %v1381_v3, 0.0  ;;  %v2015_v7 = vmax.f32 %v1860_v38, 0.0 }
 0x1e6   :  { %v1383_v13 = vpop.f32.mrf.mxu0  ;;  %v1862_v45 = vpop.f32.mrf.mxu1 }
 0x1e7   :  { %2161 = vst [vmem:[%s4251_s3 + $0x68] sm:$0xff] %v2112_v18  ;;  %v2064_v40 = vmax.f32 %v1536_v59, %v2015_v7  ;;  %v1384_v46 = vadd.f32 %v3893_v2, %v1383_v13  ;;  %v1863_v0 = vadd.f32 %v3893_v2, %v1862_v45 }
 0x1e8   :  { %v2868_v42 = vpop.f32.mrf.mxu0  ;;  %v2984_v56 = vpop.f32.mrf.mxu1 }
 0x1e9   :  { %v2113_v49 = vmax.f32 %v3636_v37, %v2064_v40  ;;  %v1537_v60 = vmax.f32 %v1384_v46, 0.0  ;;  %v2016_v51 = vmax.f32 %v1863_v0, 0.0 }
 0x1ea   :  { %v1388_v24 = vpop.f32.mrf.mxu0  ;;  %v1867_v14 = vpop.f32.mrf.mxu1 }
 0x1eb   :  { %2162 = vst [vmem:[%s4251_s3 + $0x70] sm:$0xff] %v2113_v49  ;;  %v2065_v17 = vmax.f32 %v1537_v60, %v2016_v51  ;;  %v1389_v52 = vadd.f32 %v3893_v2, %v1388_v24  ;;  %v1868_v29 = vadd.f32 %v3893_v2, %v1867_v14 }
 0x1ec   :  { %v2871_v21 = vpop.f32.mrf.mxu0  ;;  %v2987_v9 = vpop.f32.mrf.mxu1 }
 0x1ed   :  { %v2114_v16 = vmax.f32 %v3640_v48, %v2065_v17  ;;  %v1538_v25 = vmax.f32 %v1389_v52, 0.0  ;;  %v2017_v15 = vmax.f32 %v1868_v29, 0.0 }
 0x1ee   :  { %v1391_v37 = vpop.f32.mrf.mxu0  ;;  %v1870_v58 = vpop.f32.mrf.mxu1 }
 0x1ef   :  { %2163 = vst [vmem:[%s4251_s3 + $0x78] sm:$0xff] %v2114_v16  ;;  %v2066_v28 = vmax.f32 %v1538_v25, %v2017_v15  ;;  %v1392_v20 = vadd.f32 %v3893_v2, %v1391_v37  ;;  %v1871_v63 = vadd.f32 %v3893_v2, %v1870_v58 }
 0x1f0   :  { %v2872_v30 = vpop.f32.mrf.mxu0  ;;  %v2988_v36 = vpop.f32.mrf.mxu1 }
 0x1f1   :  { %v2115_v3 = vmax.f32 %v3654_v1, %v2066_v28  ;;  %v1539_v38 = vmax.f32 %v1392_v20, 0.0  ;;  %v2018_v44 = vmax.f32 %v1871_v63, 0.0 }
 0x1f2   :  { %v1396_v48 = vpop.f32.mrf.mxu0  ;;  %v1875_v61 = vpop.f32.mrf.mxu1 }
 0x1f3   :  { %2164 = vst [vmem:[%s4251_s3 + $0x80] sm:$0xff] %v2115_v3  ;;  %v2067_v18 = vmax.f32 %v1539_v38, %v2018_v44  ;;  %v1397_v59 = vadd.f32 %v3893_v2, %v1396_v48  ;;  %v1876_v7 = vadd.f32 %v3893_v2, %v1875_v61 }
 0x1f4   :  { %v2875_v13 = vpop.f32.mrf.mxu0  ;;  %v2991_v45 = vpop.f32.mrf.mxu1 }
 0x1f5   :  { %v2116_v40 = vmax.f32 %v3658_v12, %v2067_v18  ;;  %v1540_v46 = vmax.f32 %v1397_v59, 0.0  ;;  %v2019_v0 = vmax.f32 %v1876_v7, 0.0 }
 0x1f6   :  { %v1399_v1 = vpop.f32.mrf.mxu0  ;;  %v1878_v42 = vpop.f32.mrf.mxu1 }
 0x1f7   :  { %2165 = vst [vmem:[%s4251_s3 + $0x88] sm:$0xff] %v2116_v40  ;;  %v2068_v56 = vmax.f32 %v1540_v46, %v2019_v0  ;;  %v1400_v49 = vadd.f32 %v3893_v2, %v1399_v1  ;;  %v1879_v60 = vadd.f32 %v3893_v2, %v1878_v42 }
 0x1f8   :  { %v2876_v51 = vpop.f32.mrf.mxu0  ;;  %v2992_v24 = vpop.f32.mrf.mxu1 }
 0x1f9   :  { %v2117_v14 = vmax.f32 %v3672_v27, %v2068_v56  ;;  %v1541_v17 = vmax.f32 %v1400_v49, 0.0  ;;  %v2020_v52 = vmax.f32 %v1879_v60, 0.0 }
 0x1fa   :  { %v1404_v12 = vpop.f32.mrf.mxu0  ;;  %v1883_v29 = vpop.f32.mrf.mxu1 }
 0x1fb   :  { %2166 = vst [vmem:[%s4251_s3 + $0x90] sm:$0xff] %v2117_v14  ;;  %v2069_v21 = vmax.f32 %v1541_v17, %v2020_v52  ;;  %v1405_v9 = vadd.f32 %v3893_v2, %v1404_v12  ;;  %v1884_v16 = vadd.f32 %v3893_v2, %v1883_v29 }
 0x1fc   :  { %v2879_v25 = vpop.f32.mrf.mxu0  ;;  %v2995_v15 = vpop.f32.mrf.mxu1 }
 0x1fd   :  { %v2118_v37 = vmax.f32 %v3676_v41, %v2069_v21  ;;  %v1542_v58 = vmax.f32 %v1405_v9, 0.0  ;;  %v2021_v28 = vmax.f32 %v1884_v16, 0.0 }
 0x1fe   :  { %v1407_v27 = vpop.f32.mrf.mxu0  ;;  %v1886_v20 = vpop.f32.mrf.mxu1 }
 0x1ff   :  { %2167 = vst [vmem:[%s4251_s3 + $0x98] sm:$0xff] %v2118_v37  ;;  %v2070_v63 = vmax.f32 %v1542_v58, %v2021_v28  ;;  %v1408_v30 = vadd.f32 %v3893_v2, %v1407_v27  ;;  %v1887_v36 = vadd.f32 %v3893_v2, %v1886_v20 }
 0x200   :  { %v2880_v3 = vpop.f32.mrf.mxu0  ;;  %v2996_v38 = vpop.f32.mrf.mxu1 }
 0x201   :  { %v2119_v44 = vmax.f32 %v3690_v55, %v2070_v63  ;;  %v1543_v48 = vmax.f32 %v1408_v30, 0.0  ;;  %v2022_v61 = vmax.f32 %v1887_v36, 0.0 }
 0x202   :  { %v1412_v41 = vpop.f32.mrf.mxu0  ;;  %v1891_v18 = vpop.f32.mrf.mxu1 }
 0x203   :  { %2168 = vst [vmem:[%s4251_s3 + $0xa0] sm:$0xff] %v2119_v44  ;;  %v2071_v59 = vmax.f32 %v1543_v48, %v2022_v61  ;;  %v1413_v7 = vadd.f32 %v3893_v2, %v1412_v41  ;;  %v1892_v13 = vadd.f32 %v3893_v2, %v1891_v18 }
 0x204   :  { %v2883_v45 = vpop.f32.mrf.mxu0  ;;  %v2999_v40 = vpop.f32.mrf.mxu1 }
 0x205   :  { %v2120_v46 = vmax.f32 %v3694_v5, %v2071_v59  ;;  %v1544_v0 = vmax.f32 %v1413_v7, 0.0  ;;  %v2023_v1 = vmax.f32 %v1892_v13, 0.0 }
 0x206   :  { %v1415_v55 = vpop.f32.mrf.mxu0  ;;  %v1894_v42 = vpop.f32.mrf.mxu1 }
 0x207   :  { %2169 = vst [vmem:[%s4251_s3 + $0xa8] sm:$0xff] %v2120_v46  ;;  %v2072_v56 = vmax.f32 %v1544_v0, %v2023_v1  ;;  %v1416_v49 = vadd.f32 %v3893_v2, %v1415_v55  ;;  %v1895_v60 = vadd.f32 %v3893_v2, %v1894_v42 }
 0x208   :  { %v2884_v51 = vpop.f32.mrf.mxu0  ;;  %v3000_v24 = vpop.f32.mrf.mxu1 }
 0x209   :  { %v2121_v14 = vmax.f32 %v3708_v22, %v2072_v56  ;;  %v1545_v17 = vmax.f32 %v1416_v49, 0.0  ;;  %v2024_v52 = vmax.f32 %v1895_v60, 0.0 }
 0x20a   :  { %v1420_v5 = vpop.f32.mrf.mxu0  ;;  %v1899_v12 = vpop.f32.mrf.mxu1 }
 0x20b   :  { %2170 = vst [vmem:[%s4251_s3 + $0xb0] sm:$0xff] %v2121_v14  ;;  %v2073_v29 = vmax.f32 %v1545_v17, %v2024_v52  ;;  %v1421_v21 = vadd.f32 %v3893_v2, %v1420_v5  ;;  %v1900_v9 = vadd.f32 %v3893_v2, %v1899_v12 }
 0x20c   :  { %v2887_v16 = vpop.f32.mrf.mxu0  ;;  %v3003_v25 = vpop.f32.mrf.mxu1 }
 0x20d   :  { %v2122_v15 = vmax.f32 %v3712_v35, %v2073_v29  ;;  %v1546_v37 = vmax.f32 %v1421_v21, 0.0  ;;  %v2025_v58 = vmax.f32 %v1900_v9, 0.0 }
 0x20e   :  { %v1423_v22 = vpop.f32.mrf.mxu0  ;;  %v1902_v28 = vpop.f32.mrf.mxu1 }
 0x20f   :  { %2171 = vst [vmem:[%s4251_s3 + $0xb8] sm:$0xff] %v2122_v15  ;;  %v2074_v27 = vmax.f32 %v1546_v37, %v2025_v58  ;;  %v1424_v20 = vadd.f32 %v3893_v2, %v1423_v22  ;;  %v1903_v63 = vadd.f32 %v3893_v2, %v1902_v28 }
 0x210   :  { %v2888_v30 = vpop.f32.mrf.mxu0  ;;  %v3004_v36 = vpop.f32.mrf.mxu1 }
 0x211   :  { %v2123_v3 = vmax.f32 %v3726_v53, %v2074_v27  ;;  %v1547_v38 = vmax.f32 %v1424_v20, 0.0  ;;  %v2026_v44 = vmax.f32 %v1903_v63, 0.0 }
 0x212   :  { %v1428_v35 = vpop.f32.mrf.mxu0  ;;  %v1907_v48 = vpop.f32.mrf.mxu1 }
 0x213   :  { %2172 = vst [vmem:[%s4251_s3 + $0xc0] sm:$0xff] %v2123_v3  ;;  %v2075_v61 = vmax.f32 %v1547_v38, %v2026_v44  ;;  %v1429_v41 = vadd.f32 %v3893_v2, %v1428_v35  ;;  %v1908_v18 = vadd.f32 %v3893_v2, %v1907_v48 }
 0x214   :  { %v2891_v59 = vpop.f32.mrf.mxu0  ;;  %v3007_v7 = vpop.f32.mrf.mxu1 }
 0x215   :  { %v2124_v13 = vmax.f32 %v3730_v4, %v2075_v61  ;;  %v1548_v45 = vmax.f32 %v1429_v41, 0.0  ;;  %v2027_v40 = vmax.f32 %v1908_v18, 0.0 }
 0x216   :  { %v1431_v53 = vpop.f32.mrf.mxu0  ;;  %v1910_v46 = vpop.f32.mrf.mxu1 }
 0x217   :  { %2173 = vst [vmem:[%s4251_s3 + $0xc8] sm:$0xff] %v2124_v13  ;;  %v2076_v0 = vmax.f32 %v1548_v45, %v2027_v40  ;;  %v1432_v1 = vadd.f32 %v3893_v2, %v1431_v53  ;;  %v1911_v55 = vadd.f32 %v3893_v2, %v1910_v46 }
 0x218   :  { %v2892_v42 = vpop.f32.mrf.mxu0  ;;  %v3008_v56 = vpop.f32.mrf.mxu1 }
 0x219   :  { %v2125_v49 = vmax.f32 %v3744_v23, %v2076_v0  ;;  %v1549_v60 = vmax.f32 %v1432_v1, 0.0  ;;  %v2028_v51 = vmax.f32 %v1911_v55, 0.0 }
 0x21a   :  { %v1436_v4 = vpop.f32.mrf.mxu0  ;;  %v1915_v24 = vpop.f32.mrf.mxu1 }
 0x21b   :  { %2174 = vst [vmem:[%s4251_s3 + $0xd0] sm:$0xff] %v2125_v49  ;;  %v2077_v14 = vmax.f32 %v1549_v60, %v2028_v51  ;;  %v1437_v17 = vadd.f32 %v3893_v2, %v1436_v4  ;;  %v1916_v52 = vadd.f32 %v3893_v2, %v1915_v24 }
 0x21c   :  { %v2895_v5 = vpop.f32.mrf.mxu0  ;;  %v3011_v12 = vpop.f32.mrf.mxu1 }
 0x21d   :  { %v2126_v29 = vmax.f32 %v3748_v39, %v2077_v14  ;;  %v1550_v21 = vmax.f32 %v1437_v17, 0.0  ;;  %v2029_v9 = vmax.f32 %v1916_v52, 0.0 }
 0x21e   :  { %v1439_v23 = vpop.f32.mrf.mxu0  ;;  %v1918_v16 = vpop.f32.mrf.mxu1 }
 0x21f   :  { %2175 = vst [vmem:[%s4251_s3 + $0xd8] sm:$0xff] %v2126_v29  ;;  %v2078_v25 = vmax.f32 %v1550_v21, %v2029_v9  ;;  %v1440_v15 = vadd.f32 %v3893_v2, %v1439_v23  ;;  %v1919_v37 = vadd.f32 %v3893_v2, %v1918_v16 }
 0x220   :  { %v2896_v58 = vpop.f32.mrf.mxu0  ;;  %v3012_v22 = vpop.f32.mrf.mxu1 }
 0x221   :  { %v2127_v28 = vmax.f32 %v3762_v57, %v2078_v25  ;;  %v1551_v27 = vmax.f32 %v1440_v15, 0.0  ;;  %v2030_v20 = vmax.f32 %v1919_v37, 0.0 }
 0x222   :  { %v1444_v39 = vpop.f32.mrf.mxu0  ;;  %v1923_v63 = vpop.f32.mrf.mxu1 }
 0x223   :  { %2176 = vst [vmem:[%s4251_s3 + $0xe0] sm:$0xff] %v2127_v28  ;;  %v2079_v30 = vmax.f32 %v1551_v27, %v2030_v20  ;;  %v1445_v36 = vadd.f32 %v3893_v2, %v1444_v39  ;;  %v1924_v3 = vadd.f32 %v3893_v2, %v1923_v63 }
 0x224   :  { %v2899_v38 = vpop.f32.mrf.mxu0  ;;  %v3015_v44 = vpop.f32.mrf.mxu1 }
 0x225   :  { %v2128_v35 = vmax.f32 %v3766_v11, %v2079_v30  ;;  %v1552_v48 = vmax.f32 %v1445_v36, 0.0  ;;  %v2031_v61 = vmax.f32 %v1924_v3, 0.0 }
 0x226   :  { %v1447_v57 = vpop.f32.mrf.mxu0  ;;  %v1926_v41 = vpop.f32.mrf.mxu1 }
 0x227   :  { %2177 = vst [vmem:[%s4251_s3 + $0xe8] sm:$0xff] %v2128_v35  ;;  %v2080_v18 = vmax.f32 %v1552_v48, %v2031_v61  ;;  %v1448_v59 = vadd.f32 %v3893_v2, %v1447_v57  ;;  %v1927_v7 = vadd.f32 %v3893_v2, %v1926_v41 }
 0x228   :  { %v2900_v13 = vpop.f32.mrf.mxu0  ;;  %v3016_v45 = vpop.f32.mrf.mxu1 }
 0x229   :  { %v2129_v40 = vmax.f32 %v3780_v32, %v2080_v18  ;;  %v1553_v53 = vmax.f32 %v1448_v59, 0.0  ;;  %v2032_v46 = vmax.f32 %v1927_v7, 0.0 }
 0x22a   :  { %v1452_v11 = vpop.f32.mrf.mxu0  ;;  %v1931_v0 = vpop.f32.mrf.mxu1 }
 0x22b   :  { %2178 = vst [vmem:[%s4251_s3 + $0xf0] sm:$0xff] %v2129_v40  ;;  %v2081_v1 = vmax.f32 %v1553_v53, %v2032_v46  ;;  %v1453_v55 = vadd.f32 %v3893_v2, %v1452_v11  ;;  %v1932_v42 = vadd.f32 %v3893_v2, %v1931_v0 }
 0x22c   :  { %v2903_v56 = vpop.f32.mrf.mxu0  ;;  %v3019_v49 = vpop.f32.mrf.mxu1 }
 0x22d   :  { %v2130_v60 = vmax.f32 %v3784_v47, %v2081_v1  ;;  %v1554_v51 = vmax.f32 %v1453_v55, 0.0  ;;  %v2033_v4 = vmax.f32 %v1932_v42, 0.0 }
 0x22e   :  { %v1455_v32 = vpop.f32.mrf.mxu0  ;;  %v1934_v24 = vpop.f32.mrf.mxu1 }
 0x22f   :  { %2179 = vst [vmem:[%s4251_s3 + $0xf8] sm:$0xff] %v2130_v60  ;;  %v2082_v14 = vmax.f32 %v1554_v51, %v2033_v4  ;;  %v1456_v17 = vadd.f32 %v3893_v2, %v1455_v32  ;;  %v1935_v52 = vadd.f32 %v3893_v2, %v1934_v24 }
 0x230   :  { %v2904_v5 = vpop.f32.mrf.mxu0  ;;  %v3020_v12 = vpop.f32.mrf.mxu1 }
 0x231   :  { %v2131_v29 = vmax.f32 %v3798_v8, %v2082_v14  ;;  %v1555_v21 = vmax.f32 %v1456_v17, 0.0  ;;  %v2034_v9 = vmax.f32 %v1935_v52, 0.0 }
 0x232   :  { %v1460_v47 = vpop.f32.mrf.mxu0  ;;  %v1939_v23 = vpop.f32.mrf.mxu1 }
 0x233   :  { %2180 = vst [vmem:[%s4251_s3 + $0x100] sm:$0xff] %v2131_v29  ;;  %v2083_v16 = vmax.f32 %v1555_v21, %v2034_v9  ;;  %v1461_v25 = vadd.f32 %v3893_v2, %v1460_v47  ;;  %v1940_v15 = vadd.f32 %v3893_v2, %v1939_v23 }
 0x234   :  { %v2907_v37 = vpop.f32.mrf.mxu0  ;;  %v3023_v58 = vpop.f32.mrf.mxu1 }
 0x235   :  { %v2132_v22 = vmax.f32 %v3802_v26, %v2083_v16  ;;  %v1556_v28 = vmax.f32 %v1461_v25, 0.0  ;;  %v2035_v27 = vmax.f32 %v1940_v15, 0.0  ;;  %v4188_v58 = vld [vmem:[%s4250_s2] ss:$0 sm:$0xff] }
 0x236   :  { %v1463_v8 = vpop.f32.mrf.mxu0  ;;  %v1942_v20 = vpop.f32.mrf.mxu1 }
 0x237   :  { %2181 = vst [vmem:[%s4251_s3 + $0x108] sm:$0xff] %v2132_v22  ;;  %v2084_v39 = vmax.f32 %v1556_v28, %v2035_v27  ;;  %v1464_v63 = vadd.f32 %v3893_v2, %v1463_v8  ;;  %v1943_v30 = vadd.f32 %v3893_v2, %v1942_v20 }
 0x238   :  { %v2908_v36 = vpop.f32.mrf.mxu0  ;;  %v3024_v3 = vpop.f32.mrf.mxu1 }
 0x239   :  { %v2133_v38 = vmax.f32 %v3816_v50, %v2084_v39  ;;  %v1557_v44 = vmax.f32 %v1464_v63, 0.0  ;;  %v2036_v35 = vmax.f32 %v1943_v30, 0.0 }
 0x23a   :  { %v1468_v26 = vpop.f32.mrf.mxu0  ;;  %v1947_v48 = vpop.f32.mrf.mxu1 }
 0x23b   :  { %2182 = vst [vmem:[%s4251_s3 + $0x110] sm:$0xff] %v2133_v38  ;;  %v2085_v61 = vmax.f32 %v1557_v44, %v2036_v35  ;;  %v1469_v57 = vadd.f32 %v3893_v2, %v1468_v26  ;;  %v1948_v41 = vadd.f32 %v3893_v2, %v1947_v48 }
 0x23c   :  { %v2911_v18 = vpop.f32.mrf.mxu0  ;;  %v3027_v59 = vpop.f32.mrf.mxu1 }
 0x23d   :  { %v2134_v7 = vmax.f32 %v3820_v6, %v2085_v61  ;;  %v1558_v13 = vmax.f32 %v1469_v57, 0.0  ;;  %v2037_v45 = vmax.f32 %v1948_v41, 0.0 }
 0x23e   :  { %v1471_v50 = vpop.f32.mrf.mxu0  ;;  %v1950_v40 = vpop.f32.mrf.mxu1 }
 0x23f   :  { %2183 = vst [vmem:[%s4251_s3 + $0x118] sm:$0xff] %v2134_v7  ;;  %v2086_v53 = vmax.f32 %v1558_v13, %v2037_v45  ;;  %v1472_v46 = vadd.f32 %v3893_v2, %v1471_v50  ;;  %v1951_v11 = vadd.f32 %v3893_v2, %v1950_v40 }
 0x240   :  { %v2912_v0 = vpop.f32.mrf.mxu0  ;;  %v3028_v1 = vpop.f32.mrf.mxu1 }
 0x241   :  { %v2135_v55 = vmax.f32 %v3834_v33, %v2086_v53  ;;  %v1559_v42 = vmax.f32 %v1472_v46, 0.0  ;;  %v2038_v56 = vmax.f32 %v1951_v11, 0.0 }
 0x242   :  { %v1476_v6 = vpop.f32.mrf.mxu0  ;;  %v1955_v49 = vpop.f32.mrf.mxu1 }
 0x243   :  { %2184 = vst [vmem:[%s4251_s3 + $0x120] sm:$0xff] %v2135_v55  ;;  %v2087_v60 = vmax.f32 %v1559_v42, %v2038_v56  ;;  %v1477_v51 = vadd.f32 %v3893_v2, %v1476_v6  ;;  %v1956_v4 = vadd.f32 %v3893_v2, %v1955_v49 }
 0x244   :  { %v2915_v32 = vpop.f32.mrf.mxu0  ;;  %v3031_v24 = vpop.f32.mrf.mxu1 }
 0x245   :  { %v2136_v14 = vmax.f32 %v3838_v54, %v2087_v60  ;;  %v1560_v17 = vmax.f32 %v1477_v51, 0.0  ;;  %v2039_v52 = vmax.f32 %v1956_v4, 0.0 }
 0x246   :  { %v1479_v33 = vpop.f32.mrf.mxu0  ;;  %v1958_v5 = vpop.f32.mrf.mxu1 }
 0x247   :  { %2185 = vst [vmem:[%s4251_s3 + $0x128] sm:$0xff] %v2136_v14  ;;  %v2088_v12 = vmax.f32 %v1560_v17, %v2039_v52  ;;  %v1480_v29 = vadd.f32 %v3893_v2, %v1479_v33  ;;  %v1959_v21 = vadd.f32 %v3893_v2, %v1958_v5 }
 0x248   :  { %v2916_v9 = vpop.f32.mrf.mxu0  ;;  %v3032_v47 = vpop.f32.mrf.mxu1 }
 0x249   :  { %v2137_v23 = vmax.f32 %v3852_v19, %v2088_v12  ;;  %v1561_v16 = vmax.f32 %v1480_v29, 0.0  ;;  %v2040_v25 = vmax.f32 %v1959_v21, 0.0  ;;  %v4260_v9 = vld [vmem:[#allocation2_spill] sm:$0xff] }
 0x24a   :  { %v1484_v54 = vpop.f32.mrf.mxu0  ;;  %v1963_v15 = vpop.f32.mrf.mxu1 }
 0x24b   :  { %2186 = vst [vmem:[%s4251_s3 + $0x130] sm:$0xff] %v2137_v23  ;;  %v2089_v37 = vmax.f32 %v1561_v16, %v2040_v25  ;;  %v1485_v2 = vadd.f32 %v4188_v58, %v1484_v54  ;;  %v1964_v22 = vadd.f32 %v4188_v58, %v1963_v15 }
 0x24c   :  { %v2919_v28 = vpop.f32.mrf.mxu0  ;;  %v3035_v19 = vpop.f32.mrf.mxu1 }
 0x24d   :  { %v2138_v27 = vmax.f32 %v3856_v43, %v2089_v37  ;;  %v1562_v8 = vmax.f32 %v1485_v2, 0.0  ;;  %v2041_v20 = vmax.f32 %v1964_v22, 0.0  ;;  %v4261_v28 = vld [vmem:[#allocation3_spill] sm:$0xff] }
 0x24e   :  { %v1487_v39 = vpop.f32.mrf.mxu0  ;;  %v1966_v63 = vpop.f32.mrf.mxu1 }
 0x24f   :  { %2187 = vst [vmem:[%s4251_s3 + $0x138] sm:$0xff] %v2138_v27  ;;  %v2090_v30 = vmax.f32 %v1562_v8, %v2041_v20  ;;  %v1488_v36 = vadd.f32 %v4188_v58, %v1487_v39  ;;  %v1967_v3 = vadd.f32 %v4188_v58, %v1966_v63 }
 0x250   :  { %v2920_v38 = vpop.f32.mrf.mxu0  ;;  %v3036_v44 = vpop.f32.mrf.mxu1 }
 0x251   :  { %v2139_v35 = vmax.f32 %v3870_v10, %v2090_v30  ;;  %v1563_v26 = vmax.f32 %v1488_v36, 0.0  ;;  %v2042_v48 = vmax.f32 %v1967_v3, 0.0  ;;  %v4262_v44 = vld [vmem:[#allocation4_spill] sm:$0xff] }
 0x252   :  { %v1492_v43 = vpop.f32.mrf.mxu0  ;;  %v1971_v61 = vpop.f32.mrf.mxu1 }
 0x253   :  { %2188 = vst [vmem:[%s4251_s3 + $0x140] sm:$0xff] %v2139_v35  ;;  %v2091_v57 = vmax.f32 %v1563_v26, %v2042_v48  ;;  %v1493_v41 = vadd.f32 %v4188_v58, %v1492_v43  ;;  %v1972_v18 = vadd.f32 %v4188_v58, %v1971_v61 }
 0x254   :  { %v2923_v59 = vpop.f32.mrf.mxu0  ;;  %v3039_v7 = vpop.f32.mrf.mxu1 }
 0x255   :  { %v2140_v13 = vmax.f32 %v3874_v34, %v2091_v57  ;;  %v1564_v45 = vmax.f32 %v1493_v41, 0.0  ;;  %v2043_v50 = vmax.f32 %v1972_v18, 0.0 }
 0x256   :  { %v1495_v10 = vpop.f32.mrf.mxu0  ;;  %v1974_v40 = vpop.f32.mrf.mxu1 }
 0x257   :  { %2189 = vst [vmem:[%s4251_s3 + $0x148] sm:$0xff] %v2140_v13  ;;  %v2092_v53 = vmax.f32 %v1564_v45, %v2043_v50  ;;  %v1496_v46 = vadd.f32 %v4188_v58, %v1495_v10  ;;  %v1975_v11 = vadd.f32 %v4188_v58, %v1974_v40  ;;  %v4263_v13 = vld [vmem:[#allocation5_spill] sm:$0xff] }
 0x258   :  { %v2924_v0 = vpop.f32.mrf.mxu0  ;;  %v3040_v1 = vpop.f32.mrf.mxu1 }
 0x259   :  { %v2141_v55 = vmax.f32 %v3888_v62, %v2092_v53  ;;  %v1565_v42 = vmax.f32 %v1496_v46, 0.0  ;;  %v2044_v56 = vmax.f32 %v1975_v11, 0.0  ;;  %v4264_v1 = vld [vmem:[#allocation6_spill] sm:$0xff] }
 0x25a   :  { %v1500_v34 = vpop.f32.mrf.mxu0  ;;  %v1979_v6 = vpop.f32.mrf.mxu1 }
 0x25b   :  { %2190 = vst [vmem:[%s4251_s3 + $0x150] sm:$0xff] %v2141_v55  ;;  %v2093_v49 = vmax.f32 %v1565_v42, %v2044_v56  ;;  %v1501_v60 = vadd.f32 %v4188_v58, %v1500_v34  ;;  %v1980_v51 = vadd.f32 %v4188_v58, %v1979_v6 }
 0x25c   :  { %v2927_v4 = vpop.f32.mrf.mxu0  ;;  %v3043_v32 = vpop.f32.mrf.mxu1 }
 0x25d   :  { %v2142_v24 = vmax.f32 %v3897_v31, %v2093_v49  ;;  %v1566_v14 = vmax.f32 %v1501_v60, 0.0  ;;  %v2045_v17 = vmax.f32 %v1980_v51, 0.0 }
 0x25e   :  { %v1503_v62 = vpop.f32.mrf.mxu0  ;;  %v1982_v52 = vpop.f32.mrf.mxu1 }
 0x25f   :  { %2191 = vst [vmem:[%s4251_s3 + $0x158] sm:$0xff] %v2142_v24  ;;  %v2094_v33 = vmax.f32 %v1566_v14, %v2045_v17  ;;  %v1504_v5 = vadd.f32 %v4188_v58, %v1503_v62  ;;  %v1983_v12 = vadd.f32 %v4188_v58, %v1982_v52 }
 0x260   :  { %v2928_v29 = vpop.f32.mrf.mxu0  ;;  %v3044_v21 = vpop.f32.mrf.mxu1 }
 0x261   :  { %v2143_v47 = vmax.f32 %v4260_v9, %v2094_v33  ;;  %v1567_v23 = vmax.f32 %v1504_v5, 0.0  ;;  %v2046_v16 = vmax.f32 %v1983_v12, 0.0 }
 0x262   :  { %v1508_v31 = vpop.f32.mrf.mxu0  ;;  %v1987_v25 = vpop.f32.mrf.mxu1 }
 0x263   :  { %2192 = vst [vmem:[%s4251_s3 + $0x160] sm:$0xff] %v2143_v47  ;;  %v2095_v54 = vmax.f32 %v1567_v23, %v2046_v16  ;;  %v1509_v15 = vadd.f32 %v4188_v58, %v1508_v31  ;;  %v1988_v37 = vadd.f32 %v4188_v58, %v1987_v25 }
 0x264   :  { %v2931_v2 = vpop.f32.mrf.mxu0  ;;  %v3047_v22 = vpop.f32.mrf.mxu1 }
 0x265   :  { %v2144_v19 = vmax.f32 %v4261_v28, %v2095_v54  ;;  %v1568_v27 = vmax.f32 %v1509_v15, 0.0  ;;  %v2047_v8 = vmax.f32 %v1988_v37, 0.0 }
 0x266   :  { %v1511_v20 = vpop.f32.mrf.mxu0  ;;  %v1990_v39 = vpop.f32.mrf.mxu1 }
 0x267   :  { %2193 = vst [vmem:[%s4251_s3 + $0x168] sm:$0xff] %v2144_v19  ;;  %v2096_v63 = vmax.f32 %v1568_v27, %v2047_v8  ;;  %v1512_v30 = vadd.f32 %v4188_v58, %v1511_v20  ;;  %v1991_v36 = vadd.f32 %v4188_v58, %v1990_v39 }
 0x268   :  { %v2932_v3 = vpop.f32.mrf.mxu0  ;;  %v3048_v38 = vpop.f32.mrf.mxu1 }
 0x269   :  { %v2145_v35 = vmax.f32 %v4262_v44, %v2096_v63  ;;  %v1569_v26 = vmax.f32 %v1512_v30, 0.0  ;;  %v2048_v48 = vmax.f32 %v1991_v36, 0.0 }
 0x26a   :  { %v1516_v43 = vpop.f32.mrf.mxu0  ;;  %v1995_v61 = vpop.f32.mrf.mxu1 }
 0x26b   :  { %2194 = vst [vmem:[%s4251_s3 + $0x170] sm:$0xff] %v2145_v35  ;;  %v2097_v57 = vmax.f32 %v1569_v26, %v2048_v48  ;;  %v1517_v41 = vadd.f32 %v4188_v58, %v1516_v43  ;;  %v1996_v18 = vadd.f32 %v4188_v58, %v1995_v61 }
 0x26c   :  { %v2935_v59 = vpop.f32.mrf.mxu0  ;;  %v3051_v7 = vpop.f32.mrf.mxu1 }
 0x26d   :  { %v2146_v45 = vmax.f32 %v4263_v13, %v2097_v57  ;;  %v1570_v50 = vmax.f32 %v1517_v41, 0.0  ;;  %v2049_v10 = vmax.f32 %v1996_v18, 0.0 }
 0x26e   :  { %v1519_v40 = vpop.f32.mrf.mxu0  ;;  %v1998_v53 = vpop.f32.mrf.mxu1 }
 0x26f   :  { %2195 = vst [vmem:[%s4251_s3 + $0x178] sm:$0xff] %v2146_v45  ;;  %v2098_v46 = vmax.f32 %v1570_v50, %v2049_v10 }
 0x270   :  { %v2936_v11 = vpop.f32.mrf.mxu0  ;;  %v3052_v0 = vpop.f32.mrf.mxu1 }
 0x271   :  { %v2147_v55 = vmax.f32 %v4264_v1, %v2098_v46 }
 0x273   :  { %2196 = vst [vmem:[%s4251_s3 + $0x180] sm:$0xff] %v2147_v55 }

// kernel: net_forward.4
= control target key start
LH: loop header
LB: loop body
LE: loop exit
PB: predicated region body
PF: predicated region fallthrough
CT: control target
= control target key end

     0   :  { %s1243_s1 = inlined_call_operand.vmem [shape: bf16[256,128], index: 1, kind: input, shape index: {}]   ;;  %s1244_s0 = inlined_call_operand.vmem [shape: bf16[4,56,256], index: 0, kind: input, shape index: {}]   ;;  %s1245_s2 = inlined_call_operand.vmem [shape: f32[1,128], index: 2, kind: input, shape index: {}]   ;;  %s1246_s3 = inlined_call_operand.vmem [shape: f32[56,128], index: 3, kind: output, shape index: {}]  }
   0x1   :  { %v875_v0 = vld [vmem:[%s1243_s1 + $0x78] sm:$0xff]   ;;  %v877_v2 = vld [vmem:[%s1243_s1 + $0x70] sm:$0xff]   ;;  %v879_v4 = vld [vmem:[%s1243_s1 + $0x68] sm:$0xff]  }
   0x2   :  { %v876_v1 = vld [vmem:[%s1243_s1 + $0x38] sm:$0xff]   ;;  %715 = vmatprep.subr.bf16.mxu0 %v875_v0  ;;  %755 = vmatprep.subr.bf16.mxu1 %v875_v0  ;;  %v878_v3 = vld [vmem:[%s1243_s1 + $0x30] sm:$0xff]   ;;  %v973_v5 = vld [vmem:[%s1243_s1 + $0x28] sm:$0xff]  }
   0x3   :  { %716 = vmatpush3.bf16.msra.mxu0 %v876_v1  ;;  %756 = vmatpush3.bf16.msra.mxu1 %v876_v1  ;;  %v978_v6 = vld [vmem:[%s1243_s1 + $0x60] sm:$0xff]   ;;  %v992_v8 = vld [vmem:[%s1243_s1 + $0x58] sm:$0xff]   ;;  %v1006_v10 = vld [vmem:[%s1243_s1 + $0x50] sm:$0xff]  }
   0x4   :  { %717 = vmatprep.subr.bf16.mxu0 %v877_v2  ;;  %757 = vmatprep.subr.bf16.mxu1 %v877_v2  ;;  %v985_v7 = vld [vmem:[%s1243_s1 + $0x20] sm:$0xff]   ;;  %v999_v9 = vld [vmem:[%s1243_s1 + $0x18] sm:$0xff]   ;;  %v1019_v13 = vld [vmem:[%s1243_s1 + $0x10] sm:$0xff]  }
   0x5   :  { %v893_v11 = vld [vmem:[%s1244_s0 + $0x4] ss:$8 sps:$4 sm:$0xff]   ;;  %v891_v18 = vld [vmem:[%s1244_s0] ss:$8 sps:$4 sm:$0xff]   ;;  %v897_v20 = vld [vmem:[%s1244_s0 + $0x14] ss:$8 sps:$4 sm:$0xff]  }
   0x6   :  { %v896_v12 = vld [vmem:[%s1244_s0 + $0x3c] ss:$8 sps:$4 sm:$0xff]   ;;  %v1026_v14 = vld [vmem:[%s1243_s1 + $0x48] sm:$0xff]   ;;  %226 = vmatprep.mubr.bf16.mxu0 %v893_v11  ;;  %v894_v19 = vld [vmem:[%s1244_s0 + $0x38] ss:$8 sps:$4 sm:$0xff]  }
   0x7   :  { %718 = vmatpush3.bf16.msra.mxu0 %v878_v3  ;;  %758 = vmatpush3.bf16.msra.mxu1 %v878_v3  ;;  %v1033_v15 = vld [vmem:[%s1243_s1 + $0x8] sm:$0xff]   ;;  %v1040_v16 = vld [vmem:[%s1243_s1 + $0x40] sm:$0xff]   ;;  %v901_v22 = vld [vmem:[%s1244_s0 + $0x10] ss:$8 sps:$4 sm:$0xff]  }
   0x8   :  { %719 = vmatprep.subr.bf16.mxu0 %v879_v4  ;;  %759 = vmatprep.subr.bf16.mxu1 %v879_v4  ;;  %v1047_v17 = vld [vmem:[%s1243_s1] sm:$0xff]   ;;  %v899_v21 = vld [vmem:[%s1244_s0 + $0x4c] ss:$8 sps:$4 sm:$0xff]   ;;  %v902_v23 = vld [vmem:[%s1244_s0 + $0x48] ss:$8 sps:$4 sm:$0xff]  }
   0x9   :  { %342 = vmatprep.mubr.bf16.mxu1 %v896_v12  ;;  %v903_v24 = vld [vmem:[%s1244_s0 + $0x24] ss:$8 sps:$4 sm:$0xff]   ;;  %v907_v26 = vld [vmem:[%s1244_s0 + $0x20] ss:$8 sps:$4 sm:$0xff]   ;;  %v54_v28 = vld [vmem:[%s1244_s0 + $0x30] sm:$0xff] }
   0xa   :  { %v905_v25 = vld [vmem:[%s1244_s0 + $0x5c] ss:$8 sps:$4 sm:$0xff]   ;;  %v908_v27 = vld [vmem:[%s1244_s0 + $0x58] ss:$8 sps:$4 sm:$0xff]   ;;  %v676_v29 = vld [vmem:[%s1244_s0 + $0x68] sm:$0xff]  ;;  %v653_v30 = vcombine.high %v54_v28, %v54_v28  ;;  %v652_v32 = vcombine.low %v54_v28, %v54_v28 }
   0xb   :  { %720 = vmatpush3.bf16.msra.mxu0 %v973_v5  ;;  %760 = vmatpush3.bf16.msra.mxu1 %v973_v5  ;;  %v684_v31 = vcombine.high %v676_v29, %v676_v29  ;;  %v683_v33 = vcombine.low %v676_v29, %v676_v29  ;;  %v915_v34 = vld [vmem:[%s1244_s0 + $0x74] ss:$8 sps:$4 sm:$0xff]   ;;  %v913_v36 = vld [vmem:[%s1244_s0 + $0x70] ss:$8 sps:$4 sm:$0xff]   ;;  %v919_v38 = vld [vmem:[%s1244_s0 + $0x84] ss:$8 sps:$4 sm:$0xff]  }
   0xc   :  { %721 = vmatprep.subr.bf16.mxu0 %v978_v6  ;;  %761 = vmatprep.subr.bf16.mxu1 %v978_v6  ;;  %v918_v35 = vld [vmem:[%s1244_s0 + $0xac] ss:$8 sps:$4 sm:$0xff]   ;;  %v916_v37 = vld [vmem:[%s1244_s0 + $0xa8] ss:$8 sps:$4 sm:$0xff]   ;;  %v921_v39 = vld [vmem:[%s1244_s0 + $0xbc] ss:$8 sps:$4 sm:$0xff]  }
   0xd   :  { %v923_v40 = vld [vmem:[%s1244_s0 + $0x80] ss:$8 sps:$4 sm:$0xff]   ;;  %v925_v42 = vld [vmem:[%s1244_s0 + $0x94] ss:$8 sps:$4 sm:$0xff]   ;;  %v929_v46 = vld [vmem:[%s1244_s0 + $0x90] ss:$8 sps:$4 sm:$0xff]  }
   0xe   :  { %v924_v41 = vld [vmem:[%s1244_s0 + $0xb8] ss:$8 sps:$4 sm:$0xff]   ;;  %v927_v43 = vld [vmem:[%s1244_s0 + $0xcc] ss:$8 sps:$4 sm:$0xff]   ;;  %v930_v47 = vld [vmem:[%s1244_s0 + $0xc8] ss:$8 sps:$4 sm:$0xff]  }
   0xf   :  { %722 = vmatpush3.bf16.msra.mxu0 %v985_v7  ;;  %762 = vmatpush3.bf16.msra.mxu1 %v985_v7  ;;  %v691_v44 = vld [vmem:[%s1244_s0 + $0xa0] sm:$0xff]  ;;  %v706_v45 = vld [vmem:[%s1244_s0 + $0xd8] sm:$0xff] }
  0x10   :  { %723 = vmatprep.subr.bf16.mxu0 %v992_v8  ;;  %763 = vmatprep.subr.bf16.mxu1 %v992_v8  ;;  %v699_v48 = vcombine.high %v691_v44, %v691_v44  ;;  %v714_v49 = vcombine.high %v706_v45, %v706_v45  ;;  %v698_v50 = vcombine.low %v691_v44, %v691_v44 }
  0x11   :  { %v713_v51 = vcombine.low %v706_v45, %v706_v45 }
  0x13   :  { %724 = vmatpush3.bf16.msra.mxu0 %v999_v9  ;;  %764 = vmatpush3.bf16.msra.mxu1 %v999_v9 }
  0x14   :  { %725 = vmatprep.subr.bf16.mxu0 %v1006_v10  ;;  %765 = vmatprep.subr.bf16.mxu1 %v1006_v10 }
  0x17   :  { %726 = vmatpush3.bf16.msra.mxu0 %v1019_v13  ;;  %766 = vmatpush3.bf16.msra.mxu1 %v1019_v13 }
  0x18   :  { %727 = vmatprep.subr.bf16.mxu0 %v1026_v14  ;;  %767 = vmatprep.subr.bf16.mxu1 %v1026_v14 }
  0x1b   :  { %728 = vmatpush3.bf16.msra.mxu0 %v1033_v15  ;;  %768 = vmatpush3.bf16.msra.mxu1 %v1033_v15 }
  0x1c   :  { %729 = vmatprep.subr.bf16.mxu0 %v1040_v16  ;;  %769 = vmatprep.subr.bf16.mxu1 %v1040_v16 }
  0x1f   :  { %730 = vmatpush3.bf16.msra.mxu0 %v1047_v17  ;;  %770 = vmatpush3.bf16.msra.mxu1 %v1047_v17 }
  0x20   :  { %795 = vmatprep.subr.bf16.mxu0 %v875_v0  ;;  %835 = vmatprep.subr.bf16.mxu1 %v875_v0 }
  0x22   :  { %227 = vmatmul.mubr.bf16.vlgmr.msra.gmra.mxu0 %v891_v18  ;;  %343 = vmatmul.mubr.bf16.vlgmr.msra.gmra.mxu1 %v894_v19 }
  0x23   :  { %796 = vmatpush3.bf16.msra.mxu0 %v876_v1  ;;  %836 = vmatpush3.bf16.msra.mxu1 %v876_v1 }
  0x24   :  { %797 = vmatprep.subr.bf16.mxu0 %v877_v2  ;;  %837 = vmatprep.subr.bf16.mxu1 %v877_v2 }
  0x25   :  { %234 = vmatprep.mubr.bf16.mxu0 %v897_v20  ;;  %350 = vmatprep.mubr.bf16.mxu1 %v899_v21 }
  0x27   :  { %798 = vmatpush3.bf16.msra.mxu0 %v878_v3  ;;  %838 = vmatpush3.bf16.msra.mxu1 %v878_v3 }
  0x28   :  { %799 = vmatprep.subr.bf16.mxu0 %v879_v4  ;;  %839 = vmatprep.subr.bf16.mxu1 %v879_v4 }
  0x2a   :  { %235 = vmatmul.mubr.bf16.gmra.mxu0 %v901_v22  ;;  %351 = vmatmul.mubr.bf16.gmra.mxu1 %v902_v23 }
  0x2b   :  { %800 = vmatpush3.bf16.msra.mxu0 %v973_v5  ;;  %840 = vmatpush3.bf16.msra.mxu1 %v973_v5 }
  0x2c   :  { %801 = vmatprep.subr.bf16.mxu0 %v978_v6  ;;  %841 = vmatprep.subr.bf16.mxu1 %v978_v6 }
  0x2d   :  { %242 = vmatprep.mubr.bf16.mxu0 %v903_v24  ;;  %358 = vmatprep.mubr.bf16.mxu1 %v905_v25 }
  0x2f   :  { %802 = vmatpush3.bf16.msra.mxu0 %v985_v7  ;;  %842 = vmatpush3.bf16.msra.mxu1 %v985_v7 }
  0x30   :  { %803 = vmatprep.subr.bf16.mxu0 %v992_v8  ;;  %843 = vmatprep.subr.bf16.mxu1 %v992_v8 }
  0x32   :  { %243 = vmatmul.mubr.bf16.gmra.mxu0 %v907_v26  ;;  %359 = vmatmul.mubr.bf16.gmra.mxu1 %v908_v27 }
  0x33   :  { %804 = vmatpush3.bf16.msra.mxu0 %v999_v9  ;;  %844 = vmatpush3.bf16.msra.mxu1 %v999_v9 }
  0x34   :  { %805 = vmatprep.subr.bf16.mxu0 %v1006_v10  ;;  %845 = vmatprep.subr.bf16.mxu1 %v1006_v10 }
  0x35   :  { %250 = vmatprep.mubr.bf16.mxu0 %v653_v30  ;;  %366 = vmatprep.mubr.bf16.mxu1 %v684_v31 }
  0x37   :  { %806 = vmatpush3.bf16.msra.mxu0 %v1019_v13  ;;  %846 = vmatpush3.bf16.msra.mxu1 %v1019_v13 }
  0x38   :  { %807 = vmatprep.subr.bf16.mxu0 %v1026_v14  ;;  %847 = vmatprep.subr.bf16.mxu1 %v1026_v14 }
  0x3a   :  { %251 = vmatmul.mubr.bf16.gmra.mxu0 %v652_v32  ;;  %367 = vmatmul.mubr.bf16.gmra.mxu1 %v683_v33 }
  0x3b   :  { %808 = vmatpush3.bf16.msra.mxu0 %v1033_v15  ;;  %848 = vmatpush3.bf16.msra.mxu1 %v1033_v15 }
  0x3c   :  { %809 = vmatprep.subr.bf16.mxu0 %v1040_v16  ;;  %849 = vmatprep.subr.bf16.mxu1 %v1040_v16 }
  0x3d   :  { %465 = vmatprep.mubr.bf16.mxu0 %v915_v34  ;;  %581 = vmatprep.mubr.bf16.mxu1 %v918_v35 }
  0x3f   :  { %810 = vmatpush3.bf16.msra.mxu0 %v1047_v17  ;;  %850 = vmatpush3.bf16.msra.mxu1 %v1047_v17  ;;  %v1180_v17 = vld [vmem:[%s1245_s2] ss:$0 sm:$0xff] }
  0x42   :  { %466 = vmatmul.mubr.bf16.vlgmr.msra.gmra.mxu0 %v913_v36  ;;  %582 = vmatmul.mubr.bf16.vlgmr.msra.gmra.mxu1 %v916_v37 }
  0x43   :  { %473 = vmatprep.mubr.bf16.mxu0 %v919_v38  ;;  %589 = vmatprep.mubr.bf16.mxu1 %v921_v39 }
  0x4a   :  { %474 = vmatmul.mubr.bf16.gmra.mxu0 %v923_v40  ;;  %590 = vmatmul.mubr.bf16.gmra.mxu1 %v924_v41 }
  0x4b   :  { %481 = vmatprep.mubr.bf16.mxu0 %v925_v42  ;;  %597 = vmatprep.mubr.bf16.mxu1 %v927_v43 }
  0x52   :  { %482 = vmatmul.mubr.bf16.gmra.mxu0 %v929_v46  ;;  %598 = vmatmul.mubr.bf16.gmra.mxu1 %v930_v47 }
  0x53   :  { %489 = vmatprep.mubr.bf16.mxu0 %v699_v48  ;;  %605 = vmatprep.mubr.bf16.mxu1 %v714_v49 }
  0x5a   :  { %490 = vmatmul.mubr.bf16.gmra.mxu0 %v698_v50  ;;  %606 = vmatmul.mubr.bf16.gmra.mxu1 %v713_v51 }
  0xe2   :  { %v731_v52 = vpop.f32.mrf.mxu0  ;;  %v771_v53 = vpop.f32.mrf.mxu1 }
  0xe4   :  { %v732_v54 = vpop.f32.mrf.mxu0  ;;  %v772_v55 = vpop.f32.mrf.mxu1 }
  0xe5   :  { %v733_v16 = vadd.f32 %v732_v54, %v731_v52  ;;  %v773_v18 = vadd.f32 %v772_v55, %v771_v53 }
  0xe6   :  { %v734_v56 = vpop.f32.mrf.mxu0  ;;  %v774_v57 = vpop.f32.mrf.mxu1 }
  0xe7   :  { %v229_v23 = vadd.f32 %v733_v16, %v1180_v17  ;;  %v345_v24 = vadd.f32 %v773_v18, %v1180_v17 }
  0xe8   :  { %v735_v58 = vpop.f32.mrf.mxu0  ;;  %v775_v59 = vpop.f32.mrf.mxu1 }
  0xe9   :  { %v736_v25 = vadd.f32 %v735_v58, %v734_v56  ;;  %v776_v26 = vadd.f32 %v775_v59, %v774_v57  ;;  %v258_v31 = vmax.f32 %v229_v23, 0.0  ;;  %v374_v34 = vmax.f32 %v345_v24, 0.0 }
  0xea   :  { %v737_v60 = vpop.f32.mrf.mxu0  ;;  %v777_v61 = vpop.f32.mrf.mxu1 }
  0xeb   :  { %v232_v35 = vadd.f32 %v736_v25, %v1180_v17  ;;  %v348_v36 = vadd.f32 %v776_v26, %v1180_v17  ;;  %v381_v51 = vmax.f32 %v258_v31, %v374_v34 }
  0xec   :  { %v738_v62 = vpop.f32.mrf.mxu0  ;;  %v778_v63 = vpop.f32.mrf.mxu1 }
  0xed   :  { %v739_v37 = vadd.f32 %v738_v62, %v737_v60  ;;  %v779_v40 = vadd.f32 %v778_v63, %v777_v61  ;;  %v259_v52 = vmax.f32 %v232_v35, 0.0  ;;  %v375_v53 = vmax.f32 %v348_v36, 0.0 }
  0xee   :  { %v740_v0 = vpop.f32.mrf.mxu0  ;;  %v780_v1 = vpop.f32.mrf.mxu1 }
  0xef   :  { %v237_v54 = vadd.f32 %v739_v37, %v1180_v17  ;;  %v353_v57 = vadd.f32 %v779_v40, %v1180_v17  ;;  %v382_v18 = vmax.f32 %v259_v52, %v375_v53 }
  0xf0   :  { %v741_v2 = vpop.f32.mrf.mxu0  ;;  %v781_v3 = vpop.f32.mrf.mxu1 }
  0xf1   :  { %v742_v43 = vadd.f32 %v741_v2, %v740_v0  ;;  %v782_v44 = vadd.f32 %v781_v3, %v780_v1  ;;  %v260_v24 = vmax.f32 %v237_v54, 0.0  ;;  %v376_v25 = vmax.f32 %v353_v57, 0.0 }
  0xf2   :  { %v1153_v4 = vpop.f32.mrf.mxu0  ;;  %v1155_v5 = vpop.f32.mrf.mxu1 }
  0xf3   :  { %v240_v61 = vadd.f32 %v742_v43, %v1180_v17  ;;  %v356_v62 = vadd.f32 %v782_v44, %v1180_v17 }
  0xf4   :  { %v1157_v6 = vpop.f32.mrf.mxu0  ;;  %v1159_v7 = vpop.f32.mrf.mxu1 }
  0xf6   :  { %v1161_v8 = vpop.f32.mrf.mxu0  ;;  %v1163_v9 = vpop.f32.mrf.mxu1 }
  0xf8   :  { %v1165_v10 = vpop.f32.mrf.mxu0  ;;  %v1167_v11 = vpop.f32.mrf.mxu1 }
  0xf9   :  { %v788_v43 = vadd.f32 %v1167_v11, %v1163_v9 }
  0xfa   :  { %v1169_v12 = vpop.f32.mrf.mxu0  ;;  %v1171_v13 = vpop.f32.mrf.mxu1 }
  0xfc   :  { %v1173_v14 = vpop.f32.mrf.mxu0  ;;  %v1175_v15 = vpop.f32.mrf.mxu1 }
  0xfd   :  { %v751_v53 = vadd.f32 %v1173_v14, %v1169_v12 }
  0xfe   :  { %v752_v19 = vpop.f32.mrf.mxu0  ;;  %v792_v20 = vpop.f32.mrf.mxu1 }
  0xff   :  { %v745_v19 = vadd.f32 %v1157_v6, %v1153_v4  ;;  %v785_v20 = vadd.f32 %v1159_v7, %v1155_v5 }
 0x100   :  { %v753_v21 = vpop.f32.mrf.mxu0  ;;  %v793_v22 = vpop.f32.mrf.mxu1 }
 0x101   :  { %v361_v34 = vadd.f32 %v785_v20, %v1180_v17 }
 0x102   :  { %v811_v27 = vpop.f32.mrf.mxu0  ;;  %v851_v28 = vpop.f32.mrf.mxu1 }
 0x103   :  { %v378_v52 = vmax.f32 %v361_v34, 0.0 }
 0x104   :  { %v812_v29 = vpop.f32.mrf.mxu0  ;;  %v852_v30 = vpop.f32.mrf.mxu1 }
 0x105   :  { %v813_v32 = vadd.f32 %v812_v29, %v811_v27  ;;  %v853_v33 = vadd.f32 %v852_v30, %v851_v28  ;;  %v261_v28 = vmax.f32 %v240_v61, 0.0  ;;  %v377_v29 = vmax.f32 %v356_v62, 0.0 }
 0x106   :  { %v814_v38 = vpop.f32.mrf.mxu0  ;;  %v854_v39 = vpop.f32.mrf.mxu1 }
 0x107   :  { %v468_v41 = vadd.f32 %v813_v32, %v1180_v17  ;;  %v584_v42 = vadd.f32 %v853_v33, %v1180_v17  ;;  %v245_v33 = vadd.f32 %v745_v19, %v1180_v17 }
 0x108   :  { %v815_v45 = vpop.f32.mrf.mxu0  ;;  %v855_v46 = vpop.f32.mrf.mxu1 }
 0x109   :  { %v497_v47 = vmax.f32 %v468_v41, 0.0  ;;  %v613_v48 = vmax.f32 %v584_v42, 0.0  ;;  %v816_v49 = vadd.f32 %v815_v45, %v814_v38  ;;  %v856_v50 = vadd.f32 %v855_v46, %v854_v39 }
 0x10a   :  { %v817_v55 = vpop.f32.mrf.mxu0  ;;  %v857_v56 = vpop.f32.mrf.mxu1  ;;  %v383_v38 = vmax.f32 %v260_v24, %v376_v25  ;;  %v384_v41 = vmax.f32 %v261_v28, %v377_v29  ;;  %v748_v42 = vadd.f32 %v1165_v10, %v1161_v8  ;;  %v791_v8 = vadd.f32 %v1175_v15, %v1171_v13 }
 0x10b   :  { %v620_v58 = vmax.f32 %v497_v47, %v613_v48  ;;  %v471_v59 = vadd.f32 %v816_v49, %v1180_v17  ;;  %v587_v60 = vadd.f32 %v856_v50, %v1180_v17 }
 0x10c   :  { %v818_v63 = vpop.f32.mrf.mxu0  ;;  %v858_v0 = vpop.f32.mrf.mxu1  ;;  %v248_v57 = vadd.f32 %v748_v42, %v1180_v17 }
 0x10d   :  { %v627_v1 = vmax.f32 %v381_v51, %v620_v58  ;;  %v498_v2 = vmax.f32 %v471_v59, 0.0  ;;  %v614_v3 = vmax.f32 %v587_v60, 0.0  ;;  %v819_v16 = vadd.f32 %v818_v63, %v817_v55 }
 0x10e   :  { %v859_v21 = vadd.f32 %v858_v0, %v857_v56  ;;  %v820_v22 = vpop.f32.mrf.mxu0  ;;  %v860_v23 = vpop.f32.mrf.mxu1  ;;  %v262_v51 = vmax.f32 %v245_v33, 0.0  ;;  %v364_v58 = vadd.f32 %v788_v43, %v1180_v17 }
 0x10f   :  { %634 = vst [vmem:[%s1246_s3] sm:$0xff] %v627_v1  ;;  %v621_v26 = vmax.f32 %v498_v2, %v614_v3  ;;  %v476_v27 = vadd.f32 %v819_v16, %v1180_v17  ;;  %v253_v1 = vadd.f32 %v751_v53, %v1180_v17  ;;  %v369_v2 = vadd.f32 %v791_v8, %v1180_v17 }
 0x110   :  { %v592_v30 = vadd.f32 %v859_v21, %v1180_v17  ;;  %v821_v4 = vpop.f32.mrf.mxu0  ;;  %v861_v6 = vpop.f32.mrf.mxu1  ;;  %v385_v13 = vmax.f32 %v262_v51, %v378_v52  ;;  %v379_v19 = vmax.f32 %v364_v58, 0.0 }
 0x111   :  { %v628_v31 = vmax.f32 %v382_v18, %v621_v26  ;;  %v499_v5 = vmax.f32 %v476_v27, 0.0  ;;  %v822_v7 = vadd.f32 %v821_v4, %v820_v22  ;;  %v862_v32 = vadd.f32 %v861_v6, %v860_v23 }
 0x112   :  { %v615_v35 = vmax.f32 %v592_v30, 0.0  ;;  %v823_v36 = vpop.f32.mrf.mxu0  ;;  %v863_v37 = vpop.f32.mrf.mxu1  ;;  %v263_v18 = vmax.f32 %v248_v57, 0.0  ;;  %v264_v30 = vmax.f32 %v253_v1, 0.0  ;;  %v380_v4 = vmax.f32 %v369_v2, 0.0 }
 0x113   :  { %635 = vst [vmem:[%s1246_s3 + $0x8] sm:$0xff] %v628_v31  ;;  %v479_v39 = vadd.f32 %v822_v7, %v1180_v17  ;;  %v595_v40 = vadd.f32 %v862_v32, %v1180_v17 }
 0x114   :  { %v622_v44 = vmax.f32 %v499_v5, %v615_v35  ;;  %v824_v45 = vpop.f32.mrf.mxu0  ;;  %v864_v46 = vpop.f32.mrf.mxu1  ;;  %v386_v5 = vmax.f32 %v263_v18, %v379_v19 }
 0x115   :  { %v500_v47 = vmax.f32 %v479_v39, 0.0  ;;  %v616_v48 = vmax.f32 %v595_v40, 0.0  ;;  %v825_v49 = vadd.f32 %v824_v45, %v823_v36  ;;  %v865_v50 = vadd.f32 %v864_v46, %v863_v37 }
 0x116   :  { %v629_v54 = vmax.f32 %v383_v38, %v622_v44  ;;  %v826_v55 = vpop.f32.mrf.mxu0  ;;  %v866_v56 = vpop.f32.mrf.mxu1  ;;  %v387_v37 = vmax.f32 %v264_v30, %v380_v4 }
 0x117   :  { %v623_v10 = vmax.f32 %v500_v47, %v616_v48  ;;  %v484_v9 = vadd.f32 %v825_v49, %v1180_v17  ;;  %v600_v11 = vadd.f32 %v865_v50, %v1180_v17 }
 0x118   :  { %636 = vst [vmem:[%s1246_s3 + $0x10] sm:$0xff] %v629_v54  ;;  %v827_v12 = vpop.f32.mrf.mxu0  ;;  %v867_v14 = vpop.f32.mrf.mxu1 }
 0x119   :  { %v630_v59 = vmax.f32 %v384_v41, %v623_v10  ;;  %v501_v60 = vmax.f32 %v484_v9, 0.0  ;;  %v617_v61 = vmax.f32 %v600_v11, 0.0  ;;  %v828_v62 = vadd.f32 %v827_v12, %v826_v55 }
 0x11a   :  { %v868_v15 = vadd.f32 %v867_v14, %v866_v56  ;;  %v829_v63 = vpop.f32.mrf.mxu0  ;;  %v869_v0 = vpop.f32.mrf.mxu1 }
 0x11b   :  { %637 = vst [vmem:[%s1246_s3 + $0x18] sm:$0xff] %v630_v59  ;;  %v624_v3 = vmax.f32 %v501_v60, %v617_v61  ;;  %v487_v16 = vadd.f32 %v828_v62, %v1180_v17 }
 0x11c   :  { %v603_v20 = vadd.f32 %v868_v15, %v1180_v17  ;;  %v830_v21 = vpop.f32.mrf.mxu0  ;;  %v870_v22 = vpop.f32.mrf.mxu1 }
 0x11d   :  { %v631_v23 = vmax.f32 %v385_v13, %v624_v3  ;;  %v502_v24 = vmax.f32 %v487_v16, 0.0  ;;  %v831_v25 = vadd.f32 %v830_v21, %v829_v63  ;;  %v871_v26 = vadd.f32 %v870_v22, %v869_v0 }
 0x11e   :  { %v618_v27 = vmax.f32 %v603_v20, 0.0  ;;  %v832_v28 = vpop.f32.mrf.mxu0  ;;  %v872_v29 = vpop.f32.mrf.mxu1 }
 0x11f   :  { %638 = vst [vmem:[%s1246_s3 + $0x20] sm:$0xff] %v631_v23  ;;  %v492_v6 = vadd.f32 %v831_v25, %v1180_v17  ;;  %v608_v31 = vadd.f32 %v871_v26, %v1180_v17 }
 0x120   :  { %v625_v7 = vmax.f32 %v502_v24, %v618_v27  ;;  %v833_v32 = vpop.f32.mrf.mxu0  ;;  %v873_v33 = vpop.f32.mrf.mxu1 }
 0x121   :  { %v503_v34 = vmax.f32 %v492_v6, 0.0  ;;  %v619_v35 = vmax.f32 %v608_v31, 0.0 }
 0x122   :  { %v632_v36 = vmax.f32 %v386_v5, %v625_v7 }
 0x123   :  { %v626_v38 = vmax.f32 %v503_v34, %v619_v35 }
 0x124   :  { %639 = vst [vmem:[%s1246_s3 + $0x28] sm:$0xff] %v632_v36 }
 0x125   :  { %v633_v39 = vmax.f32 %v387_v37, %v626_v38 }
 0x127   :  { %640 = vst [vmem:[%s1246_s3 + $0x30] sm:$0xff] %v633_v39 }

// kernel: net_forward.5
= control target key start
LH: loop header
LB: loop body
LE: loop exit
PB: predicated region body
PF: predicated region fallthrough
CT: control target
= control target key end

     0   :  { %v828_v39 = vmov 0.0   ;;  %vm829_vm0 = vmmov 0   ;;  %s1050_s1 = inlined_call_operand.vmem [shape: bf16[512,128], index: 1, kind: input, shape index: {}]   ;;  %s1051_s0 = inlined_call_operand.vmem [shape: bf16[8,512], index: 0, kind: input, shape index: {}]   ;;  %s1052_s3 = inlined_call_operand.vmem [shape: bf16[128,128], index: 3, kind: input, shape index: {}]   ;;  %s1053_s5 = inlined_call_operand.vmem [shape: bf16[128,128], index: 5, kind: input, shape index: {}]   ;;  %s1054_s2 = inlined_call_operand.vmem [shape: f32[1,128], index: 2, kind: input, shape index: {}]   ;;  %s1055_s4 = inlined_call_operand.vmem [shape: f32[1,128], index: 4, kind: input, shape index: {}]   ;;  %s1056_s6 = inlined_call_operand.vmem [shape: f32[1,128], index: 6, kind: input, shape index: {}]   ;;  %s1057_s7 = inlined_call_operand.vmem [shape: f32[8,128], index: 7, kind: output, shape index: {}]  }
   0x1   :  { %v776_v0 = vld [vmem:[%s1050_s1 + $0x78] sm:$0xff]   ;;  %v780_v4 = vld [vmem:[%s1050_s1 + $0x70] sm:$0xff]   ;;  %v784_v8 = vld [vmem:[%s1050_s1 + $0x68] sm:$0xff]  }
   0x2   :  { %v777_v1 = vld [vmem:[%s1050_s1 + $0xf8] sm:$0xff]   ;;  %672 = vmatprep.subr.bf16.mxu0 %v776_v0  ;;  %v781_v5 = vld [vmem:[%s1050_s1 + $0xf0] sm:$0xff]   ;;  %v785_v9 = vld [vmem:[%s1050_s1 + $0xe8] sm:$0xff]  }
   0x3   :  { %v778_v2 = vld [vmem:[%s1050_s1 + $0x38] sm:$0xff]   ;;  %694 = vmatprep.subr.bf16.mxu1 %v777_v1  ;;  %v782_v6 = vld [vmem:[%s1050_s1 + $0x30] sm:$0xff]   ;;  %v786_v10 = vld [vmem:[%s1050_s1 + $0x28] sm:$0xff]  }
   0x4   :  { %v779_v3 = vld [vmem:[%s1050_s1 + $0xb8] sm:$0xff]   ;;  %673 = vmatpush3.bf16.msra.mxu0 %v778_v2  ;;  %v783_v7 = vld [vmem:[%s1050_s1 + $0xb0] sm:$0xff]   ;;  %v787_v11 = vld [vmem:[%s1050_s1 + $0xa8] sm:$0xff]  }
   0x5   :  { %695 = vmatpush3.bf16.msra.mxu1 %v779_v3  ;;  %674 = vmatprep.subr.bf16.mxu0 %v780_v4  ;;  %v788_v12 = vld [vmem:[%s1050_s1 + $0x60] sm:$0xff]   ;;  %v792_v16 = vld [vmem:[%s1050_s1 + $0x58] sm:$0xff]   ;;  %v796_v20 = vld [vmem:[%s1050_s1 + $0x50] sm:$0xff]  }
   0x6   :  { %696 = vmatprep.subr.bf16.mxu1 %v781_v5  ;;  %v789_v13 = vld [vmem:[%s1050_s1 + $0xe0] sm:$0xff]   ;;  %v793_v17 = vld [vmem:[%s1050_s1 + $0xd8] sm:$0xff]   ;;  %v797_v21 = vld [vmem:[%s1050_s1 + $0xd0] sm:$0xff]  }
   0x7   :  { %v790_v14 = vld [vmem:[%s1050_s1 + $0x20] sm:$0xff]   ;;  %v794_v18 = vld [vmem:[%s1050_s1 + $0x18] sm:$0xff]   ;;  %v798_v22 = vld [vmem:[%s1050_s1 + $0x10] sm:$0xff]  }
   0x8   :  { %675 = vmatpush3.bf16.msra.mxu0 %v782_v6  ;;  %v791_v15 = vld [vmem:[%s1050_s1 + $0xa0] sm:$0xff]   ;;  %v795_v19 = vld [vmem:[%s1050_s1 + $0x98] sm:$0xff]   ;;  %v799_v23 = vld [vmem:[%s1050_s1 + $0x90] sm:$0xff]  }
   0x9   :  { %697 = vmatpush3.bf16.msra.mxu1 %v783_v7  ;;  %676 = vmatprep.subr.bf16.mxu0 %v784_v8  ;;  %v800_v24 = vld [vmem:[%s1050_s1 + $0x48] sm:$0xff]   ;;  %v804_v28 = vld [vmem:[%s1050_s1 + $0x40] sm:$0xff]   ;;  %v812_v38 = vld [vmem:[%s1052_s3 + $0x38] sm:$0xff]  }
   0xa   :  { %698 = vmatprep.subr.bf16.mxu1 %v785_v9  ;;  %v801_v25 = vld [vmem:[%s1050_s1 + $0xc8] sm:$0xff]   ;;  %v805_v29 = vld [vmem:[%s1050_s1 + $0xc0] sm:$0xff]   ;;  %v813_v40 = vld [vmem:[%s1052_s3 + $0x30] sm:$0xff]  }
   0xb   :  { %v802_v26 = vld [vmem:[%s1050_s1 + $0x8] sm:$0xff]   ;;  %v806_v30 = vld [vmem:[%s1050_s1] sm:$0xff]   ;;  %v816_v43 = vld [vmem:[%s1052_s3 + $0x18] sm:$0xff]  }
   0xc   :  { %677 = vmatpush3.bf16.msra.mxu0 %v786_v10  ;;  %v803_v27 = vld [vmem:[%s1050_s1 + $0x88] sm:$0xff]   ;;  %v807_v31 = vld [vmem:[%s1050_s1 + $0x80] sm:$0xff]   ;;  %v817_v44 = vld [vmem:[%s1052_s3 + $0x10] sm:$0xff]  }
   0xd   :  { %699 = vmatpush3.bf16.msra.mxu1 %v787_v11  ;;  %678 = vmatprep.subr.bf16.mxu0 %v788_v12  ;;  %v27_v32 = vld [vmem:[%s1051_s0] sm:$0xff]  ;;  %v28_v33 = vld [vmem:[%s1051_s0 + $0x8] sm:$0xff]  ;;  %v820_v47 = vld [vmem:[%s1053_s5 + $0x38] sm:$0xff]  }
   0xe   :  { %700 = vmatprep.subr.bf16.mxu1 %v789_v13  ;;  %v618_v34 = vcombine.low %v27_v32, %v27_v32  ;;  %v619_v35 = vcombine.high %v27_v32, %v27_v32  ;;  %v620_v36 = vcombine.low %v28_v33, %v28_v33  ;;  %v621_v37 = vcombine.high %v28_v33, %v28_v33  ;;  %v814_v41 = vld [vmem:[%s1052_s3 + $0x28] sm:$0xff]   ;;  %v815_v42 = vld [vmem:[%s1052_s3 + $0x20] sm:$0xff]   ;;  %v821_v48 = vld [vmem:[%s1053_s5 + $0x30] sm:$0xff]  }
   0xf   :  { %v818_v45 = vld [vmem:[%s1052_s3 + $0x8] sm:$0xff]   ;;  %v819_v46 = vld [vmem:[%s1052_s3] sm:$0xff]   ;;  %v824_v51 = vld [vmem:[%s1053_s5 + $0x18] sm:$0xff]  }
  0x10   :  { %679 = vmatpush3.bf16.msra.mxu0 %v790_v14  ;;  %338 = vmatprep.mubr.bf16.mxu0 %v619_v35  ;;  %v822_v49 = vld [vmem:[%s1053_s5 + $0x28] sm:$0xff]   ;;  %v823_v50 = vld [vmem:[%s1053_s5 + $0x20] sm:$0xff]   ;;  %v825_v52 = vld [vmem:[%s1053_s5 + $0x10] sm:$0xff]  }
  0x11   :  { %701 = vmatpush3.bf16.msra.mxu1 %v791_v15  ;;  %680 = vmatprep.subr.bf16.mxu0 %v792_v16  ;;  %v617_v55 = vld [vmem:[%s1054_s2] ss:$0 sm:$0xff]  ;;  %v826_v4 = vld [vmem:[%s1053_s5 + $0x8] sm:$0xff]  }
  0x12   :  { %702 = vmatprep.subr.bf16.mxu1 %v793_v17  ;;  %378 = vmatprep.mubr.bf16.mxu1 %v621_v37  ;;  %v827_v5 = vld [vmem:[%s1053_s5] sm:$0xff]  }
  0x13   :  { %v654_v6 = vld [vmem:[%s1055_s4] ss:$0 sm:$0xff] }
  0x14   :  { %681 = vmatpush3.bf16.msra.mxu0 %v794_v18  ;;  %v663_v14 = vld [vmem:[%s1056_s6] ss:$0 sm:$0xff] }
  0x15   :  { %703 = vmatpush3.bf16.msra.mxu1 %v795_v19  ;;  %682 = vmatprep.subr.bf16.mxu0 %v796_v20 }
  0x16   :  { %704 = vmatprep.subr.bf16.mxu1 %v797_v21 }
  0x18   :  { %683 = vmatpush3.bf16.msra.mxu0 %v798_v22 }
  0x19   :  { %705 = vmatpush3.bf16.msra.mxu1 %v799_v23  ;;  %684 = vmatprep.subr.bf16.mxu0 %v800_v24 }
  0x1a   :  { %706 = vmatprep.subr.bf16.mxu1 %v801_v25 }
  0x1c   :  { %685 = vmatpush3.bf16.msra.mxu0 %v802_v26 }
  0x1d   :  { %707 = vmatpush3.bf16.msra.mxu1 %v803_v27  ;;  %686 = vmatprep.subr.bf16.mxu0 %v804_v28 }
  0x1e   :  { %708 = vmatprep.subr.bf16.mxu1 %v805_v29 }
  0x20   :  { %687 = vmatpush3.bf16.msra.mxu0 %v806_v30 }
  0x21   :  { %709 = vmatpush3.bf16.msra.mxu1 %v807_v31  ;;  %734 = vmatprep.subr.bf16.mxu0 %v828_v39 }
  0x22   :  { %754 = vmatprep.subr.bf16.mxu1 %v828_v39 }
  0x23   :  { %339 = vmatmul.mubr.bf16.vlgmr.msra.gmra.mxu0 %v618_v34 }
  0x24   :  { %379 = vmatmul.mubr.bf16.vlgmr.msra.gmra.mxu1 %v620_v36  ;;  %735 = vmatpush3.bf16.msra.mxu0 %v812_v38 }
  0x25   :  { %736 = vmatprep.subr.bf16.mxu0 %v828_v39  ;;  %750 = vmatprep.mubr.msk.bf16.mxu0 %vm829_vm0, %v828_v39 }
  0x26   :  { %770 = vmatprep.mubr.msk.bf16.mxu1 %vm829_vm0, %v828_v39  ;;  %755 = vmatpush3.bf16.msra.mxu1 %v820_v47 }
  0x27   :  { %756 = vmatprep.subr.bf16.mxu1 %v828_v39 }
  0x28   :  { %737 = vmatpush3.bf16.msra.mxu0 %v813_v40 }
  0x29   :  { %738 = vmatprep.subr.bf16.mxu0 %v828_v39 }
  0x2a   :  { %757 = vmatpush3.bf16.msra.mxu1 %v821_v48 }
  0x2b   :  { %758 = vmatprep.subr.bf16.mxu1 %v828_v39 }
  0x2c   :  { %739 = vmatpush3.bf16.msra.mxu0 %v814_v41 }
  0x2d   :  { %740 = vmatprep.subr.bf16.mxu0 %v828_v39 }
  0x2e   :  { %759 = vmatpush3.bf16.msra.mxu1 %v822_v49 }
  0x2f   :  { %760 = vmatprep.subr.bf16.mxu1 %v828_v39 }
  0x30   :  { %741 = vmatpush3.bf16.msra.mxu0 %v815_v42 }
  0x31   :  { %742 = vmatprep.subr.bf16.mxu0 %v828_v39 }
  0x32   :  { %761 = vmatpush3.bf16.msra.mxu1 %v823_v50 }
  0x33   :  { %762 = vmatprep.subr.bf16.mxu1 %v828_v39 }
  0x34   :  { %743 = vmatpush3.bf16.msra.mxu0 %v816_v43 }
  0x35   :  { %744 = vmatprep.subr.bf16.mxu0 %v828_v39 }
  0x36   :  { %763 = vmatpush3.bf16.msra.mxu1 %v824_v51 }
  0x37   :  { %764 = vmatprep.subr.bf16.mxu1 %v828_v39 }
  0x38   :  { %745 = vmatpush3.bf16.msra.mxu0 %v817_v44 }
  0x39   :  { %746 = vmatprep.subr.bf16.mxu0 %v828_v39 }
  0x3a   :  { %765 = vmatpush3.bf16.msra.mxu1 %v825_v52 }
  0x3b   :  { %766 = vmatprep.subr.bf16.mxu1 %v828_v39 }
  0x3c   :  { %747 = vmatpush3.bf16.msra.mxu0 %v818_v45 }
  0x3d   :  { %748 = vmatprep.subr.bf16.mxu0 %v828_v39 }
  0x3e   :  { %767 = vmatpush3.bf16.msra.mxu1 %v826_v4 }
  0x3f   :  { %768 = vmatprep.subr.bf16.mxu1 %v828_v39 }
  0x40   :  { %749 = vmatpush3.bf16.msra.mxu0 %v819_v46 }
  0x42   :  { %769 = vmatpush3.bf16.msra.mxu1 %v827_v5 }
  0xe3   :  { %v688_v53 = vpop.f32.mrf.mxu0 }
  0xe4   :  { %v710_v54 = vpop.f32.mrf.mxu1 }
  0xe5   :  { %v689_v56 = vpop.f32.mrf.mxu0 }
  0xe6   :  { %v711_v57 = vpop.f32.mrf.mxu1  ;;  %v690_v58 = vadd.f32 %v689_v56, %v688_v53 }
  0xe7   :  { %v691_v59 = vpop.f32.mrf.mxu0  ;;  %v712_v62 = vadd.f32 %v711_v57, %v710_v54 }
  0xe8   :  { %v713_v60 = vpop.f32.mrf.mxu1  ;;  %v341_v61 = vadd.f32 %v690_v58, %v617_v55 }
  0xe9   :  { %v692_v63 = vpop.f32.mrf.mxu0 }
  0xea   :  { %v714_v0 = vpop.f32.mrf.mxu1  ;;  %v381_v1 = vadd.f32 %v712_v62, %v341_v61 }
  0xec   :  { %v386_v2 = vmax.f32 %v381_v1, 0.0 }
  0xee   :  { %v387_v3 = vpack.c.bf16 %v386_v2, %v386_v2 }
  0xf0   :  { %751 = vmatmul.mubr.bf16.vlgmr.msra.gmra.mxu0 %v387_v3 }
 0x1b0   :  { %v493_v7 = vpop.f32.mrf.mxu0 }
 0x1b1   :  { %v494_v8 = vadd.f32 %v654_v6, %v493_v7 }
 0x1b2   :  { %v752_v9 = vpop.f32.mrf.mxu0 }
 0x1b3   :  { %v499_v10 = vmax.f32 %v494_v8, 0.0 }
 0x1b4   :  { %v496_v11 = vpop.f32.mrf.mxu0 }
 0x1b5   :  { %v500_v12 = vpack.c.bf16 %v499_v10, %v499_v10 }
 0x1b6   :  { %v753_v13 = vpop.f32.mrf.mxu0 }
 0x1b7   :  { %771 = vmatmul.mubr.bf16.vlgmr.msra.gmra.mxu1 %v500_v12 }
 0x277   :  { %v606_v15 = vpop.f32.mrf.mxu1 }
 0x278   :  { %v607_v16 = vadd.f32 %v663_v14, %v606_v15 }
 0x279   :  { %v772_v17 = vpop.f32.mrf.mxu1 }
 0x27a   :  { %612 = vst [vmem:[%s1057_s7] sm:$0xff] %v607_v16 }
 0x27b   :  { %v609_v18 = vpop.f32.mrf.mxu1 }
 0x27d   :  { %v773_v19 = vpop.f32.mrf.mxu1 }

</bundles_post_ra>
